<compile_context>
chip_gen: v7x
topology: tpu7x:2x2x1
jax: 0.10.0
libtpu: 0.0.40
codegen_flags: <defaults>
</compile_context>

<pallas_src>
import math
from functools import partial

import jax
import jax.numpy as jnp
from jax.experimental import pallas as pl
from jax.experimental.pallas import tpu as pltpu


_PNA_KEYS = ("mw1", "mb1", "mw2", "mb2", "uw1", "ub1", "uw2", "ub2")


def _make_gnn_kernel(npna, amplify):
    npna = int(npna)
    amplify = float(amplify)

    def kernel(demand_ref, facin_ref, adj_ref,
               cw_ref, cb_ref, fw_ref, fb_ref,
               w1_ref, b1_ref, w2_ref, b2_ref,
               uw1_ref, ub1_ref, uw2_ref, ub2_ref,
               hw1_ref, hb1_ref, hw2_ref, hb2_ref, hw3_ref, hb3_ref,
               o_ref):
        f32, bf16 = jnp.float32, jnp.bfloat16
        Nc = demand_ref.shape[1]
        Nf = facin_ref.shape[1]
        D = cw_ref.shape[1]
        H = b1_ref.shape[1] // 2

        # ---- 1-feature embeddings as broadcast mul-add (avoids K=1 MXU matmuls).
        c = demand_ref[0] * cw_ref[...] + cb_ref[...]       # [Nc, D]
        f = facin_ref[0] * fw_ref[...] + fb_ref[...]        # [Nf, D]

        # ---- Adjacency-derived quantities: computed ONCE, reused every npna round.
        adj = adj_ref[0]                                    # [Nc, Nf]
        adjv = adj[:, :, None]                              # [Nc, Nf, 1]
        edge = adjv > 0.0
        deg_c = jnp.sum(adj, axis=1, keepdims=True)                  # [Nc, 1]
        deg_f = jnp.transpose(jnp.sum(adj, axis=0, keepdims=True))   # [Nf, 1]
        has_c = (deg_c > 0.0).astype(f32)
        has_f = (deg_f > 0.0).astype(f32)
        inv_c = 1.0 / jnp.maximum(deg_c, 1.0)   # exact divide; hoisted, once per graph
        inv_f = 1.0 / jnp.maximum(deg_f, 1.0)
        logd_c = jnp.log(deg_c + 1.0)
        logd_f = jnp.log(deg_f + 1.0)
        amp_c = logd_c * (1.0 / amplify)
        amp_f = logd_f * (1.0 / amplify)
        att_c = amplify / jnp.where(logd_c > 0.0, logd_c, 1.0)
        att_f = amplify / jnp.where(logd_f > 0.0, logd_f, 1.0)

        # ---- Combined weights (bf16 / block layouts pre-built on the host).
        w1, b1 = w1_ref[...], b1_ref[...]
        w2, b2 = w2_ref[...], b2_ref[...]
        uw1, ub1 = uw1_ref[...], ub1_ref[...]
        uw2, ub2 = uw2_ref[...], ub2_ref[...]

        # ---- Block-diagonal joint state: customers in [:Nc,:D], facilities in [Nc:,D:].
        hcf = jnp.concatenate(
            [jnp.concatenate([c, jnp.zeros((Nc, D), f32)], axis=1),
             jnp.concatenate([jnp.zeros((Nf, D), f32), f], axis=1)], axis=0)  # [Nc+Nf, 2D]

        NEG = jnp.float32(-1e30)

        for _ in range(npna):
            c = hcf[:Nc, :D]
            f = hcf[Nc:, D:]

            # Message MLP layer 1 (both PNA layers, dst+src halves, in ONE matmul).
            p = jnp.dot(hcf.astype(bf16), w1, preferred_element_type=f32)   # [Nc+Nf, 2H]
            pc = p[:Nc] + b1                     # dst-row biases folded in before broadcast
            pf = p[Nc:]
            h1 = jnp.maximum(pc[:, None, :] + pf[None, :, :], 0.0)          # [Nc, Nf, 2H]

            # Message MLP layer 2 (block-diagonal weight -> both layers' messages).
            msg = jnp.maximum(
                jnp.dot(h1.reshape(Nc * Nf, 2 * H).astype(bf16), w2,
                        preferred_element_type=f32) + b2,
                0.0).reshape(Nc, Nf, 2 * D)      # [..., :D] customer layer, [..., D:] facility

            # Masked PNA aggregation: shared edge mask, per-layer reduce axes. f32.
            mmax = jnp.where(edge, msg, NEG)
            mmin = jnp.where(edge, msg, -NEG)
            mwt = msg * adjv
            m2t = mwt * msg

            amax_c = jnp.max(mmax[..., :D], axis=1) * has_c
            amin_c = jnp.min(mmin[..., :D], axis=1) * has_c
            mean_c = jnp.sum(mwt[..., :D], axis=1) * inv_c
            m2_c = jnp.sum(m2t[..., :D], axis=1) * inv_c
            amean_c = mean_c * has_c
            astd_c = jnp.sqrt(jnp.maximum(m2_c - mean_c * mean_c, 0.0) + 1e-5) * has_c

            amax_f = jnp.max(mmax[..., D:], axis=0) * has_f
            amin_f = jnp.min(mmin[..., D:], axis=0) * has_f
            mean_f = jnp.sum(mwt[..., D:], axis=0) * inv_f
            m2_f = jnp.sum(m2t[..., D:], axis=0) * inv_f
            amean_f = mean_f * has_f
            astd_f = jnp.sqrt(jnp.maximum(m2_f - mean_f * mean_f, 0.0) + 1e-5) * has_f

            aggs_c = jnp.concatenate([amax_c, amin_c, amean_c, astd_c], axis=1)  # [Nc, 4D]
            aggs_f = jnp.concatenate([amax_f, amin_f, amean_f, astd_f], axis=1)  # [Nf, 4D]

            # Update MLP layer 1: lane-dense [aggs | aggs*amp | aggs*att | h] order,
            # both node sets stacked on M, cus/fac weights lane-concatenated on N.
            feats = jnp.concatenate(
                [jnp.concatenate([aggs_c, aggs_c * amp_c, aggs_c * att_c, c], axis=1),
                 jnp.concatenate([aggs_f, aggs_f * amp_f, aggs_f * att_f, f], axis=1)],
                axis=0)                                                          # [Nc+Nf, 13D]
            u1 = jnp.maximum(
                jnp.dot(feats.astype(bf16), uw1, preferred_element_type=f32) + ub1, 0.0)

            # Update MLP layer 2: block-diagonal weight zeroes the unused halves and
            # yields the next round's block-diagonal state directly (f32, carries state).
            hcf = jnp.dot(u1, uw2, preferred_element_type=f32) + ub2

        # ---- Head MLP: Linear/ReLU, Linear/ReLU, then VPU mul + lane-reduce + Sigmoid.
        f_out = hcf[Nc:, D:]                                 # [Nf, D]
        h = jnp.maximum(jnp.dot(f_out.astype(bf16), hw1_ref[...],
                                preferred_element_type=f32) + hb1_ref[...], 0.0)
        h = jnp.maximum(jnp.dot(h.astype(bf16), hw2_ref[...],
                                preferred_element_type=f32) + hb2_ref[...], 0.0)
        logit = jnp.sum(h * hw3_ref[...], axis=1, keepdims=True) + hb3_ref[...]
        o_ref[0] = jax.nn.sigmoid(logit).astype(o_ref.dtype)

    return kernel


def _prep_params(params, Nc, Nf):
    """Host-side weight fusion: combined / block-diagonal layouts, bf16 casts hoisted."""
    f32, bf16 = jnp.float32, jnp.bfloat16
    D = params["cw"].shape[1]
    cus, fac = params["cus"], params["fac"]
    H = cus["mb1"].shape[1]

    # Message L1: [2D, 2H]; rows :D hit customers, rows D: hit facilities.
    w1_blk = jnp.concatenate(
        [jnp.concatenate([cus["mw1"][:D], fac["mw1"][D:]], axis=1),
         jnp.concatenate([cus["mw1"][D:], fac["mw1"][:D]], axis=1)], axis=0).astype(bf16)
    b1_blk = jnp.concatenate([cus["mb1"], fac["mb1"]], axis=1)

    # Message L2: block-diagonal [2H, 2D].
    zHD = jnp.zeros((H, D), f32)
    w2_blk = jnp.concatenate(
        [jnp.concatenate([cus["mw2"], zHD], axis=1),
         jnp.concatenate([zHD, fac["mw2"]], axis=1)], axis=0).astype(bf16)
    b2_blk = jnp.concatenate([cus["mb2"], fac["mb2"]], axis=1)

    # Update L1: permute rows from canonical [h; aggs; amp; att] to lane-dense
    # [aggs; amp; att; h], then lane-concat cus|fac -> [13D, 2D].
    def _perm(u):
        return jnp.concatenate([u[D:], u[:D]], axis=0)
    uw1_cat = jnp.concatenate([_perm(cus["uw1"]), _perm(fac["uw1"])], axis=1).astype(bf16)
    ub1_cat = jnp.concatenate([cus["ub1"], fac["ub1"]], axis=1)

    # Update L2: block-diagonal [2D, 2D] (f32) + block-structured bias [Nc+Nf, 2D].
    zDD = jnp.zeros((D, D), f32)
    uw2_blk = jnp.concatenate(
        [jnp.concatenate([cus["uw2"], zDD], axis=1),
         jnp.concatenate([zDD, fac["uw2"]], axis=1)], axis=0)
    ub2_blk = jnp.concatenate(
        [jnp.concatenate([jnp.broadcast_to(cus["ub2"], (Nc, D)),
                          jnp.zeros((Nc, D), f32)], axis=1),
         jnp.concatenate([jnp.zeros((Nf, D), f32),
                          jnp.broadcast_to(fac["ub2"], (Nf, D))], axis=1)], axis=0)

    return [params["cw"], params["cb"], params["fw"], params["fb"],
            w1_blk, b1_blk, w2_blk, b2_blk,
            uw1_cat, ub1_cat, uw2_blk, ub2_blk,
            params["f_w1"].astype(bf16), params["f_b1"],
            params["f_w2"].astype(bf16), params["f_b2"],
            jnp.transpose(params["f_w3"]), params["f_b3"]]


@partial(jax.jit, static_argnums=(4, 5))
def gnn_forward(demand, fac_init, adj, params, npna, amplify):
    """Batched forward: demand [B,Nc,1], fac_init [B,Nf,1], adj [B,Nc,Nf] -> [B,Nf,1]."""
    B, Nc, _ = demand.shape
    Nf = fac_init.shape[1]
    weights = _prep_params(params, Nc, Nf)

    data_specs = [
        pl.BlockSpec((1, Nc, 1), lambda b: (b, 0, 0)),
        pl.BlockSpec((1, Nf, 1), lambda b: (b, 0, 0)),
        pl.BlockSpec((1, Nc, Nf), lambda b: (b, 0, 0)),
    ]
    # Grid-invariant index maps -> weights are DMA'd once and stay VMEM-resident.
    weight_specs = [pl.BlockSpec(tuple(w.shape), lambda b: (0, 0)) for w in weights]

    return pl.pallas_call(
        _make_gnn_kernel(npna, amplify),
        out_shape=jax.ShapeDtypeStruct((B, Nf, 1), jnp.float32),
        grid=(B,),
        in_specs=data_specs + weight_specs,
        out_specs=pl.BlockSpec((1, Nf, 1), lambda b: (b, 0, 0)),
        compiler_params=pltpu.CompilerParams(dimension_semantics=("parallel",)),
    )(demand, fac_init, adj, *weights)


def init_params(key, D, H, mlp_hidden=12):
    keys = iter(jax.random.split(key, 40))

    def dense(fan_in, fan_out):
        return jax.random.normal(next(keys), (fan_in, fan_out), jnp.float32) / math.sqrt(fan_in)

    def bias(n):
        return jax.random.normal(next(keys), (1, n), jnp.float32) * 0.01

    def pna_params():
        return dict(
            mw1=dense(2 * D, H),  mb1=bias(H),
            mw2=dense(H, D),      mb2=bias(D),
            uw1=dense(13 * D, D), ub1=bias(D),
            uw2=dense(D, D),      ub2=bias(D),
        )

    return dict(
        cw=dense(1, D), cb=bias(D),            # customer_emv: Linear(1, customer_nhid)
        fw=dense(1, D), fb=bias(D),            # facility_emv: Linear(1, facility_nhid)
        cus=pna_params(),                      # cus_pna
        fac=pna_params(),                      # fac_pna
        f_w1=dense(D, mlp_hidden),          f_b1=bias(mlp_hidden),   # self.f: MLP(32->12->12->1, Sigmoid)
        f_w2=dense(mlp_hidden, mlp_hidden), f_b2=bias(mlp_hidden),
        f_w3=dense(mlp_hidden, 1),          f_b3=bias(1),
    )


if __name__ == "__main__":
    B = 4                      # batch of independent graphs, one grid step each
    N_CUST, N_FAC = 16, 8
    D, H = 32, 32              # nhid_set = {'customer_nhid': 32, 'facility_nhid': 32}
    NPNA = 2
    AMPLIFY = 2.0

    key = jax.random.PRNGKey(0)
    k1, k2, k3, k4 = jax.random.split(key, 4)

    demand = jax.random.uniform(k1, (B, N_CUST, 1), jnp.float32)
    fac_init = jax.random.uniform(k2, (B, N_FAC, 1), jnp.float32)
    adj = (jax.random.uniform(k3, (B, N_CUST, N_FAC)) > 0.5).astype(jnp.float32)
    # guarantee every customer and every facility has at least one neighbor
    eye = jnp.zeros((N_CUST, N_FAC), jnp.float32).at[
        jnp.arange(N_CUST), jnp.arange(N_CUST) % N_FAC].set(1.0)
    adj = jnp.maximum(adj, eye[None])

    params = init_params(k4, D, H)

    out = gnn_forward(demand, fac_init, adj, params, NPNA, AMPLIFY)
    out = jax.block_until_ready(out)

    assert out.shape == (B, N_FAC, 1)
    assert bool(jnp.all(jnp.isfinite(out)))
    assert bool(jnp.all((out >= 0.0) & (out <= 1.0)))   # sigmoid head
    print("KERNEL_OK")
</pallas_src>

<mosaic_0001>
module attributes {stable_mosaic.version = 11 : i64} {
  func.func @kernel(%arg0: i32, %arg1: memref<1x16x1xf32, #tpu.memory_space<vmem>>, %arg2: memref<1x8x1xf32, #tpu.memory_space<vmem>>, %arg3: memref<1x16x8xf32, #tpu.memory_space<vmem>>, %arg4: memref<1x32xf32, #tpu.memory_space<vmem>>, %arg5: memref<1x32xf32, #tpu.memory_space<vmem>>, %arg6: memref<1x32xf32, #tpu.memory_space<vmem>>, %arg7: memref<1x32xf32, #tpu.memory_space<vmem>>, %arg8: memref<64x64xbf16, #tpu.memory_space<vmem>>, %arg9: memref<1x64xf32, #tpu.memory_space<vmem>>, %arg10: memref<64x64xbf16, #tpu.memory_space<vmem>>, %arg11: memref<1x64xf32, #tpu.memory_space<vmem>>, %arg12: memref<416x64xbf16, #tpu.memory_space<vmem>>, %arg13: memref<1x64xf32, #tpu.memory_space<vmem>>, %arg14: memref<64x64xf32, #tpu.memory_space<vmem>>, %arg15: memref<24x64xf32, #tpu.memory_space<vmem>>, %arg16: memref<32x12xbf16, #tpu.memory_space<vmem>>, %arg17: memref<1x12xf32, #tpu.memory_space<vmem>>, %arg18: memref<12x12xbf16, #tpu.memory_space<vmem>>, %arg19: memref<1x12xf32, #tpu.memory_space<vmem>>, %arg20: memref<1x12xf32, #tpu.memory_space<vmem>>, %arg21: memref<1x1xf32, #tpu.memory_space<vmem>>, %arg22: memref<1x8x1xf32, #tpu.memory_space<vmem>>) attributes {dimension_semantics = [#tpu.dimension_semantics<parallel>], iteration_bounds = array<i64: 4>, scalar_prefetch = 0 : i64, scratch_operands = 0 : i64, tpu.core_type = #tpu.core_type<tc>, window_params = [{transform_indices = @transform_0, window_bounds = array<i64: 1, 16, 1>}, {transform_indices = @transform_1, window_bounds = array<i64: 1, 8, 1>}, {transform_indices = @transform_2, window_bounds = array<i64: 1, 16, 8>}, {pipeline_mode = #tpu.pipeline_mode<synchronous>, transform_indices = @transform_3, window_bounds = array<i64: 1, 32>}, {pipeline_mode = #tpu.pipeline_mode<synchronous>, transform_indices = @transform_4, window_bounds = array<i64: 1, 32>}, {pipeline_mode = #tpu.pipeline_mode<synchronous>, transform_indices = @transform_5, window_bounds = array<i64: 1, 32>}, {pipeline_mode = #tpu.pipeline_mode<synchronous>, transform_indices = @transform_6, window_bounds = array<i64: 1, 32>}, {pipeline_mode = #tpu.pipeline_mode<synchronous>, transform_indices = @transform_7, window_bounds = array<i64: 64, 64>}, {pipeline_mode = #tpu.pipeline_mode<synchronous>, transform_indices = @transform_8, window_bounds = array<i64: 1, 64>}, {pipeline_mode = #tpu.pipeline_mode<synchronous>, transform_indices = @transform_9, window_bounds = array<i64: 64, 64>}, {pipeline_mode = #tpu.pipeline_mode<synchronous>, transform_indices = @transform_10, window_bounds = array<i64: 1, 64>}, {pipeline_mode = #tpu.pipeline_mode<synchronous>, transform_indices = @transform_11, window_bounds = array<i64: 416, 64>}, {pipeline_mode = #tpu.pipeline_mode<synchronous>, transform_indices = @transform_12, window_bounds = array<i64: 1, 64>}, {pipeline_mode = #tpu.pipeline_mode<synchronous>, transform_indices = @transform_13, window_bounds = array<i64: 64, 64>}, {pipeline_mode = #tpu.pipeline_mode<synchronous>, transform_indices = @transform_14, window_bounds = array<i64: 24, 64>}, {pipeline_mode = #tpu.pipeline_mode<synchronous>, transform_indices = @transform_15, window_bounds = array<i64: 32, 12>}, {pipeline_mode = #tpu.pipeline_mode<synchronous>, transform_indices = @transform_16, window_bounds = array<i64: 1, 12>}, {pipeline_mode = #tpu.pipeline_mode<synchronous>, transform_indices = @transform_17, window_bounds = array<i64: 12, 12>}, {pipeline_mode = #tpu.pipeline_mode<synchronous>, transform_indices = @transform_18, window_bounds = array<i64: 1, 12>}, {pipeline_mode = #tpu.pipeline_mode<synchronous>, transform_indices = @transform_19, window_bounds = array<i64: 1, 12>}, {pipeline_mode = #tpu.pipeline_mode<synchronous>, transform_indices = @transform_20, window_bounds = array<i64: 1, 1>}, {transform_indices = @transform_21, window_bounds = array<i64: 1, 8, 1>}]} {
    %c0 = arith.constant 0 : index
    %c0_0 = arith.constant 0 : index
    %c0_1 = arith.constant 0 : index
    %0 = vector.load %arg1[%c0, %c0_0, %c0_1] : memref<1x16x1xf32, #tpu.memory_space<vmem>>, vector<1x16x1xf32>
    %1 = vector.shape_cast %0 : vector<1x16x1xf32> to vector<16x1xf32>
    %c0_2 = arith.constant 0 : index
    %c0_3 = arith.constant 0 : index
    %2 = vector.load %arg4[%c0_2, %c0_3] : memref<1x32xf32, #tpu.memory_space<vmem>>, vector<1x32xf32>
    %3 = vector.broadcast %1 : vector<16x1xf32> to vector<16x32xf32>
    %4 = vector.broadcast %2 : vector<1x32xf32> to vector<16x32xf32>
    %5 = arith.mulf %3, %4 : vector<16x32xf32>
    %c0_4 = arith.constant 0 : index
    %c0_5 = arith.constant 0 : index
    %6 = vector.load %arg5[%c0_4, %c0_5] : memref<1x32xf32, #tpu.memory_space<vmem>>, vector<1x32xf32>
    %7 = vector.broadcast %6 : vector<1x32xf32> to vector<16x32xf32>
    %8 = arith.addf %5, %7 : vector<16x32xf32>
    %c0_6 = arith.constant 0 : index
    %c0_7 = arith.constant 0 : index
    %c0_8 = arith.constant 0 : index
    %9 = vector.load %arg2[%c0_6, %c0_7, %c0_8] : memref<1x8x1xf32, #tpu.memory_space<vmem>>, vector<1x8x1xf32>
    %10 = vector.shape_cast %9 : vector<1x8x1xf32> to vector<8x1xf32>
    %c0_9 = arith.constant 0 : index
    %c0_10 = arith.constant 0 : index
    %11 = vector.load %arg6[%c0_9, %c0_10] : memref<1x32xf32, #tpu.memory_space<vmem>>, vector<1x32xf32>
    %12 = vector.broadcast %10 : vector<8x1xf32> to vector<8x32xf32>
    %13 = vector.broadcast %11 : vector<1x32xf32> to vector<8x32xf32>
    %14 = arith.mulf %12, %13 : vector<8x32xf32>
    %c0_11 = arith.constant 0 : index
    %c0_12 = arith.constant 0 : index
    %15 = vector.load %arg7[%c0_11, %c0_12] : memref<1x32xf32, #tpu.memory_space<vmem>>, vector<1x32xf32>
    %16 = vector.broadcast %15 : vector<1x32xf32> to vector<8x32xf32>
    %17 = arith.addf %14, %16 : vector<8x32xf32>
    %c0_13 = arith.constant 0 : index
    %c0_14 = arith.constant 0 : index
    %c0_15 = arith.constant 0 : index
    %18 = vector.load %arg3[%c0_13, %c0_14, %c0_15] : memref<1x16x8xf32, #tpu.memory_space<vmem>>, vector<1x16x8xf32>
    %19 = vector.shape_cast %18 : vector<1x16x8xf32> to vector<16x8xf32>
    %20 = vector.shape_cast %19 : vector<16x8xf32> to vector<16x8x1xf32>
    %cst = arith.constant 0.000000e+00 : f32
    %21 = vector.broadcast %cst : f32 to vector<16x8x1xf32>
    %22 = arith.cmpf ogt, %20, %21 : vector<16x8x1xf32>
    %cst_16 = arith.constant dense<0.000000e+00> : vector<16xf32>
    %23 = vector.multi_reduction <add>, %19, %cst_16 [1] : vector<16x8xf32> to vector<16xf32>
    %24 = vector.shape_cast %23 : vector<16xf32> to vector<16x1xf32>
    %cst_17 = arith.constant dense<0.000000e+00> : vector<8xf32>
    %25 = vector.multi_reduction <add>, %19, %cst_17 [0] : vector<16x8xf32> to vector<8xf32>
    %26 = vector.shape_cast %25 : vector<8xf32> to vector<1x8xf32>
    %27 = tpu.transpose %26, [1, 0] : vector<1x8xf32> -> vector<8x1xf32>
    %cst_18 = arith.constant 0.000000e+00 : f32
    %28 = vector.broadcast %cst_18 : f32 to vector<16x1xf32>
    %29 = arith.cmpf ogt, %24, %28 : vector<16x1xf32>
    %30 = arith.extui %29 : vector<16x1xi1> to vector<16x1xi32>
    %31 = arith.sitofp %30 : vector<16x1xi32> to vector<16x1xf32>
    %cst_19 = arith.constant 0.000000e+00 : f32
    %32 = vector.broadcast %cst_19 : f32 to vector<8x1xf32>
    %33 = arith.cmpf ogt, %27, %32 : vector<8x1xf32>
    %34 = arith.extui %33 : vector<8x1xi1> to vector<8x1xi32>
    %35 = arith.sitofp %34 : vector<8x1xi32> to vector<8x1xf32>
    %cst_20 = arith.constant 1.000000e+00 : f32
    %36 = vector.broadcast %cst_20 : f32 to vector<16x1xf32>
    %37 = arith.maximumf %24, %36 : vector<16x1xf32>
    %cst_21 = arith.constant 1.000000e+00 : f32
    %38 = vector.broadcast %cst_21 : f32 to vector<16x1xf32>
    %39 = arith.divf %38, %37 : vector<16x1xf32>
    %cst_22 = arith.constant 1.000000e+00 : f32
    %40 = vector.broadcast %cst_22 : f32 to vector<8x1xf32>
    %41 = arith.maximumf %27, %40 : vector<8x1xf32>
    %cst_23 = arith.constant 1.000000e+00 : f32
    %42 = vector.broadcast %cst_23 : f32 to vector<8x1xf32>
    %43 = arith.divf %42, %41 : vector<8x1xf32>
    %cst_24 = arith.constant 1.000000e+00 : f32
    %44 = vector.broadcast %cst_24 : f32 to vector<16x1xf32>
    %45 = arith.addf %24, %44 : vector<16x1xf32>
    %46 = math.log %45 : vector<16x1xf32>
    %cst_25 = arith.constant 1.000000e+00 : f32
    %47 = vector.broadcast %cst_25 : f32 to vector<8x1xf32>
    %48 = arith.addf %27, %47 : vector<8x1xf32>
    %49 = math.log %48 : vector<8x1xf32>
    %cst_26 = arith.constant 5.000000e-01 : f32
    %50 = vector.broadcast %cst_26 : f32 to vector<16x1xf32>
    %51 = arith.mulf %46, %50 : vector<16x1xf32>
    %cst_27 = arith.constant 5.000000e-01 : f32
    %52 = vector.broadcast %cst_27 : f32 to vector<8x1xf32>
    %53 = arith.mulf %49, %52 : vector<8x1xf32>
    %cst_28 = arith.constant 0.000000e+00 : f32
    %54 = vector.broadcast %cst_28 : f32 to vector<16x1xf32>
    %55 = arith.cmpf ogt, %46, %54 : vector<16x1xf32>
    %cst_29 = arith.constant 1.000000e+00 : f32
    %56 = vector.broadcast %cst_29 : f32 to vector<16x1xf32>
    %57 = arith.select %55, %46, %56 : vector<16x1xi1>, vector<16x1xf32>
    %cst_30 = arith.constant 2.000000e+00 : f32
    %58 = vector.broadcast %cst_30 : f32 to vector<16x1xf32>
    %59 = arith.divf %58, %57 : vector<16x1xf32>
    %cst_31 = arith.constant 0.000000e+00 : f32
    %60 = vector.broadcast %cst_31 : f32 to vector<8x1xf32>
    %61 = arith.cmpf ogt, %49, %60 : vector<8x1xf32>
    %cst_32 = arith.constant 1.000000e+00 : f32
    %62 = vector.broadcast %cst_32 : f32 to vector<8x1xf32>
    %63 = arith.select %61, %49, %62 : vector<8x1xi1>, vector<8x1xf32>
    %cst_33 = arith.constant 2.000000e+00 : f32
    %64 = vector.broadcast %cst_33 : f32 to vector<8x1xf32>
    %65 = arith.divf %64, %63 : vector<8x1xf32>
    %c0_34 = arith.constant 0 : index
    %c0_35 = arith.constant 0 : index
    %66 = vector.load %arg8[%c0_34, %c0_35] : memref<64x64xbf16, #tpu.memory_space<vmem>>, vector<64x64xbf16>
    %c0_36 = arith.constant 0 : index
    %c0_37 = arith.constant 0 : index
    %67 = vector.load %arg9[%c0_36, %c0_37] : memref<1x64xf32, #tpu.memory_space<vmem>>, vector<1x64xf32>
    %c0_38 = arith.constant 0 : index
    %c0_39 = arith.constant 0 : index
    %68 = vector.load %arg10[%c0_38, %c0_39] : memref<64x64xbf16, #tpu.memory_space<vmem>>, vector<64x64xbf16>
    %c0_40 = arith.constant 0 : index
    %c0_41 = arith.constant 0 : index
    %69 = vector.load %arg11[%c0_40, %c0_41] : memref<1x64xf32, #tpu.memory_space<vmem>>, vector<1x64xf32>
    %c0_42 = arith.constant 0 : index
    %c0_43 = arith.constant 0 : index
    %70 = vector.load %arg12[%c0_42, %c0_43] : memref<416x64xbf16, #tpu.memory_space<vmem>>, vector<416x64xbf16>
    %c0_44 = arith.constant 0 : index
    %c0_45 = arith.constant 0 : index
    %71 = vector.load %arg13[%c0_44, %c0_45] : memref<1x64xf32, #tpu.memory_space<vmem>>, vector<1x64xf32>
    %c0_46 = arith.constant 0 : index
    %c0_47 = arith.constant 0 : index
    %72 = vector.load %arg14[%c0_46, %c0_47] : memref<64x64xf32, #tpu.memory_space<vmem>>, vector<64x64xf32>
    %c0_48 = arith.constant 0 : index
    %c0_49 = arith.constant 0 : index
    %73 = vector.load %arg15[%c0_48, %c0_49] : memref<24x64xf32, #tpu.memory_space<vmem>>, vector<24x64xf32>
    %cst_50 = arith.constant 0.000000e+00 : f32
    %74 = vector.broadcast %cst_50 : f32 to vector<16x32xf32>
    %75 = tpu.concatenate %8, %74 in 1 : vector<16x32xf32>, vector<16x32xf32> -> vector<16x64xf32>
    %cst_51 = arith.constant 0.000000e+00 : f32
    %76 = vector.broadcast %cst_51 : f32 to vector<8x32xf32>
    %77 = tpu.concatenate %76, %17 in 1 : vector<8x32xf32>, vector<8x32xf32> -> vector<8x64xf32>
    %78 = tpu.concatenate %75, %77 in 0 : vector<16x64xf32>, vector<8x64xf32> -> vector<24x64xf32>
    %79 = vector.extract_strided_slice %78 {offsets = [0, 0], sizes = [16, 32], strides = [1, 1]} : vector<24x64xf32> to vector<16x32xf32>
    %80 = vector.extract_strided_slice %78 {offsets = [16, 32], sizes = [8, 32], strides = [1, 1]} : vector<24x64xf32> to vector<8x32xf32>
    %81 = arith.truncf %78 : vector<24x64xf32> to vector<24x64xbf16>
    %cst_52 = arith.constant dense<0.000000e+00> : vector<24x64xf32>
    %82 = tpu.matmul %81, %66, %cst_52 {dimension_numbers = #tpu.dot_dimension_numbers<[1], [0], [0], [1], [0, 0, 1, 1], [], []>} : vector<24x64xbf16>, vector<64x64xbf16>, vector<24x64xf32> -> vector<24x64xf32>
    %83 = vector.extract_strided_slice %82 {offsets = [0, 0], sizes = [16, 64], strides = [1, 1]} : vector<24x64xf32> to vector<16x64xf32>
    %84 = vector.broadcast %67 : vector<1x64xf32> to vector<16x64xf32>
    %85 = arith.addf %83, %84 : vector<16x64xf32>
    %86 = vector.extract_strided_slice %82 {offsets = [16, 0], sizes = [8, 64], strides = [1, 1]} : vector<24x64xf32> to vector<8x64xf32>
    %87 = vector.shape_cast %85 : vector<16x64xf32> to vector<16x1x64xf32>
    %88 = vector.shape_cast %86 : vector<8x64xf32> to vector<1x8x64xf32>
    %89 = vector.broadcast %87 : vector<16x1x64xf32> to vector<16x8x64xf32>
    %90 = vector.broadcast %88 : vector<1x8x64xf32> to vector<16x8x64xf32>
    %91 = arith.addf %89, %90 : vector<16x8x64xf32>
    %cst_53 = arith.constant 0.000000e+00 : f32
    %92 = vector.broadcast %cst_53 : f32 to vector<16x8x64xf32>
    %93 = arith.maximumf %91, %92 : vector<16x8x64xf32>
    %94 = vector.shape_cast %93 : vector<16x8x64xf32> to vector<128x64xf32>
    %95 = arith.truncf %94 : vector<128x64xf32> to vector<128x64xbf16>
    %cst_54 = arith.constant dense<0.000000e+00> : vector<128x64xf32>
    %96 = tpu.matmul %95, %68, %cst_54 {dimension_numbers = #tpu.dot_dimension_numbers<[1], [0], [0], [1], [0, 0, 1, 1], [], []>} : vector<128x64xbf16>, vector<64x64xbf16>, vector<128x64xf32> -> vector<128x64xf32>
    %97 = vector.broadcast %69 : vector<1x64xf32> to vector<128x64xf32>
    %98 = arith.addf %96, %97 : vector<128x64xf32>
    %cst_55 = arith.constant 0.000000e+00 : f32
    %99 = vector.broadcast %cst_55 : f32 to vector<128x64xf32>
    %100 = arith.maximumf %98, %99 : vector<128x64xf32>
    %101 = vector.shape_cast %100 : vector<128x64xf32> to vector<16x8x64xf32>
    %cst_56 = arith.constant -1.000000e+30 : f32
    %102 = vector.shape_cast %22 : vector<16x8x1xi1> to vector<16x8x1xi1>
    %103 = vector.broadcast %102 : vector<16x8x1xi1> to vector<16x8x64xi1>
    %104 = vector.broadcast %cst_56 : f32 to vector<16x8x64xf32>
    %105 = arith.select %103, %101, %104 : vector<16x8x64xi1>, vector<16x8x64xf32>
    %cst_57 = arith.constant 0.000000e+00 : f32
    %cst_58 = arith.constant -1.000000e+30 : f32
    %106 = arith.subf %cst_57, %cst_58 : f32
    %107 = vector.shape_cast %22 : vector<16x8x1xi1> to vector<16x8x1xi1>
    %108 = vector.broadcast %107 : vector<16x8x1xi1> to vector<16x8x64xi1>
    %109 = vector.broadcast %106 : f32 to vector<16x8x64xf32>
    %110 = arith.select %108, %101, %109 : vector<16x8x64xi1>, vector<16x8x64xf32>
    %111 = vector.broadcast %20 : vector<16x8x1xf32> to vector<16x8x64xf32>
    %112 = arith.mulf %101, %111 : vector<16x8x64xf32>
    %113 = arith.mulf %112, %101 : vector<16x8x64xf32>
    %114 = vector.extract_strided_slice %105 {offsets = [0, 0, 0], sizes = [16, 8, 32], strides = [1, 1, 1]} : vector<16x8x64xf32> to vector<16x8x32xf32>
    %cst_59 = arith.constant dense<0xFF800000> : vector<16x32xf32>
    %115 = vector.multi_reduction <maximumf>, %114, %cst_59 [1] : vector<16x8x32xf32> to vector<16x32xf32>
    %116 = vector.broadcast %31 : vector<16x1xf32> to vector<16x32xf32>
    %117 = arith.mulf %115, %116 : vector<16x32xf32>
    %118 = vector.extract_strided_slice %110 {offsets = [0, 0, 0], sizes = [16, 8, 32], strides = [1, 1, 1]} : vector<16x8x64xf32> to vector<16x8x32xf32>
    %cst_60 = arith.constant dense<0x7F800000> : vector<16x32xf32>
    %119 = vector.multi_reduction <minimumf>, %118, %cst_60 [1] : vector<16x8x32xf32> to vector<16x32xf32>
    %120 = vector.broadcast %31 : vector<16x1xf32> to vector<16x32xf32>
    %121 = arith.mulf %119, %120 : vector<16x32xf32>
    %122 = vector.extract_strided_slice %112 {offsets = [0, 0, 0], sizes = [16, 8, 32], strides = [1, 1, 1]} : vector<16x8x64xf32> to vector<16x8x32xf32>
    %cst_61 = arith.constant dense<0.000000e+00> : vector<16x32xf32>
    %123 = vector.multi_reduction <add>, %122, %cst_61 [1] : vector<16x8x32xf32> to vector<16x32xf32>
    %124 = vector.broadcast %39 : vector<16x1xf32> to vector<16x32xf32>
    %125 = arith.mulf %123, %124 : vector<16x32xf32>
    %126 = vector.extract_strided_slice %113 {offsets = [0, 0, 0], sizes = [16, 8, 32], strides = [1, 1, 1]} : vector<16x8x64xf32> to vector<16x8x32xf32>
    %cst_62 = arith.constant dense<0.000000e+00> : vector<16x32xf32>
    %127 = vector.multi_reduction <add>, %126, %cst_62 [1] : vector<16x8x32xf32> to vector<16x32xf32>
    %128 = vector.broadcast %39 : vector<16x1xf32> to vector<16x32xf32>
    %129 = arith.mulf %127, %128 : vector<16x32xf32>
    %130 = vector.broadcast %31 : vector<16x1xf32> to vector<16x32xf32>
    %131 = arith.mulf %125, %130 : vector<16x32xf32>
    %132 = arith.mulf %125, %125 : vector<16x32xf32>
    %133 = arith.subf %129, %132 : vector<16x32xf32>
    %cst_63 = arith.constant 0.000000e+00 : f32
    %134 = vector.broadcast %cst_63 : f32 to vector<16x32xf32>
    %135 = arith.maximumf %133, %134 : vector<16x32xf32>
    %cst_64 = arith.constant 9.99999974E-6 : f32
    %136 = vector.broadcast %cst_64 : f32 to vector<16x32xf32>
    %137 = arith.addf %135, %136 : vector<16x32xf32>
    %138 = math.sqrt %137 : vector<16x32xf32>
    %139 = vector.broadcast %31 : vector<16x1xf32> to vector<16x32xf32>
    %140 = arith.mulf %138, %139 : vector<16x32xf32>
    %141 = vector.extract_strided_slice %105 {offsets = [0, 0, 32], sizes = [16, 8, 32], strides = [1, 1, 1]} : vector<16x8x64xf32> to vector<16x8x32xf32>
    %cst_65 = arith.constant dense<0xFF800000> : vector<8x32xf32>
    %142 = vector.multi_reduction <maximumf>, %141, %cst_65 [0] : vector<16x8x32xf32> to vector<8x32xf32>
    %143 = vector.broadcast %35 : vector<8x1xf32> to vector<8x32xf32>
    %144 = arith.mulf %142, %143 : vector<8x32xf32>
    %145 = vector.extract_strided_slice %110 {offsets = [0, 0, 32], sizes = [16, 8, 32], strides = [1, 1, 1]} : vector<16x8x64xf32> to vector<16x8x32xf32>
    %cst_66 = arith.constant dense<0x7F800000> : vector<8x32xf32>
    %146 = vector.multi_reduction <minimumf>, %145, %cst_66 [0] : vector<16x8x32xf32> to vector<8x32xf32>
    %147 = vector.broadcast %35 : vector<8x1xf32> to vector<8x32xf32>
    %148 = arith.mulf %146, %147 : vector<8x32xf32>
    %149 = vector.extract_strided_slice %112 {offsets = [0, 0, 32], sizes = [16, 8, 32], strides = [1, 1, 1]} : vector<16x8x64xf32> to vector<16x8x32xf32>
    %cst_67 = arith.constant dense<0.000000e+00> : vector<8x32xf32>
    %150 = vector.multi_reduction <add>, %149, %cst_67 [0] : vector<16x8x32xf32> to vector<8x32xf32>
    %151 = vector.broadcast %43 : vector<8x1xf32> to vector<8x32xf32>
    %152 = arith.mulf %150, %151 : vector<8x32xf32>
    %153 = vector.extract_strided_slice %113 {offsets = [0, 0, 32], sizes = [16, 8, 32], strides = [1, 1, 1]} : vector<16x8x64xf32> to vector<16x8x32xf32>
    %cst_68 = arith.constant dense<0.000000e+00> : vector<8x32xf32>
    %154 = vector.multi_reduction <add>, %153, %cst_68 [0] : vector<16x8x32xf32> to vector<8x32xf32>
    %155 = vector.broadcast %43 : vector<8x1xf32> to vector<8x32xf32>
    %156 = arith.mulf %154, %155 : vector<8x32xf32>
    %157 = vector.broadcast %35 : vector<8x1xf32> to vector<8x32xf32>
    %158 = arith.mulf %152, %157 : vector<8x32xf32>
    %159 = arith.mulf %152, %152 : vector<8x32xf32>
    %160 = arith.subf %156, %159 : vector<8x32xf32>
    %cst_69 = arith.constant 0.000000e+00 : f32
    %161 = vector.broadcast %cst_69 : f32 to vector<8x32xf32>
    %162 = arith.maximumf %160, %161 : vector<8x32xf32>
    %cst_70 = arith.constant 9.99999974E-6 : f32
    %163 = vector.broadcast %cst_70 : f32 to vector<8x32xf32>
    %164 = arith.addf %162, %163 : vector<8x32xf32>
    %165 = math.sqrt %164 : vector<8x32xf32>
    %166 = vector.broadcast %35 : vector<8x1xf32> to vector<8x32xf32>
    %167 = arith.mulf %165, %166 : vector<8x32xf32>
    %168 = tpu.concatenate %117, %121, %131, %140 in 1 : vector<16x32xf32>, vector<16x32xf32>, vector<16x32xf32>, vector<16x32xf32> -> vector<16x128xf32>
    %169 = tpu.concatenate %144, %148, %158, %167 in 1 : vector<8x32xf32>, vector<8x32xf32>, vector<8x32xf32>, vector<8x32xf32> -> vector<8x128xf32>
    %170 = vector.broadcast %51 : vector<16x1xf32> to vector<16x128xf32>
    %171 = arith.mulf %168, %170 : vector<16x128xf32>
    %172 = vector.broadcast %59 : vector<16x1xf32> to vector<16x128xf32>
    %173 = arith.mulf %168, %172 : vector<16x128xf32>
    %174 = tpu.concatenate %168, %171, %173, %79 in 1 : vector<16x128xf32>, vector<16x128xf32>, vector<16x128xf32>, vector<16x32xf32> -> vector<16x416xf32>
    %175 = vector.broadcast %53 : vector<8x1xf32> to vector<8x128xf32>
    %176 = arith.mulf %169, %175 : vector<8x128xf32>
    %177 = vector.broadcast %65 : vector<8x1xf32> to vector<8x128xf32>
    %178 = arith.mulf %169, %177 : vector<8x128xf32>
    %179 = tpu.concatenate %169, %176, %178, %80 in 1 : vector<8x128xf32>, vector<8x128xf32>, vector<8x128xf32>, vector<8x32xf32> -> vector<8x416xf32>
    %180 = tpu.concatenate %174, %179 in 0 : vector<16x416xf32>, vector<8x416xf32> -> vector<24x416xf32>
    %181 = arith.truncf %180 : vector<24x416xf32> to vector<24x416xbf16>
    %cst_71 = arith.constant dense<0.000000e+00> : vector<24x64xf32>
    %182 = tpu.matmul %181, %70, %cst_71 {dimension_numbers = #tpu.dot_dimension_numbers<[1], [0], [0], [1], [0, 0, 1, 1], [], []>} : vector<24x416xbf16>, vector<416x64xbf16>, vector<24x64xf32> -> vector<24x64xf32>
    %183 = vector.broadcast %71 : vector<1x64xf32> to vector<24x64xf32>
    %184 = arith.addf %182, %183 : vector<24x64xf32>
    %cst_72 = arith.constant 0.000000e+00 : f32
    %185 = vector.broadcast %cst_72 : f32 to vector<24x64xf32>
    %186 = arith.maximumf %184, %185 : vector<24x64xf32>
    %cst_73 = arith.constant dense<0.000000e+00> : vector<24x64xf32>
    %187 = tpu.matmul %186, %72, %cst_73 {dimension_numbers = #tpu.dot_dimension_numbers<[1], [0], [0], [1], [0, 0, 1, 1], [], []>} : vector<24x64xf32>, vector<64x64xf32>, vector<24x64xf32> -> vector<24x64xf32>
    %188 = arith.addf %187, %73 : vector<24x64xf32>
    %189 = vector.extract_strided_slice %188 {offsets = [0, 0], sizes = [16, 32], strides = [1, 1]} : vector<24x64xf32> to vector<16x32xf32>
    %190 = vector.extract_strided_slice %188 {offsets = [16, 32], sizes = [8, 32], strides = [1, 1]} : vector<24x64xf32> to vector<8x32xf32>
    %191 = arith.truncf %188 : vector<24x64xf32> to vector<24x64xbf16>
    %cst_74 = arith.constant dense<0.000000e+00> : vector<24x64xf32>
    %192 = tpu.matmul %191, %66, %cst_74 {dimension_numbers = #tpu.dot_dimension_numbers<[1], [0], [0], [1], [0, 0, 1, 1], [], []>} : vector<24x64xbf16>, vector<64x64xbf16>, vector<24x64xf32> -> vector<24x64xf32>
    %193 = vector.extract_strided_slice %192 {offsets = [0, 0], sizes = [16, 64], strides = [1, 1]} : vector<24x64xf32> to vector<16x64xf32>
    %194 = vector.broadcast %67 : vector<1x64xf32> to vector<16x64xf32>
    %195 = arith.addf %193, %194 : vector<16x64xf32>
    %196 = vector.extract_strided_slice %192 {offsets = [16, 0], sizes = [8, 64], strides = [1, 1]} : vector<24x64xf32> to vector<8x64xf32>
    %197 = vector.shape_cast %195 : vector<16x64xf32> to vector<16x1x64xf32>
    %198 = vector.shape_cast %196 : vector<8x64xf32> to vector<1x8x64xf32>
    %199 = vector.broadcast %197 : vector<16x1x64xf32> to vector<16x8x64xf32>
    %200 = vector.broadcast %198 : vector<1x8x64xf32> to vector<16x8x64xf32>
    %201 = arith.addf %199, %200 : vector<16x8x64xf32>
    %cst_75 = arith.constant 0.000000e+00 : f32
    %202 = vector.broadcast %cst_75 : f32 to vector<16x8x64xf32>
    %203 = arith.maximumf %201, %202 : vector<16x8x64xf32>
    %204 = vector.shape_cast %203 : vector<16x8x64xf32> to vector<128x64xf32>
    %205 = arith.truncf %204 : vector<128x64xf32> to vector<128x64xbf16>
    %cst_76 = arith.constant dense<0.000000e+00> : vector<128x64xf32>
    %206 = tpu.matmul %205, %68, %cst_76 {dimension_numbers = #tpu.dot_dimension_numbers<[1], [0], [0], [1], [0, 0, 1, 1], [], []>} : vector<128x64xbf16>, vector<64x64xbf16>, vector<128x64xf32> -> vector<128x64xf32>
    %207 = vector.broadcast %69 : vector<1x64xf32> to vector<128x64xf32>
    %208 = arith.addf %206, %207 : vector<128x64xf32>
    %cst_77 = arith.constant 0.000000e+00 : f32
    %209 = vector.broadcast %cst_77 : f32 to vector<128x64xf32>
    %210 = arith.maximumf %208, %209 : vector<128x64xf32>
    %211 = vector.shape_cast %210 : vector<128x64xf32> to vector<16x8x64xf32>
    %cst_78 = arith.constant -1.000000e+30 : f32
    %212 = vector.shape_cast %22 : vector<16x8x1xi1> to vector<16x8x1xi1>
    %213 = vector.broadcast %212 : vector<16x8x1xi1> to vector<16x8x64xi1>
    %214 = vector.broadcast %cst_78 : f32 to vector<16x8x64xf32>
    %215 = arith.select %213, %211, %214 : vector<16x8x64xi1>, vector<16x8x64xf32>
    %cst_79 = arith.constant 0.000000e+00 : f32
    %cst_80 = arith.constant -1.000000e+30 : f32
    %216 = arith.subf %cst_79, %cst_80 : f32
    %217 = vector.shape_cast %22 : vector<16x8x1xi1> to vector<16x8x1xi1>
    %218 = vector.broadcast %217 : vector<16x8x1xi1> to vector<16x8x64xi1>
    %219 = vector.broadcast %216 : f32 to vector<16x8x64xf32>
    %220 = arith.select %218, %211, %219 : vector<16x8x64xi1>, vector<16x8x64xf32>
    %221 = vector.broadcast %20 : vector<16x8x1xf32> to vector<16x8x64xf32>
    %222 = arith.mulf %211, %221 : vector<16x8x64xf32>
    %223 = arith.mulf %222, %211 : vector<16x8x64xf32>
    %224 = vector.extract_strided_slice %215 {offsets = [0, 0, 0], sizes = [16, 8, 32], strides = [1, 1, 1]} : vector<16x8x64xf32> to vector<16x8x32xf32>
    %cst_81 = arith.constant dense<0xFF800000> : vector<16x32xf32>
    %225 = vector.multi_reduction <maximumf>, %224, %cst_81 [1] : vector<16x8x32xf32> to vector<16x32xf32>
    %226 = vector.broadcast %31 : vector<16x1xf32> to vector<16x32xf32>
    %227 = arith.mulf %225, %226 : vector<16x32xf32>
    %228 = vector.extract_strided_slice %220 {offsets = [0, 0, 0], sizes = [16, 8, 32], strides = [1, 1, 1]} : vector<16x8x64xf32> to vector<16x8x32xf32>
    %cst_82 = arith.constant dense<0x7F800000> : vector<16x32xf32>
    %229 = vector.multi_reduction <minimumf>, %228, %cst_82 [1] : vector<16x8x32xf32> to vector<16x32xf32>
    %230 = vector.broadcast %31 : vector<16x1xf32> to vector<16x32xf32>
    %231 = arith.mulf %229, %230 : vector<16x32xf32>
    %232 = vector.extract_strided_slice %222 {offsets = [0, 0, 0], sizes = [16, 8, 32], strides = [1, 1, 1]} : vector<16x8x64xf32> to vector<16x8x32xf32>
    %cst_83 = arith.constant dense<0.000000e+00> : vector<16x32xf32>
    %233 = vector.multi_reduction <add>, %232, %cst_83 [1] : vector<16x8x32xf32> to vector<16x32xf32>
    %234 = vector.broadcast %39 : vector<16x1xf32> to vector<16x32xf32>
    %235 = arith.mulf %233, %234 : vector<16x32xf32>
    %236 = vector.extract_strided_slice %223 {offsets = [0, 0, 0], sizes = [16, 8, 32], strides = [1, 1, 1]} : vector<16x8x64xf32> to vector<16x8x32xf32>
    %cst_84 = arith.constant dense<0.000000e+00> : vector<16x32xf32>
    %237 = vector.multi_reduction <add>, %236, %cst_84 [1] : vector<16x8x32xf32> to vector<16x32xf32>
    %238 = vector.broadcast %39 : vector<16x1xf32> to vector<16x32xf32>
    %239 = arith.mulf %237, %238 : vector<16x32xf32>
    %240 = vector.broadcast %31 : vector<16x1xf32> to vector<16x32xf32>
    %241 = arith.mulf %235, %240 : vector<16x32xf32>
    %242 = arith.mulf %235, %235 : vector<16x32xf32>
    %243 = arith.subf %239, %242 : vector<16x32xf32>
    %cst_85 = arith.constant 0.000000e+00 : f32
    %244 = vector.broadcast %cst_85 : f32 to vector<16x32xf32>
    %245 = arith.maximumf %243, %244 : vector<16x32xf32>
    %cst_86 = arith.constant 9.99999974E-6 : f32
    %246 = vector.broadcast %cst_86 : f32 to vector<16x32xf32>
    %247 = arith.addf %245, %246 : vector<16x32xf32>
    %248 = math.sqrt %247 : vector<16x32xf32>
    %249 = vector.broadcast %31 : vector<16x1xf32> to vector<16x32xf32>
    %250 = arith.mulf %248, %249 : vector<16x32xf32>
    %251 = vector.extract_strided_slice %215 {offsets = [0, 0, 32], sizes = [16, 8, 32], strides = [1, 1, 1]} : vector<16x8x64xf32> to vector<16x8x32xf32>
    %cst_87 = arith.constant dense<0xFF800000> : vector<8x32xf32>
    %252 = vector.multi_reduction <maximumf>, %251, %cst_87 [0] : vector<16x8x32xf32> to vector<8x32xf32>
    %253 = vector.broadcast %35 : vector<8x1xf32> to vector<8x32xf32>
    %254 = arith.mulf %252, %253 : vector<8x32xf32>
    %255 = vector.extract_strided_slice %220 {offsets = [0, 0, 32], sizes = [16, 8, 32], strides = [1, 1, 1]} : vector<16x8x64xf32> to vector<16x8x32xf32>
    %cst_88 = arith.constant dense<0x7F800000> : vector<8x32xf32>
    %256 = vector.multi_reduction <minimumf>, %255, %cst_88 [0] : vector<16x8x32xf32> to vector<8x32xf32>
    %257 = vector.broadcast %35 : vector<8x1xf32> to vector<8x32xf32>
    %258 = arith.mulf %256, %257 : vector<8x32xf32>
    %259 = vector.extract_strided_slice %222 {offsets = [0, 0, 32], sizes = [16, 8, 32], strides = [1, 1, 1]} : vector<16x8x64xf32> to vector<16x8x32xf32>
    %cst_89 = arith.constant dense<0.000000e+00> : vector<8x32xf32>
    %260 = vector.multi_reduction <add>, %259, %cst_89 [0] : vector<16x8x32xf32> to vector<8x32xf32>
    %261 = vector.broadcast %43 : vector<8x1xf32> to vector<8x32xf32>
    %262 = arith.mulf %260, %261 : vector<8x32xf32>
    %263 = vector.extract_strided_slice %223 {offsets = [0, 0, 32], sizes = [16, 8, 32], strides = [1, 1, 1]} : vector<16x8x64xf32> to vector<16x8x32xf32>
    %cst_90 = arith.constant dense<0.000000e+00> : vector<8x32xf32>
    %264 = vector.multi_reduction <add>, %263, %cst_90 [0] : vector<16x8x32xf32> to vector<8x32xf32>
    %265 = vector.broadcast %43 : vector<8x1xf32> to vector<8x32xf32>
    %266 = arith.mulf %264, %265 : vector<8x32xf32>
    %267 = vector.broadcast %35 : vector<8x1xf32> to vector<8x32xf32>
    %268 = arith.mulf %262, %267 : vector<8x32xf32>
    %269 = arith.mulf %262, %262 : vector<8x32xf32>
    %270 = arith.subf %266, %269 : vector<8x32xf32>
    %cst_91 = arith.constant 0.000000e+00 : f32
    %271 = vector.broadcast %cst_91 : f32 to vector<8x32xf32>
    %272 = arith.maximumf %270, %271 : vector<8x32xf32>
    %cst_92 = arith.constant 9.99999974E-6 : f32
    %273 = vector.broadcast %cst_92 : f32 to vector<8x32xf32>
    %274 = arith.addf %272, %273 : vector<8x32xf32>
    %275 = math.sqrt %274 : vector<8x32xf32>
    %276 = vector.broadcast %35 : vector<8x1xf32> to vector<8x32xf32>
    %277 = arith.mulf %275, %276 : vector<8x32xf32>
    %278 = tpu.concatenate %227, %231, %241, %250 in 1 : vector<16x32xf32>, vector<16x32xf32>, vector<16x32xf32>, vector<16x32xf32> -> vector<16x128xf32>
    %279 = tpu.concatenate %254, %258, %268, %277 in 1 : vector<8x32xf32>, vector<8x32xf32>, vector<8x32xf32>, vector<8x32xf32> -> vector<8x128xf32>
    %280 = vector.broadcast %51 : vector<16x1xf32> to vector<16x128xf32>
    %281 = arith.mulf %278, %280 : vector<16x128xf32>
    %282 = vector.broadcast %59 : vector<16x1xf32> to vector<16x128xf32>
    %283 = arith.mulf %278, %282 : vector<16x128xf32>
    %284 = tpu.concatenate %278, %281, %283, %189 in 1 : vector<16x128xf32>, vector<16x128xf32>, vector<16x128xf32>, vector<16x32xf32> -> vector<16x416xf32>
    %285 = vector.broadcast %53 : vector<8x1xf32> to vector<8x128xf32>
    %286 = arith.mulf %279, %285 : vector<8x128xf32>
    %287 = vector.broadcast %65 : vector<8x1xf32> to vector<8x128xf32>
    %288 = arith.mulf %279, %287 : vector<8x128xf32>
    %289 = tpu.concatenate %279, %286, %288, %190 in 1 : vector<8x128xf32>, vector<8x128xf32>, vector<8x128xf32>, vector<8x32xf32> -> vector<8x416xf32>
    %290 = tpu.concatenate %284, %289 in 0 : vector<16x416xf32>, vector<8x416xf32> -> vector<24x416xf32>
    %291 = arith.truncf %290 : vector<24x416xf32> to vector<24x416xbf16>
    %cst_93 = arith.constant dense<0.000000e+00> : vector<24x64xf32>
    %292 = tpu.matmul %291, %70, %cst_93 {dimension_numbers = #tpu.dot_dimension_numbers<[1], [0], [0], [1], [0, 0, 1, 1], [], []>} : vector<24x416xbf16>, vector<416x64xbf16>, vector<24x64xf32> -> vector<24x64xf32>
    %293 = vector.broadcast %71 : vector<1x64xf32> to vector<24x64xf32>
    %294 = arith.addf %292, %293 : vector<24x64xf32>
    %cst_94 = arith.constant 0.000000e+00 : f32
    %295 = vector.broadcast %cst_94 : f32 to vector<24x64xf32>
    %296 = arith.maximumf %294, %295 : vector<24x64xf32>
    %cst_95 = arith.constant dense<0.000000e+00> : vector<24x64xf32>
    %297 = tpu.matmul %296, %72, %cst_95 {dimension_numbers = #tpu.dot_dimension_numbers<[1], [0], [0], [1], [0, 0, 1, 1], [], []>} : vector<24x64xf32>, vector<64x64xf32>, vector<24x64xf32> -> vector<24x64xf32>
    %298 = arith.addf %297, %73 : vector<24x64xf32>
    %299 = vector.extract_strided_slice %298 {offsets = [16, 32], sizes = [8, 32], strides = [1, 1]} : vector<24x64xf32> to vector<8x32xf32>
    %300 = arith.truncf %299 : vector<8x32xf32> to vector<8x32xbf16>
    %c0_96 = arith.constant 0 : index
    %c0_97 = arith.constant 0 : index
    %301 = vector.load %arg16[%c0_96, %c0_97] : memref<32x12xbf16, #tpu.memory_space<vmem>>, vector<32x12xbf16>
    %cst_98 = arith.constant dense<0.000000e+00> : vector<8x12xf32>
    %302 = tpu.matmul %300, %301, %cst_98 {dimension_numbers = #tpu.dot_dimension_numbers<[1], [0], [0], [1], [0, 0, 1, 1], [], []>} : vector<8x32xbf16>, vector<32x12xbf16>, vector<8x12xf32> -> vector<8x12xf32>
    %c0_99 = arith.constant 0 : index
    %c0_100 = arith.constant 0 : index
    %303 = vector.load %arg17[%c0_99, %c0_100] : memref<1x12xf32, #tpu.memory_space<vmem>>, vector<1x12xf32>
    %304 = vector.broadcast %303 : vector<1x12xf32> to vector<8x12xf32>
    %305 = arith.addf %302, %304 : vector<8x12xf32>
    %cst_101 = arith.constant 0.000000e+00 : f32
    %306 = vector.broadcast %cst_101 : f32 to vector<8x12xf32>
    %307 = arith.maximumf %305, %306 : vector<8x12xf32>
    %308 = arith.truncf %307 : vector<8x12xf32> to vector<8x12xbf16>
    %c0_102 = arith.constant 0 : index
    %c0_103 = arith.constant 0 : index
    %309 = vector.load %arg18[%c0_102, %c0_103] : memref<12x12xbf16, #tpu.memory_space<vmem>>, vector<12x12xbf16>
    %cst_104 = arith.constant dense<0.000000e+00> : vector<8x12xf32>
    %310 = tpu.matmul %308, %309, %cst_104 {dimension_numbers = #tpu.dot_dimension_numbers<[1], [0], [0], [1], [0, 0, 1, 1], [], []>} : vector<8x12xbf16>, vector<12x12xbf16>, vector<8x12xf32> -> vector<8x12xf32>
    %c0_105 = arith.constant 0 : index
    %c0_106 = arith.constant 0 : index
    %311 = vector.load %arg19[%c0_105, %c0_106] : memref<1x12xf32, #tpu.memory_space<vmem>>, vector<1x12xf32>
    %312 = vector.broadcast %311 : vector<1x12xf32> to vector<8x12xf32>
    %313 = arith.addf %310, %312 : vector<8x12xf32>
    %cst_107 = arith.constant 0.000000e+00 : f32
    %314 = vector.broadcast %cst_107 : f32 to vector<8x12xf32>
    %315 = arith.maximumf %313, %314 : vector<8x12xf32>
    %c0_108 = arith.constant 0 : index
    %c0_109 = arith.constant 0 : index
    %316 = vector.load %arg20[%c0_108, %c0_109] : memref<1x12xf32, #tpu.memory_space<vmem>>, vector<1x12xf32>
    %317 = vector.broadcast %316 : vector<1x12xf32> to vector<8x12xf32>
    %318 = arith.mulf %315, %317 : vector<8x12xf32>
    %cst_110 = arith.constant dense<0.000000e+00> : vector<8xf32>
    %319 = vector.multi_reduction <add>, %318, %cst_110 [1] : vector<8x12xf32> to vector<8xf32>
    %320 = vector.shape_cast %319 : vector<8xf32> to vector<8x1xf32>
    %c0_111 = arith.constant 0 : index
    %c0_112 = arith.constant 0 : index
    %321 = vector.load %arg21[%c0_111, %c0_112] : memref<1x1xf32, #tpu.memory_space<vmem>>, vector<1x1xf32>
    %322 = vector.broadcast %321 : vector<1x1xf32> to vector<8x1xf32>
    %323 = arith.addf %320, %322 : vector<8x1xf32>
    %324 = arith.negf %323 : vector<8x1xf32>
    %325 = math.exp %324 : vector<8x1xf32>
    %cst_113 = arith.constant 1.000000e+00 : f32
    %326 = vector.broadcast %cst_113 : f32 to vector<8x1xf32>
    %327 = arith.addf %326, %325 : vector<8x1xf32>
    %328 = arith.divf %326, %327 : vector<8x1xf32>
    %c0_114 = arith.constant 0 : index
    %c0_115 = arith.constant 0 : index
    %c0_116 = arith.constant 0 : index
    %329 = vector.load %arg22[%c0_114, %c0_115, %c0_116] : memref<1x8x1xf32, #tpu.memory_space<vmem>>, vector<1x8x1xf32>
    %330 = vector.shape_cast %329 : vector<1x8x1xf32> to vector<8x1xf32>
    %331 = vector.shape_cast %328 : vector<8x1xf32> to vector<1x8x1xf32>
    tpu.vector_store %arg22[%c0_114, %c0_115, %c0_116], %331 {strides = array<i32>} : memref<1x8x1xf32, #tpu.memory_space<vmem>>, vector<1x8x1xf32>,
    return
  }
  func.func @transform_0(%arg0: i32) -> (i32, i32, i32) {
    %c0_i32 = arith.constant 0 : i32
    %c0_i32_0 = arith.constant 0 : i32
    %c0_i32_1 = arith.constant 0 : i32
    return %arg0, %c0_i32, %c0_i32_0 : i32, i32, i32
  }
  func.func @transform_1(%arg0: i32) -> (i32, i32, i32) {
    %c0_i32 = arith.constant 0 : i32
    %c0_i32_0 = arith.constant 0 : i32
    %c0_i32_1 = arith.constant 0 : i32
    return %arg0, %c0_i32, %c0_i32_0 : i32, i32, i32
  }
  func.func @transform_2(%arg0: i32) -> (i32, i32, i32) {
    %c0_i32 = arith.constant 0 : i32
    %c0_i32_0 = arith.constant 0 : i32
    %c0_i32_1 = arith.constant 0 : i32
    return %arg0, %c0_i32, %c0_i32_0 : i32, i32, i32
  }
  func.func @transform_3(%arg0: i32) -> (i32, i32) {
    %c0_i32 = arith.constant 0 : i32
    %c0_i32_0 = arith.constant 0 : i32
    %c0_i32_1 = arith.constant 0 : i32
    return %c0_i32, %c0_i32_0 : i32, i32
  }
  func.func @transform_4(%arg0: i32) -> (i32, i32) {
    %c0_i32 = arith.constant 0 : i32
    %c0_i32_0 = arith.constant 0 : i32
    %c0_i32_1 = arith.constant 0 : i32
    return %c0_i32, %c0_i32_0 : i32, i32
  }
  func.func @transform_5(%arg0: i32) -> (i32, i32) {
    %c0_i32 = arith.constant 0 : i32
    %c0_i32_0 = arith.constant 0 : i32
    %c0_i32_1 = arith.constant 0 : i32
    return %c0_i32, %c0_i32_0 : i32, i32
  }
  func.func @transform_6(%arg0: i32) -> (i32, i32) {
    %c0_i32 = arith.constant 0 : i32
    %c0_i32_0 = arith.constant 0 : i32
    %c0_i32_1 = arith.constant 0 : i32
    return %c0_i32, %c0_i32_0 : i32, i32
  }
  func.func @transform_7(%arg0: i32) -> (i32, i32) {
    %c0_i32 = arith.constant 0 : i32
    %c0_i32_0 = arith.constant 0 : i32
    %c0_i32_1 = arith.constant 0 : i32
    return %c0_i32, %c0_i32_0 : i32, i32
  }
  func.func @transform_8(%arg0: i32) -> (i32, i32) {
    %c0_i32 = arith.constant 0 : i32
    %c0_i32_0 = arith.constant 0 : i32
    %c0_i32_1 = arith.constant 0 : i32
    return %c0_i32, %c0_i32_0 : i32, i32
  }
  func.func @transform_9(%arg0: i32) -> (i32, i32) {
    %c0_i32 = arith.constant 0 : i32
    %c0_i32_0 = arith.constant 0 : i32
    %c0_i32_1 = arith.constant 0 : i32
    return %c0_i32, %c0_i32_0 : i32, i32
  }
  func.func @transform_10(%arg0: i32) -> (i32, i32) {
    %c0_i32 = arith.constant 0 : i32
    %c0_i32_0 = arith.constant 0 : i32
    %c0_i32_1 = arith.constant 0 : i32
    return %c0_i32, %c0_i32_0 : i32, i32
  }
  func.func @transform_11(%arg0: i32) -> (i32, i32) {
    %c0_i32 = arith.constant 0 : i32
    %c0_i32_0 = arith.constant 0 : i32
    %c0_i32_1 = arith.constant 0 : i32
    return %c0_i32, %c0_i32_0 : i32, i32
  }
  func.func @transform_12(%arg0: i32) -> (i32, i32) {
    %c0_i32 = arith.constant 0 : i32
    %c0_i32_0 = arith.constant 0 : i32
    %c0_i32_1 = arith.constant 0 : i32
    return %c0_i32, %c0_i32_0 : i32, i32
  }
  func.func @transform_13(%arg0: i32) -> (i32, i32) {
    %c0_i32 = arith.constant 0 : i32
    %c0_i32_0 = arith.constant 0 : i32
    %c0_i32_1 = arith.constant 0 : i32
    return %c0_i32, %c0_i32_0 : i32, i32
  }
  func.func @transform_14(%arg0: i32) -> (i32, i32) {
    %c0_i32 = arith.constant 0 : i32
    %c0_i32_0 = arith.constant 0 : i32
    %c0_i32_1 = arith.constant 0 : i32
    return %c0_i32, %c0_i32_0 : i32, i32
  }
  func.func @transform_15(%arg0: i32) -> (i32, i32) {
    %c0_i32 = arith.constant 0 : i32
    %c0_i32_0 = arith.constant 0 : i32
    %c0_i32_1 = arith.constant 0 : i32
    return %c0_i32, %c0_i32_0 : i32, i32
  }
  func.func @transform_16(%arg0: i32) -> (i32, i32) {
    %c0_i32 = arith.constant 0 : i32
    %c0_i32_0 = arith.constant 0 : i32
    %c0_i32_1 = arith.constant 0 : i32
    return %c0_i32, %c0_i32_0 : i32, i32
  }
  func.func @transform_17(%arg0: i32) -> (i32, i32) {
    %c0_i32 = arith.constant 0 : i32
    %c0_i32_0 = arith.constant 0 : i32
    %c0_i32_1 = arith.constant 0 : i32
    return %c0_i32, %c0_i32_0 : i32, i32
  }
  func.func @transform_18(%arg0: i32) -> (i32, i32) {
    %c0_i32 = arith.constant 0 : i32
    %c0_i32_0 = arith.constant 0 : i32
    %c0_i32_1 = arith.constant 0 : i32
    return %c0_i32, %c0_i32_0 : i32, i32
  }
  func.func @transform_19(%arg0: i32) -> (i32, i32) {
    %c0_i32 = arith.constant 0 : i32
    %c0_i32_0 = arith.constant 0 : i32
    %c0_i32_1 = arith.constant 0 : i32
    return %c0_i32, %c0_i32_0 : i32, i32
  }
  func.func @transform_20(%arg0: i32) -> (i32, i32) {
    %c0_i32 = arith.constant 0 : i32
    %c0_i32_0 = arith.constant 0 : i32
    %c0_i32_1 = arith.constant 0 : i32
    return %c0_i32, %c0_i32_0 : i32, i32
  }
  func.func @transform_21(%arg0: i32) -> (i32, i32, i32) {
    %c0_i32 = arith.constant 0 : i32
    %c0_i32_0 = arith.constant 0 : i32
    %c0_i32_1 = arith.constant 0 : i32
    return %arg0, %c0_i32, %c0_i32_0 : i32, i32, i32
  }
}

</mosaic_0001>

<bundles_post_ra>
// kernel: gnn_forward.1
= control target key start
LH: loop header
LB: loop body
LE: loop exit
PB: predicated region body
PF: predicated region fallthrough
CT: control target
= control target key end

     0   :  { %s5847_s26 = smov 0   ;;  %s8890_s0 = inlined_call_operand.vmem [shape: f32[4,16,1], index: 0, kind: input, shape index: {}]   ;;  %s8891_s1 = inlined_call_operand.vmem [shape: f32[4,8,1], index: 1, kind: input, shape index: {}]   ;;  %s8892_s2 = inlined_call_operand.vmem [shape: f32[4,16,8], index: 2, kind: input, shape index: {}]   ;;  %s8893_s3 = inlined_call_operand.vmem [shape: f32[1,32], index: 3, kind: input, shape index: {}]   ;;  %s8894_s4 = inlined_call_operand.vmem [shape: f32[1,32], index: 4, kind: input, shape index: {}]   ;;  %s8895_s5 = inlined_call_operand.vmem [shape: f32[1,32], index: 5, kind: input, shape index: {}]   ;;  %s8896_s6 = inlined_call_operand.vmem [shape: f32[1,32], index: 6, kind: input, shape index: {}]   ;;  %s8897_s7 = inlined_call_operand.vmem [shape: bf16[64,64], index: 7, kind: input, shape index: {}]   ;;  %s8898_s8 = inlined_call_operand.vmem [shape: f32[1,64], index: 8, kind: input, shape index: {}]   ;;  %s8899_s9 = inlined_call_operand.vmem [shape: bf16[64,64], index: 9, kind: input, shape index: {}]   ;;  %s8900_s10 = inlined_call_operand.vmem [shape: f32[1,64], index: 10, kind: input, shape index: {}]   ;;  %s8901_s11 = inlined_call_operand.vmem [shape: bf16[416,64], index: 11, kind: input, shape index: {}]   ;;  %s8902_s12 = inlined_call_operand.vmem [shape: f32[1,64], index: 12, kind: input, shape index: {}]   ;;  %s8903_s13 = inlined_call_operand.vmem [shape: f32[64,64], index: 13, kind: input, shape index: {}]   ;;  %s8904_s14 = inlined_call_operand.vmem [shape: f32[24,64], index: 14, kind: input, shape index: {}]   ;;  %s8905_s15 = inlined_call_operand.vmem [shape: bf16[32,12], index: 15, kind: input, shape index: {}]   ;;  %s8906_s16 = inlined_call_operand.vmem [shape: f32[1,12], index: 16, kind: input, shape index: {}]   ;;  %s8907_s17 = inlined_call_operand.vmem [shape: bf16[12,12], index: 17, kind: input, shape index: {}]   ;;  %s8908_s18 = inlined_call_operand.vmem [shape: f32[1,12], index: 18, kind: input, shape index: {}]   ;;  %s8909_s19 = inlined_call_operand.vmem [shape: f32[1,12], index: 19, kind: input, shape index: {}]   ;;  %s8910_s20 = inlined_call_operand.<no memory space> [shape: f32[1,1], index: 20, kind: input, shape index: {}]   ;;  %s8911_s21 = inlined_call_operand.vmem [shape: f32[4,8,1], index: 21, kind: output, shape index: {}]  }
   0x1   :  { %9133 = sst [smem:[#allocation91_spill]] %s8890_s0  ;;  %v26_v0 = vstv %s8910_s20 }
   0x2   :  { %9134 = sst [smem:[#allocation92_spill]] %s8891_s1  ;;  %27 = vst [vmem:[#allocation2] sm:$0x1] %v26_v0 }
   0x3   :  { %9135 = sst [smem:[#allocation93_spill]] %s8892_s2 }
   0x4   :  { %9136 = sst [smem:[#allocation94_spill]] %s8893_s3 }
   0x5   :  { %9137 = sst [smem:[#allocation95_spill]] %s8894_s4 }
   0x6   :  { %9138 = sst [smem:[#allocation96_spill]] %s8895_s5 }
   0x7 LB: > { %s5174_s27 = sadd.s32 4294967295, %s5724_s26   ;;  %p5178_p0 = scmp.ge.s32.totalorder %s5724_s26, 1  ;;  %s5724_s26 = sphi %s5847_s26, %s33_s26  }
   0x8   : > { %p608_p1 = scmp.lt.s32.totalorder %s5724_s26, 5 }
   0xa   : > { %p609_p2 = pnand %p5178_p0, %p608_p1 }
   0xc   : > { %612 = sbr.rel (%p609_p2) target bundleno = 3582 (0xdfe), region = 104 }
  0x13   : > { %p676_p3 = scmp.lt.s32.totalorder %s5174_s27, 3  ;;  %v8914_v1 = vmov 0   ;;  %vm877_vm0 = vcmask 64512   ;;  %s9139_s0 = sld [smem:[#allocation92_spill]]  ;;  %v749_v16 = vlaneseq  ;;  %v5570_v23 = vld [vmem:[%s8897_s7] sm:$0xff]   ;;  %v5571_v25 = vld [vmem:[%s8897_s7 + $0x8] sm:$0xff]  }
  0x14   : > { %5568 = vset.pattern.permute.xlu0 %v8914_v1  ;;  %5569 = vset.pattern.permute.xlu1 %v8914_v1  ;;  %s9140_s22 = sld [smem:[#allocation91_spill]]  ;;  %s9141_s2 = sld [smem:[#allocation93_spill]]  ;;  %v5572_v26 = vld [vmem:[%s8897_s7 + $0x10] sm:$0xff]   ;;  %v5573_v27 = vld [vmem:[%s8897_s7 + $0x18] sm:$0xff]   ;;  %v5188_v30 = vld [vmem:[%s8896_s6] ss:$0 sm:$0xff] }
  0x15   : > { %s9722_s27 = smov (!%p676_p3, %s5174_s27), 3  ;;  %v5878_v17 = vshrl.u32 %v749_v16, 7  ;;  %5392 = vmatprep.subr.bf16.mxu0 %v5570_v23  ;;  %s9142_s24 = sld [smem:[#allocation96_spill]]  ;;  %vm9043_vm1 = vcmask 261120   ;;  %vm9042_vm2 = vcmask 523264   ;;  %v8912_v45 = vmov 0.0  }
  0x16   : > { %s5181_s20 = sshll.u32 %s9722_s27, 3  ;;  %s5271_s3 = sshll.u32 %s9722_s27, 4  ;;  %5393 = vmatpush3.bf16.msra.mxu0 %v5570_v23  ;;  %vm2411_vm8 = vcmask 523520  }
  0x17   : > { %v772_v18 = vsub.s32 3, %v5878_v17  ;;  %v793_v20 = vsub.s32 6, %v5878_v17  ;;  %v800_v22 = vsub.s32 7, %v5878_v17  ;;  %5394 = vmatprep.subr.bf16.mxu0 %v5571_v25  ;;  %s9144_s30 = sld [smem:[#allocation95_spill]]  ;;  %s5727_s5 = smov 32   ;;  %v5923_v47 = vsub.s32 0, %v5878_v17 }
  0x18   : > { %v758_v49 = vsub.s32 1, %v5878_v17  ;;  %v765_v52 = vsub.s32 2, %v5878_v17  ;;  %v779_v57 = vsub.s32 4, %v5878_v17  ;;  %v786_v60 = vsub.s32 5, %v5878_v17  ;;  %s5731_s1 = smov 96  }
  0x19   : > { %s684_s4 = scalar_lea.vmem %s9139_s0, %s5181_s20  ;;  %9145 = vst [vmem:[#allocation3_spill] sm:$0xff] %v5923_v47 }
  0x1a   : > { %v725_v2 = vld [vmem:[%s684_s4] sm:$0xff]  ;;  %s680_s23 = scalar_lea.vmem %s9140_s22, %s5271_s3  ;;  %s689_s25 = scalar_lea.vmem %s9141_s2, %s5271_s3  ;;  %5395 = vmatpush3.bf16.msra.mxu0 %v5571_v25 }
  0x1b   : > { %729 = vperm.xlu0 %5568, %v725_v2   ;;  %v696_v3 = vld [vmem:[%s680_s23 + $0x8] sm:$0xff]  ;;  %v5872_v4 = vld [vmem:[%s689_s25] sm:$0xff]  ;;  %5396 = vmatprep.subr.bf16.mxu0 %v5572_v26  ;;  %s9143_s3 = sld [smem:[#allocation94_spill]]  ;;  %s5730_s22 = smov 64  }
  0x1c   : > { %v5874_v5 = vld [vmem:[%s689_s25 + $0x8] sm:$0xff]  ;;  %705 = vperm.xlu1 %5569, %v696_v3   ;;  %v695_v6 = vld [vmem:[%s680_s23] sm:$0xff]  ;;  %v878_v7 = vsel %vm877_vm0, %v5872_v4, 0.0  ;;  %v752_v48 = vrot.slane %v5872_v4, %v5923_v47  ;;  %v759_v50 = vrot.slane %v5872_v4, %v758_v49  ;;  %v766_v53 = vrot.slane %v5872_v4, %v765_v52  ;;  %s693_s2 = scalar_lea.vmem %s8911_s21, %s5181_s20 }
  0x1d   : > { %v881_v8 = vsel %vm877_vm0, %v5874_v5, 0.0  ;;  %v829_v19 = vrot.slane %v5874_v5, %v772_v18  ;;  %v850_v21 = vrot.slane %v5874_v5, %v793_v20  ;;  %v857_v24 = vrot.slane %v5874_v5, %v800_v22  ;;  %v5187_v28 = vld [vmem:[%s9142_s24] ss:$0 sm:$0xff] }
  0x1e   : > { %v884_v9 = vadd.f32 %v881_v8, %v878_v7  ;;  %5397 = vmatpush3.bf16.msra.mxu0 %v5572_v26  ;;  %v5186_v33 = vld [vmem:[%s9144_s30] ss:$0 sm:$0xff]  ;;  %v815_v51 = vrot.slane %v5874_v5, %v758_v49  ;;  %v822_v54 = vrot.slane %v5874_v5, %v765_v52  ;;  %v773_v55 = vrot.slane %v5872_v4, %v772_v18 }
  0x1f   : > { %700 = vperm.xlu0 %5568, %v695_v6   ;;  %5398 = vmatprep.subr.bf16.mxu0 %v5573_v27  ;;  %v808_v56 = vrot.slane %v5874_v5, %v5923_v47  ;;  %v780_v58 = vrot.slane %v5872_v4, %v779_v57  ;;  %v836_v59 = vrot.slane %v5874_v5, %v779_v57 }
  0x20   : > { %v885_v10 = vrot.slane %v884_v9, 4  ;;  %v787_v62 = vrot.slane %v5872_v4, %v786_v60  ;;  %v843_v0 = vrot.slane %v5874_v5, %v786_v60  ;;  %v794_v2 = vrot.slane %v5872_v4, %v793_v20 }
  0x21   : > { %v5185_v29 = vld [vmem:[%s9143_s3] ss:$0 sm:$0xff]  ;;  %v801_v3 = vrot.slane %v5872_v4, %v800_v22 }
  0x22   : > { %v886_v11 = vadd.f32 %v885_v10, %v884_v9  ;;  %5399 = vmatpush3.bf16.msra.mxu0 %v5573_v27  ;;  %v5574_v4 = vld [vmem:[%s8899_s9] sm:$0xff]  }
  0x23   : > { %5404 = vmatprep.subr.bf16.mxu1 %v5574_v4 }
  0x24   : > { %v887_v12 = vrot.slane %v886_v11, 2  ;;  %5405 = vmatpush3.bf16.msra.mxu1 %v5574_v4 }
  0x26   : > { %v888_v13 = vadd.f32 %v887_v12, %v886_v11  ;;  %v5575_v12 = vld [vmem:[%s8899_s9 + $0x8] sm:$0xff]  }
  0x27   : > { %5406 = vmatprep.subr.bf16.mxu1 %v5575_v12 }
  0x28   : > { %v889_v14 = vrot.slane %v888_v13, 1  ;;  %5407 = vmatpush3.bf16.msra.mxu1 %v5575_v12 }
  0x2a   : > { %v890_v15 = vadd.f32 %v889_v14, %v888_v13  ;;  %v5576_v13 = vld [vmem:[%s8899_s9 + $0x10] sm:$0xff]   ;;  %v5577_v14 = vld [vmem:[%s8899_s9 + $0x18] sm:$0xff]  }
  0x2b   : > { %5408 = vmatprep.subr.bf16.mxu1 %v5576_v13 }
  0x2c   : > { %5409 = vmatpush3.bf16.msra.mxu1 %v5576_v13 }
  0x2d   : > { %5410 = vmatprep.subr.bf16.mxu1 %v5577_v14 }
  0x30   : > { %5411 = vmatpush3.bf16.msra.mxu1 %v5577_v14 }
  0x31   : > { %3030 = vmatprep.subr.bf16.mxu1 %v8914_v1 }
  0x3d   : > { %891 = vxpose.xlu0.b32.start.end [1/1] (short) (narrow) %v890_v15, 8  ;;  %v5729_v15 = vmov 1966171168  }
  0x3e   : > { %v1148_v16 = vunpack.c.l.s4 %v5729_v15 }
  0x40   : > { %v1149_v18 = vunpack.c.0.s8 %v1148_v16 }
  0x42   : > { %v5974_v20 = vsub.s32 %v1149_v18, %v5878_v17 }
  0x44   : > { %9148 = vst [vmem:[#allocation6_spill] sm:$0xff] %v5974_v20 }
  0x6a   : > { %882 = vadd.xlane.f32.xlu0 %v881_v8 }
  0x80   : > { %831 = vbcast.lane.b32.xlu0 %v829_v19, 256  ;;  %v5198_v19 = vld [vmem:[%s8898_s8] ss:$0 sm:$0xff] }
  0x84   : > { %852 = vbcast.lane.b32.xlu0 %v850_v21, 256 }
  0x88   : > { %859 = vbcast.lane.b32.xlu0 %v857_v24, 256 }
  0x9a   : > { %v730_v31 = vpop.permute.xlu0 %729 }
  0x9b   : > { %v738_v32 = vmul.f32 %v5187_v28, %v730_v31  ;;  %v706_v34 = vpop.permute.xlu1 %705 }
  0x9c   : > { %v715_v35 = vmul.f32 %v5185_v29, %v706_v34 }
  0x9d   : > { %v746_v36 = vadd.f32 %v5188_v30, %v738_v32 }
  0x9e   : > { %v724_v37 = vadd.f32 %v5186_v33, %v715_v35  ;;  %v701_v38 = vpop.permute.xlu0 %700 }
  0x9f   : > { %v714_v39 = vmul.f32 %v5185_v29, %v701_v38  ;;  %1051 = vrot.lane.b32.xlu1 %v746_v36, %s5727_s5 }
  0xa0   : > { %v1049_v41 = vsel %vm9043_vm1, %v724_v37, 0.0 }
  0xa1   : > { %v723_v40 = vadd.f32 %v5186_v33, %v714_v39 }
  0xa3   : > { %v1048_v42 = vsel %vm9043_vm1, %v723_v40, 0.0 }
  0xa4   : > { %v5917_v43 = vpack.c.bf16 %v1049_v41, %v1048_v42 }
  0xa6   : > { %5400 = vmatprep.mubr.msk.bf16.mxu0 %vm9042_vm2, %v5917_v43 }
  0xbd   : > { %v907_v44 = vpop.trf.xlu0 }
  0xbe   : > { %vm929_vm3 = vcmp.gt.f32.partialorder %v907_v44, 0.0  ;;  %v947_v61 = vadd.f32 1.0, %v907_v44  ;;  %v938_v63 = vmax.f32 %v907_v44, 1.0 }
  0xbf   : > { %v5191_v46 = vsel %vm929_vm3, 1.0, %v8912_v45 }
  0xc0   : > { %2445 = vperm.xlu0 %5568, %v5191_v46   ;;  %5607 = vlog2.f32 %v947_v61 }
  0xc1   : > { %5609 = vrcp.f32 %v938_v63 }
  0xc3   : > { %879 = vadd.xlane.f32.xlu1 %v878_v7 }
  0xca   : > { %v5608_v6 = vpop.eup %5607 }
  0xcb   : > { %v5948_v7 = vmul.f32 0.6931472, %v5608_v6  ;;  %v5610_v8 = vpop.eup %5609 }
  0xcd   : > { %9146 = vst [vmem:[#allocation4_spill] sm:$0xff] %v5948_v7  ;;  %v952_v9 = vmul.f32 0.5, %v5948_v7 }
  0xd4   : > { %754 = vbcast.lane.b32.xlu1 %v752_v48, 256 }
  0xd8   : > { %761 = vbcast.lane.b32.xlu1 %v759_v50, 256 }
  0xdc   : > { %817 = vbcast.lane.b32.xlu1 %v815_v51, 256 }
  0xe0   : > { %768 = vbcast.lane.b32.xlu1 %v766_v53, 256 }
  0xe4   : > { %824 = vbcast.lane.b32.xlu1 %v822_v54, 256 }
  0xe8   : > { %775 = vbcast.lane.b32.xlu1 %v773_v55, 256 }
  0xec   : > { %810 = vbcast.lane.b32.xlu1 %v808_v56, 256 }
  0xf0   : > { %782 = vbcast.lane.b32.xlu1 %v780_v58, 256 }
  0xf4   : > { %838 = vbcast.lane.b32.xlu1 %v836_v59, 256 }
  0xf8   : > { %789 = vbcast.lane.b32.xlu1 %v787_v62, 256 }
  0xfc   : > { %845 = vbcast.lane.b32.xlu1 %v843_v0, 256 }
 0x100   : > { %796 = vbcast.lane.b32.xlu1 %v794_v2, 256 }
 0x104   : > { %803 = vbcast.lane.b32.xlu1 %v801_v3, 256 }
 0x108   : > { %2514 = vperm.xlu1 %5569, %v5610_v8  }
 0x10c   : > { %2794 = vperm.xlu1 %5569, %v952_v9  }
 0x111   : > { %v1052_v5 = vpop.permute.xlu1 %1051 }
 0x112   : > { %v5952_v10 = vsel %vm9043_vm1, 0.0, %v1052_v5 }
 0x113   : > { %9147 = vst [vmem:[#allocation5_spill] sm:$0xff] %v5952_v10  ;;  %v1056_v11 = vpack.c.bf16 %v5952_v10, %v5952_v10 }
 0x115   : > { %5401 = vmatmul.mubr.msk.bf16.vlgmr.msra.gmra.mrb[0].mxu0 %vm9042_vm2, %v1056_v11 }
 0x1e8   : > { %v5976_v21 = vpop.f32.mrb[0].mxu0 }
 0x1e9   : > { %v1122_v22 = vpop.f32.mrb[1].mxu0 }
 0x1ea   : > { %v1142_v23 = vadd.f32 %v5198_v19, %v1122_v22  ;;  %v5403_v24 = vpop.f32.mrb[2].mxu0 }
 0x1eb   : > { %v1125_v25 = vpop.f32.mrb[3].mxu0 }
 0x1ec   : > { %v1146_v26 = vcombine.high %v1142_v23, %v1142_v23  ;;  %v1153_v27 = vrot.slane %v1142_v23, %v5974_v20  ;;  %v1143_v28 = vadd.f32 %v5198_v19, %v1125_v25 }
 0x1ee   : > { %v1160_v29 = vrot.slane %v1146_v26, %v5974_v20  ;;  %v1161_v30 = vcombine.high %v1153_v27, %v1153_v27  ;;  %v1169_v31 = vrot.slane %v1153_v27, %v5974_v20  ;;  %v1195_v32 = vcombine.high %v1143_v28, %v1143_v28 }
 0x1ef   : > { %v1202_v33 = vrot.slane %v1143_v28, %v5974_v20 }
 0x1f0   : > { %v1162_v17 = vcombine.high %v1160_v29, %v1160_v29  ;;  %v1176_v34 = vrot.slane %v1160_v29, %v5974_v20  ;;  %v1183_v35 = vrot.slane %v1161_v30, %v5974_v20  ;;  %v1191_v36 = vcombine.high %v1169_v31, %v1169_v31 }
 0x1f1   : > { %v1209_v37 = vrot.slane %v1195_v32, %v5974_v20  ;;  %v1210_v38 = vcombine.high %v1202_v33, %v1202_v33  ;;  %v1218_v39 = vrot.slane %v1202_v33, %v5974_v20  ;;  %v1247_v40 = vrot.slane %v1169_v31, %v5923_v47 }
 0x1f2   : > { %v1190_v41 = vrot.slane %v1162_v17, %v5974_v20  ;;  %v1192_v42 = vcombine.high %v1176_v34, %v1176_v34  ;;  %v1193_v44 = vcombine.high %v1183_v35, %v1183_v35  ;;  %v1255_v46 = vrot.slane %v1191_v36, %v5923_v47 }
 0x1f3   : > { %v1263_v48 = vrot.slane %v1176_v34, %v5923_v47  ;;  %v1211_v49 = vcombine.high %v1209_v37, %v1209_v37  ;;  %v1225_v50 = vrot.slane %v1209_v37, %v5974_v20  ;;  %v1232_v51 = vrot.slane %v1210_v38, %v5974_v20 }
 0x1f4   : > { %v1194_v52 = vcombine.high %v1190_v41, %v1190_v41  ;;  %v1259_v53 = vrot.slane %v1193_v44, %v5923_v47  ;;  %v1267_v54 = vrot.slane %v1190_v41, %v5923_v47  ;;  %v1271_v55 = vrot.slane %v1192_v42, %v5923_v47 }
 0x1f5   : > { %v1239_v56 = vrot.slane %v1211_v49, %v5974_v20  ;;  %v1240_v57 = vcombine.high %v1218_v39, %v1218_v39  ;;  %v1241_v58 = vcombine.high %v1225_v50, %v1225_v50  ;;  %v1242_v59 = vcombine.high %v1232_v51, %v1232_v51 }
 0x1f6   : > { %v1279_v60 = vrot.slane %v1218_v39, %v5923_v47  ;;  %v1283_v61 = vrot.slane %v1232_v51, %v5923_v47  ;;  %v1295_v62 = vrot.slane %v1225_v50, %v5923_v47  ;;  %v1251_v63 = vrot.slane %v1183_v35, %v5923_v47 }
 0x1f7   : > { %v1243_v0 = vcombine.high %v1239_v56, %v1239_v56  ;;  %v1287_v2 = vrot.slane %v1240_v57, %v5923_v47  ;;  %v1291_v3 = vrot.slane %v1242_v59, %v5923_v47  ;;  %v1299_v6 = vrot.slane %v1239_v56, %v5923_v47 }
 0x1f8   : > { %v1303_v8 = vrot.slane %v1241_v58, %v5923_v47  ;;  %v1332_v9 = vadd.f32 %v5976_v21, %v1279_v60  ;;  %v1324_v5 = vadd.f32 %v5976_v21, %v1247_v40  ;;  %v1325_v11 = vadd.f32 %v5976_v21, %v1251_v63 }
 0x1f9   : > { %v1326_v4 = vadd.f32 %v5976_v21, %v1255_v46  ;;  %v1327_v12 = vadd.f32 %v5976_v21, %v1259_v53  ;;  %v1328_v13 = vadd.f32 %v5976_v21, %v1263_v48  ;;  %v1329_v14 = vadd.f32 %v5976_v21, %v1267_v54 }
 0x1fa   : > { %v1348_v15 = vmax.f32 %v1332_v9, 0.0  ;;  %v1340_v16 = vmax.f32 %v1324_v5, 0.0  ;;  %v1341_v18 = vmax.f32 %v1325_v11, 0.0  ;;  %v1275_v19 = vrot.slane %v1194_v52, %v5923_v47 }
 0x1fb   : > { %v1342_v22 = vmax.f32 %v1326_v4, 0.0  ;;  %v1343_v23 = vmax.f32 %v1327_v12, 0.0  ;;  %v1344_v24 = vmax.f32 %v1328_v13, 0.0  ;;  %v1345_v25 = vmax.f32 %v1329_v14, 0.0 }
 0x1fc   : > { %v1356_v26 = vpack.c.bf16 %v1341_v18, %v1340_v16  ;;  %v1330_v27 = vadd.f32 %v5976_v21, %v1271_v55  ;;  %v1331_v28 = vadd.f32 %v5976_v21, %v1275_v19  ;;  %v1333_v29 = vadd.f32 %v5976_v21, %v1283_v61  ;;  %v6032_v55 = vpop.xlane.xlu1 %879  ;;  %v6045_v61 = vpop.xlane.xlu0 %882 }
 0x1fd   : > { %v1357_v30 = vpack.c.bf16 %v1343_v23, %v1342_v22  ;;  %v1358_v31 = vpack.c.bf16 %v1345_v25, %v1344_v24  ;;  %v1334_v32 = vadd.f32 %v5976_v21, %v1287_v2  ;;  %v1335_v33 = vadd.f32 %v5976_v21, %v1291_v3  ;;  %9149 = vst [vmem:[#allocation7_spill] sm:$0xff] %v6032_v55 }
 0x1fe   : > { %5412 = vmatprep.mubr.msk.bf16.mxu1 %vm9042_vm2, %v1356_v26  ;;  %v1346_v17 = vmax.f32 %v1330_v27, 0.0  ;;  %v1347_v34 = vmax.f32 %v1331_v28, 0.0  ;;  %v1349_v35 = vmax.f32 %v1333_v29, 0.0  ;;  %v1336_v36 = vadd.f32 %v5976_v21, %v1295_v62  ;;  %9155 = vst [vmem:[#allocation13_spill] sm:$0xff] %v6045_v61 }
 0x1ff   : > { %5413 = vmatmul.mubr.msk.bf16.vlgmr.msra.gmra.mrb[0].mxu1 %vm9042_vm2, %v1357_v30  ;;  %v1350_v37 = vmax.f32 %v1334_v32, 0.0  ;;  %v1351_v38 = vmax.f32 %v1335_v33, 0.0  ;;  %v1337_v39 = vadd.f32 %v5976_v21, %v1299_v6  ;;  %v1307_v40 = vrot.slane %v1243_v0, %v5923_v47 }
 0x200   : > { %5416 = vmatprep.mubr.msk.bf16.mxu1 %vm9042_vm2, %v1358_v31  ;;  %v1359_v41 = vpack.c.bf16 %v1347_v34, %v1346_v17  ;;  %v1360_v42 = vpack.c.bf16 %v1349_v35, %v1348_v15  ;;  %v1338_v44 = vadd.f32 %v5976_v21, %v1303_v8  ;;  %v1352_v48 = vmax.f32 %v1336_v36, 0.0 }
 0x201   : > { %v1361_v46 = vpack.c.bf16 %v1351_v38, %v1350_v37  ;;  %v1353_v49 = vmax.f32 %v1337_v39, 0.0  ;;  %v1339_v50 = vadd.f32 %v5976_v21, %v1307_v40  ;;  %v6034_v21 = vpop.permute.xlu1 %754  ;;  %v932_v58 = vmax.f32 %v6032_v55, 1.0 }
 0x202   : > { %v1354_v52 = vmax.f32 %v1338_v44, 0.0  ;;  %9150 = vst [vmem:[#allocation8_spill] sm:$0xff] %v6034_v21  ;;  %vm923_vm4 = vcmp.gt.f32.partialorder %v6032_v55, 0.0  ;;  %v933_v62 = vmax.f32 %v6045_v61, 1.0  ;;  %vm924_vm5 = vcmp.gt.f32.partialorder %v6045_v61, 0.0 }
 0x203   : > { %v1362_v51 = vpack.c.bf16 %v1353_v49, %v1352_v48  ;;  %v1355_v53 = vmax.f32 %v1339_v50, 0.0  ;;  %5611 = vrcp.f32 %v932_v58  ;;  %v6060_v3 = vsel %vm923_vm4, 1.0, %v8912_v45 }
 0x204   : > { %9158 = vst [vmem:[#allocation16_spill] sm:$0xff] %v6060_v3  ;;  %v6065_v11 = vsel %vm924_vm5, 1.0, %v8912_v45  ;;  %5613 = vrcp.f32 %v933_v62  ;;  %vm9040_vm6 = vcmp.gt.f32.partialorder %v6034_v21, 0.0  ;;  %v6072_v13 = vrot.slane %v6060_v3, 2 }
 0x205   : > { %v1363_v54 = vpack.c.bf16 %v1355_v53, %v1354_v52  ;;  %v6036_v56 = vpop.permute.xlu1 %761  ;;  %9159 = vst [vmem:[#allocation17_spill] sm:$0xff] %v6065_v11  ;;  %v6091_v23 = vrot.slane %v6060_v3, 3  ;;  %v6101_v27 = vrot.slane %v6060_v3, 1 }
 0x206   : > { %9151 = vst [vmem:[#allocation9_spill] sm:$0xff] %v6036_v56  ;;  %9160 = vst [vmem:[#allocation18_spill] sm:$0xff] %v6072_v13  ;;  %vm9038_vm10 = vcmp.gt.f32.partialorder %v6036_v56, 0.0 }
 0x207   : > { %5417 = vmatmul.mubr.msk.bf16.gmra.mrb[4].mxu1 %vm9042_vm2, %v1359_v41  ;;  %9164 = vst [vmem:[#allocation22_spill] sm:$0xff] %v6101_v27 }
 0x208   : > { %5420 = vmatprep.mubr.msk.bf16.mxu1 %vm9042_vm2, %v1360_v42 }
 0x209   : > { %v6038_v57 = vpop.permute.xlu1 %817 }
 0x20a   : > { %9152 = vst [vmem:[#allocation10_spill] sm:$0xff] %v6038_v57  ;;  %vm8993_vm4 = vcmp.gt.f32.partialorder %v6038_v57, 0.0 }
 0x20d   : > { %v6041_v59 = vpop.permute.xlu1 %768  ;;  %v6057_v2 = vpop.eup %5611 }
 0x20e   : > { %9153 = vst [vmem:[#allocation11_spill] sm:$0xff] %v6041_v59  ;;  %9157 = vst [vmem:[#allocation15_spill] sm:$0xff] %v6057_v2  ;;  %vm9041_vm7 = vcmp.gt.f32.partialorder %v6041_v59, 0.0  ;;  %v6075_v14 = vrot.slane %v6057_v2, 2  ;;  %v6098_v26 = vrot.slane %v6057_v2, 3  ;;  %v6119_v36 = vrot.slane %v6057_v2, 1 }
 0x20f   : > { %5421 = vmatmul.mubr.msk.bf16.gmra.mrb[8].mxu1 %vm9042_vm2, %v1361_v46  ;;  %v6124_v38 = vrot.slane %v6057_v2, 4 }
 0x210   : > { %5424 = vmatprep.mubr.msk.bf16.mxu1 %vm9042_vm2, %v1362_v51  ;;  %9161 = vst [vmem:[#allocation19_spill] sm:$0xff] %v6075_v14  ;;  %9163 = vst [vmem:[#allocation21_spill] sm:$0xff] %v6098_v26 }
 0x211   : > { %v6043_v60 = vpop.permute.xlu1 %824  ;;  %9165 = vst [vmem:[#allocation23_spill] sm:$0xff] %v6119_v36  ;;  %9166 = vst [vmem:[#allocation24_spill] sm:$0xff] %v6124_v38 }
 0x212   : > { %9154 = vst [vmem:[#allocation12_spill] sm:$0xff] %v6043_v60  ;;  %vm9018_vm15 = vcmp.gt.f32.partialorder %v6043_v60, 0.0 }
 0x215   : > { %v6054_v63 = vpop.permute.xlu1 %775 }
 0x216   : > { %9156 = vst [vmem:[#allocation14_spill] sm:$0xff] %v6054_v63  ;;  %vm9039_vm9 = vcmp.gt.f32.partialorder %v6054_v63, 0.0 }
 0x217   : > { %5425 = vmatmul.mubr.msk.bf16.gmra.mrb[12].mxu1 %vm9042_vm2, %v1363_v54 }
 0x218   : > { %5239 = vmatprep.mubr.msk.bf16.mxu1 %vm9043_vm1, %v5917_v43  ;;  %v6051_v43 = vld [vmem:[%s8900_s10] ss:$0 sm:$0xff] }
 0x219   : > { %v6077_v16 = vpop.permute.xlu1 %810 }
 0x21a   : > { %9162 = vst [vmem:[#allocation20_spill] sm:$0xff] %v6077_v16  ;;  %vm9017_vm0 = vcmp.gt.f32.partialorder %v6077_v16, 0.0 }
 0x21d   : > { %v6133_v46 = vpop.permute.xlu1 %782 }
 0x21e   : > { %9167 = vst [vmem:[#allocation25_spill] sm:$0xff] %v6133_v46  ;;  %vm9036_vm12 = vcmp.gt.f32.partialorder %v6133_v46, 0.0 }
 0x2d2   : > { %v5414_v0 = vpop.f32.mrb[0].mxu1 }
 0x2d3   : > { %v1461_v6 = vadd.f32 %v5414_v0, %v6051_v43  ;;  %v1452_v8 = vpop.f32.mrb[1].mxu1 }
 0x2d4   : > { %v1453_v9 = vadd.f32 %v6051_v43, %v1452_v8  ;;  %v5415_v5 = vpop.f32.mrb[2].mxu1 }
 0x2d5   : > { %v1517_v4 = vmax.f32 %v1461_v6, 0.0  ;;  %v6068_v12 = vpop.f32.mrb[3].mxu1  ;;  %v6144_v6 = vpop.eup %5613 }
 0x2d6   : > { %v1515_v15 = vmax.f32 %v1453_v9, 0.0  ;;  %9168 = vst [vmem:[#allocation26_spill] sm:$0xff] %v6144_v6 }
 0x2d7   : > { %v6081_v18 = vsel %vm9041_vm7, %v1517_v4, -1e+30  ;;  %v6085_v19 = vsel %vm9041_vm7, %v1517_v4, 1e+30  ;;  %v6088_v22 = vmul.f32 %v1517_v4, %v6041_v59  ;;  %v6160_v59 = vpop.permute.xlu1 %838 }
 0x2d8   : > { %v1641_v24 = vsel %vm9043_vm1, %v6081_v18, -inf  ;;  %v1801_v25 = vsel %vm9043_vm1, %v6085_v19, inf  ;;  %v6110_v33 = vsel %vm9040_vm6, %v1515_v15, -1e+30  ;;  %v6114_v17 = vsel %vm9040_vm6, %v1515_v15, 1e+30 }
 0x2d9   : > { %v6104_v28 = vmul.f32 %v6088_v22, %v1517_v4  ;;  %v1642_v29 = vrot.slane %v1641_v24, 4  ;;  %v1802_v30 = vrot.slane %v1801_v25, 4  ;;  %v1929_v31 = vsel %vm9043_vm1, %v6088_v22, 0.0  ;;  %9171 = vst [vmem:[#allocation29_spill] sm:$0xff] %v6160_v59 }
 0x2da   : > { %v1930_v32 = vrot.slane %v1929_v31, 4  ;;  %v6121_v37 = vpop.f32.mrb[4].mxu1  ;;  %v6127_v41 = vmul.f32 %v1515_v15, %v6034_v21  ;;  %v1627_v42 = vsel %vm9043_vm1, %v6110_v33, -inf  ;;  %v1787_v51 = vsel %vm9043_vm1, %v6114_v17, inf }
 0x2db   : > { %v1643_v34 = vmax.f32 %v1641_v24, %v1642_v29  ;;  %v2089_v35 = vsel %vm9043_vm1, %v6104_v28, 0.0  ;;  %v6131_v44 = vpop.f32.mrb[5].mxu1  ;;  %v1803_v49 = vmin.f32 %v1801_v25, %v1802_v30  ;;  %v1628_v50 = vrot.slane %v1627_v42, 4 }
 0x2dc   : > { %v1931_v39 = vadd.f32 %v1930_v32, %v1929_v31  ;;  %v2090_v40 = vrot.slane %v2089_v35, 4  ;;  %v6137_v52 = vpop.f32.mrb[6].mxu1  ;;  %v6140_v58 = vmul.f32 %v6127_v41, %v1515_v15  ;;  %v1788_v62 = vrot.slane %v1787_v51, 4 }
 0x2dd   : > { %v1644_v48 = vrot.slane %v1643_v34, 2  ;;  %v6142_v0 = vpop.f32.mrb[7].mxu1  ;;  %v1629_v8 = vmax.f32 %v1627_v42, %v1628_v50  ;;  %v1915_v9 = vsel %vm9043_vm1, %v6127_v41, 0.0  ;;  %v6149_v4 = vrot.slane %v6057_v2, 5 }
 0x2de   : > { %v1932_v53 = vrot.slane %v1931_v39, 2  ;;  %v2091_v54 = vadd.f32 %v2090_v40, %v2089_v35  ;;  %v6152_v24 = vrot.slane %v6065_v11, 2  ;;  %v1916_v30 = vrot.slane %v1915_v9, 4 }
 0x2df   : > { %9169 = vst [vmem:[#allocation27_spill] sm:$0xff] %v6149_v4  ;;  %v1464_v15 = vadd.f32 %v5415_v5, %v6051_v43  ;;  %v1645_v31 = vmax.f32 %v1643_v34, %v1644_v48  ;;  %v1804_v32 = vrot.slane %v1803_v49, 2  ;;  %v1789_v35 = vmin.f32 %v1787_v51, %v1788_v62 }
 0x2e0   : > { %9170 = vst [vmem:[#allocation28_spill] sm:$0xff] %v6152_v24  ;;  %v1933_v25 = vadd.f32 %v1932_v53, %v1931_v39  ;;  %v2092_v29 = vrot.slane %v2091_v54, 2  ;;  %v2075_v40 = vsel %vm9043_vm1, %v6140_v58, 0.0  ;;  %v1630_v45 = vrot.slane %v1629_v8, 2 }
 0x2e1   : > { %v1917_v1 = vadd.f32 %v1916_v30, %v1915_v9  ;;  %v2076_v39 = vrot.slane %v2075_v40, 4  ;;  %v6163_v53 = vrot.slane %v6144_v6, 2  ;;  %v6168_v34 = vrot.slane %v6060_v3, 4 }
 0x2e2   : > { %v1934_v42 = vrot.slane %v1933_v25, 1  ;;  %v2093_v50 = vadd.f32 %v2092_v29, %v2091_v54  ;;  %v6158_v21 = vpop.f32.mrb[8].mxu1  ;;  %v6171_v48 = vrot.slane %v6060_v3, 5  ;;  %v1518_v9 = vmax.f32 %v1464_v15, 0.0 }
 0x2e3   : > { %9172 = vst [vmem:[#allocation30_spill] sm:$0xff] %v6163_v53  ;;  %v6165_v5 = vpop.f32.mrb[9].mxu1  ;;  %9173 = vst [vmem:[#allocation31_spill] sm:$0xff] %v6168_v34  ;;  %v1918_v62 = vrot.slane %v1917_v1, 2  ;;  %v2414_v30 = vsel %vm2411_vm8, %v6081_v18, -inf  ;;  %v2451_v47 = vsel %vm2411_vm8, %v6085_v19, inf  ;;  %v2077_v61 = vadd.f32 %v2076_v39, %v2075_v40 }
 0x2e4   : > { %9174 = vst [vmem:[#allocation32_spill] sm:$0xff] %v6171_v48  ;;  %v1935_v51 = vadd.f32 %v1934_v42, %v1933_v25  ;;  %v2094_v54 = vrot.slane %v2093_v50, 1  ;;  %v6173_v29 = vpop.f32.mrb[10].mxu1  ;;  %v1790_v20 = vrot.slane %v1789_v35, 2  ;;  %v1646_v10 = vrot.slane %v1645_v31, 1 }
 0x2e5   : > { %v6179_v55 = vpop.f32.mrb[11].mxu1  ;;  %v1805_v7 = vmin.f32 %v1803_v49, %v1804_v32  ;;  %v1631_v34 = vmax.f32 %v1629_v8, %v1630_v45  ;;  %v1919_v48 = vadd.f32 %v1918_v62, %v1917_v1  ;;  %v2078_v42 = vrot.slane %v2077_v61, 2  ;;  %v6195_v45 = vpop.permute.xlu1 %789 }
 0x2e6   : > { %v6182_v25 = vmul.f32 %v6075_v14, %v1935_v51  ;;  %v2095_v15 = vadd.f32 %v2094_v54, %v2093_v50  ;;  %v2412_v59 = vsel %vm2411_vm8, %v6110_v33, -inf  ;;  %v6187_v24 = vrot.slane %v6065_v11, 3  ;;  %9179 = vst [vmem:[#allocation37_spill] sm:$0xff] %v6195_v45 }
 0x2e7   : > { %v1920_v18 = vrot.slane %v1919_v48, 1  ;;  %v6190_v19 = vrot.slane %v6060_v3, 6  ;;  %v6193_v40 = vrot.slane %v6060_v3, 7  ;;  %v1791_v1 = vmin.f32 %v1789_v35, %v1790_v20 }
 0x2e8   : > { %9175 = vst [vmem:[#allocation33_spill] sm:$0xff] %v6182_v25  ;;  %9176 = vst [vmem:[#allocation34_spill] sm:$0xff] %v6187_v24  ;;  %v2079_v49 = vadd.f32 %v2078_v42, %v2077_v61  ;;  %v2421_v8 = vmax.f32 %v2414_v30, %v2412_v59  ;;  %v2449_v32 = vsel %vm2411_vm8, %v6114_v17, inf  ;;  %v1647_v50 = vmax.f32 %v1645_v31, %v1646_v10 }
 0x2e9   : > { %9177 = vst [vmem:[#allocation35_spill] sm:$0xff] %v6190_v19  ;;  %9178 = vst [vmem:[#allocation36_spill] sm:$0xff] %v6193_v40  ;;  %v1806_v33 = vrot.slane %v1805_v7, 1  ;;  %v2458_v39 = vmin.f32 %v2451_v47, %v2449_v32  ;;  %v6200_v51 = vrot.slane %v6065_v11, 1  ;;  %v2189_v62 = vmul.f32 %v2095_v15, %v6075_v14 }
 0x2ea   : > { %v6202_v54 = vpop.f32.mrb[12].mxu1  ;;  %v2221_v40 = vmul.f32 %v6182_v25, %v6182_v25  ;;  %v1632_v19 = vrot.slane %v1631_v34, 1  ;;  %v1566_v20 = vsel %vm9039_vm9, %v1518_v9, -1e+30  ;;  %v1921_v10 = vadd.f32 %v1920_v18, %v1919_v48  ;;  %v6229_v25 = vpop.permute.xlu1 %845 }
 0x2eb   : > { %9180 = vst [vmem:[#allocation38_spill] sm:$0xff] %v6200_v51  ;;  %9181 = vst [vmem:[#allocation39_spill] sm:$0xff] %v6202_v54  ;;  %v6209_v59 = vpop.f32.mrb[13].mxu1  ;;  %v2080_v47 = vrot.slane %v2079_v49, 1  ;;  %v1582_v61 = vsel %vm9039_vm9, %v1518_v9, 1e+30  ;;  %v6215_v17 = vmul.f32 %v1518_v9, %v6054_v63  ;;  %v1456_v42 = vadd.f32 %v6051_v43, %v6068_v12 }
 0x2ec   : > { %9182 = vst [vmem:[#allocation40_spill] sm:$0xff] %v6209_v59  ;;  %v6217_v31 = vpop.f32.mrb[14].mxu1  ;;  %v1792_v35 = vrot.slane %v1791_v1, 1  ;;  %v1648_v30 = vsel %vm9043_vm1, %v1566_v20, -inf  ;;  %v2415_v15 = vsel %vm2411_vm8, %v1566_v20, -inf  ;;  %v1807_v48 = vmin.f32 %v1805_v7, %v1806_v33  ;;  %9185 = vst [vmem:[#allocation43_spill] sm:$0xff] %v6229_v25 }
 0x2ed   : > { %9183 = vst [vmem:[#allocation41_spill] sm:$0xff] %v6217_v31  ;;  %v6223_v32 = vpop.f32.mrb[15].mxu1  ;;  %v6226_v18 = vmul.f32 %v6215_v17, %v1518_v9  ;;  %v1649_v14 = vrot.slane %v1648_v30, 4  ;;  %v1808_v63 = vsel %vm9043_vm1, %v1582_v61, inf  ;;  %v6232_v31 = vmul.f32 %v6072_v13, %v1647_v50 }
 0x2ee   : > { %9184 = vst [vmem:[#allocation42_spill] sm:$0xff] %v6223_v32  ;;  %v1633_v51 = vmax.f32 %v1631_v34, %v1632_v19  ;;  %v1936_v20 = vsel %vm9043_vm1, %v6215_v17, 0.0  ;;  %v6236_v24 = vmax.f32 %v2415_v15, %v2421_v8  ;;  %v2237_v12 = vsub.f32 %v2189_v62, %v2221_v40 }
 0x2ef   : > { %9186 = vst [vmem:[#allocation44_spill] sm:$0xff] %v6232_v31  ;;  %v6239_v7 = vmul.f32 %v6057_v2, %v1921_v10  ;;  %v2081_v9 = vadd.f32 %v2080_v47, %v2079_v49  ;;  %v2452_v33 = vsel %vm2411_vm8, %v1582_v61, inf  ;;  %v1793_v32 = vmin.f32 %v1791_v1, %v1792_v35  ;;  %v6267_v61 = vpop.permute.xlu1 %796 }
 0x2f0   : > { %v1809_v59 = vrot.slane %v1808_v63, 4  ;;  %v6242_v54 = vmin.f32 %v2452_v33, %v2458_v39  ;;  %v6245_v50 = vrot.slane %v6144_v6, 3  ;;  %v6249_v34 = vsel %vm2411_vm8, %v6088_v22, 0.0  ;;  %9191 = vst [vmem:[#allocation49_spill] sm:$0xff] %v6267_v61 }
 0x2f1   : > { %9187 = vst [vmem:[#allocation45_spill] sm:$0xff] %v6239_v7  ;;  %v1650_v19 = vmax.f32 %v1648_v30, %v1649_v14  ;;  %v1937_v8 = vrot.slane %v1936_v20, 4  ;;  %v2096_v40 = vsel %vm9043_vm1, %v6226_v18, 0.0  ;;  %v6254_v49 = vmul.f32 %v1807_v48, %v6072_v13 }
 0x2f2   : > { %9188 = vst [vmem:[#allocation46_spill] sm:$0xff] %v6245_v50  ;;  %v6258_v1 = vsel %vm2411_vm8, %v6104_v28, 0.0  ;;  %v1516_v62 = vmax.f32 %v1456_v42, 0.0  ;;  %v2253_v10 = vmax.f32 %v2237_v12, 0.0  ;;  %v6262_v47 = vmul.f32 %v6060_v3, %v1633_v51 }
 0x2f3   : > { %9189 = vst [vmem:[#allocation47_spill] sm:$0xff] %v6254_v49  ;;  %v2187_v14 = vmul.f32 %v6057_v2, %v2081_v9  ;;  %v2219_v22 = vmul.f32 %v6239_v7, %v6239_v7  ;;  %v6270_v35 = vmul.f32 %v6060_v3, %v1793_v32  ;;  %v1810_v30 = vmin.f32 %v1808_v63, %v1809_v59 }
 0x2f4   : > { %9190 = vst [vmem:[#allocation48_spill] sm:$0xff] %v6262_v47  ;;  %v2097_v28 = vrot.slane %v2096_v40, 4  ;;  %v1564_v15 = vsel %vm9038_vm10, %v1516_v62, -1e+30  ;;  %vm9037_vm11 = vcmp.gt.f32.partialorder %v6267_v61, 0.0  ;;  %v1651_v42 = vrot.slane %v1650_v19, 2 }
 0x2f5   : > { %9192 = vst [vmem:[#allocation50_spill] sm:$0xff] %v6270_v35  ;;  %v1938_v51 = vadd.f32 %v1937_v8, %v1936_v20  ;;  %v1580_v48 = vsel %vm9038_vm10, %v1516_v62, 1e+30  ;;  %v1596_v12 = vmul.f32 %v1516_v62, %v6036_v56  ;;  %v2481_v9 = vsel %vm2411_vm8, %v6127_v41, 0.0 }
 0x2f6   : > { %v2518_v32 = vsel %vm2411_vm8, %v6140_v58, 0.0  ;;  %v1634_v63 = vsel %vm9043_vm1, %v1564_v15, -inf  ;;  %v1794_v59 = vsel %vm9043_vm1, %v1580_v48, inf  ;;  %v6284_v33 = vadd.f32 1e-05, %v2253_v10 }
 0x2f7   : > { %v2235_v39 = vsub.f32 %v2187_v14, %v2219_v22  ;;  %v1612_v31 = vmul.f32 %v1596_v12, %v1516_v62  ;;  %v1635_v20 = vrot.slane %v1634_v63, 4  ;;  %v1811_v8 = vrot.slane %v1810_v30, 2 }
 0x2f8   : > { %9193 = vst [vmem:[#allocation51_spill] sm:$0xff] %v6284_v33  ;;  %v2098_v47 = vadd.f32 %v2097_v28, %v2096_v40  ;;  %v1795_v3 = vrot.slane %v1794_v59, 4  ;;  %v1922_v56 = vsel %vm9043_vm1, %v1596_v12, 0.0  ;;  %v1652_v7 = vmax.f32 %v1650_v19, %v1651_v42 }
 0x2f9   : > { %v1939_v13 = vrot.slane %v1938_v51, 2  ;;  %v1636_v41 = vmax.f32 %v1634_v63, %v1635_v20  ;;  %v1923_v2 = vrot.slane %v1922_v56, 4  ;;  %v2082_v58 = vsel %vm9043_vm1, %v1612_v31, 0.0 }
 0x2fa   : > { %v1796_v49 = vmin.f32 %v1794_v59, %v1795_v3  ;;  %v6289_v35 = vsel %vm2411_vm8, %v1564_v15, -inf  ;;  %v1477_v10 = vadd.f32 %v6121_v37, %v6051_v43  ;;  %v2083_v22 = vrot.slane %v2082_v58, 4 }
 0x2fb   : > { %v1637_v62 = vrot.slane %v1636_v41, 2  ;;  %v1924_v14 = vadd.f32 %v1923_v2, %v1922_v56  ;;  %v2423_v40 = vmax.f32 %v6289_v35, %v6236_v24  ;;  %v1812_v28 = vmin.f32 %v1810_v30, %v1811_v8 }
 0x2fc   : > { %v1797_v19 = vrot.slane %v1796_v49, 2  ;;  %v2450_v42 = vsel %vm2411_vm8, %v1580_v48, inf  ;;  %v2482_v3 = vsel %vm2411_vm8, %v1596_v12, 0.0  ;;  %v2099_v63 = vrot.slane %v2098_v47, 2 }
 0x2fd   : > { %v1925_v59 = vrot.slane %v1924_v14, 2  ;;  %v2084_v20 = vadd.f32 %v2083_v22, %v2082_v58  ;;  %v2460_v15 = vmin.f32 %v2450_v42, %v6242_v54  ;;  %v1638_v33 = vmax.f32 %v1636_v41, %v1637_v62 }
 0x2fe   : > { %v2483_v25 = vadd.f32 %v2482_v3, %v2481_v9  ;;  %v2519_v37 = vsel %vm2411_vm8, %v1612_v31, 0.0  ;;  %v1521_v56 = vmax.f32 %v1477_v10, 0.0  ;;  %v1798_v2 = vmin.f32 %v1796_v49, %v1797_v19 }
 0x2ff   : > { %v1926_v50 = vadd.f32 %v1925_v59, %v1924_v14  ;;  %v2085_v11 = vrot.slane %v2084_v20, 2  ;;  %v2520_v24 = vadd.f32 %v2519_v37, %v2518_v32  ;;  %v2251_v35 = vmax.f32 %v2235_v39, 0.0 }
 0x300   : > { %v1653_v30 = vrot.slane %v1652_v7, 1  ;;  %v2485_v48 = vadd.f32 %v6249_v34, %v2483_v25  ;;  %v1569_v12 = vsel %vm9037_vm11, %v1521_v56, -1e+30  ;;  %v1940_v8 = vadd.f32 %v1939_v13, %v1938_v51 }
 0x301   : > { %v1927_v58 = vrot.slane %v1926_v50, 1  ;;  %v2086_v22 = vadd.f32 %v2085_v11, %v2084_v20  ;;  %v2522_v54 = vadd.f32 %v6258_v1, %v2520_v24  ;;  %v2100_v9 = vadd.f32 %v2099_v63, %v2098_v47 }
 0x302   : > { %v1639_v41 = vrot.slane %v1638_v33, 1  ;;  %v6304_v31 = vmul.f32 %v1521_v56, %v6267_v61  ;;  %v1669_v49 = vsel %vm9043_vm1, %v1569_v12, -inf  ;;  %v1813_v32 = vrot.slane %v1812_v28, 1 }
 0x303   : > { %v2486_v39 = vsel %vm2411_vm8, %v6215_v17, 0.0  ;;  %v2523_v25 = vsel %vm2411_vm8, %v6226_v18, 0.0  ;;  %v1799_v34 = vrot.slane %v1798_v2, 1  ;;  %v1928_v11 = vadd.f32 %v1927_v58, %v1926_v50 }
 0x304   : > { %v2087_v13 = vrot.slane %v2086_v22, 1  ;;  %v1585_v1 = vsel %vm9037_vm11, %v1521_v56, 1e+30  ;;  %v6315_v47 = vmul.f32 %v6304_v31, %v1521_v56  ;;  %v6317_v51 = vadd.f32 1e-05, %v2251_v35 }
 0x305   : > { %v1654_v10 = vmax.f32 %v1652_v7, %v1653_v30  ;;  %v1670_v62 = vrot.slane %v1669_v49, 4  ;;  %v1469_v17 = vadd.f32 %v6051_v43, %v6131_v44  ;;  %v1941_v14 = vrot.slane %v1940_v8, 1 }
 0x306   : > { %9194 = vst [vmem:[#allocation52_spill] sm:$0xff] %v6317_v51  ;;  %v2101_v18 = vrot.slane %v2100_v9, 1  ;;  %v1640_v19 = vmax.f32 %v1638_v33, %v1639_v41  ;;  %v2117_v50 = vsel %vm9043_vm1, %v6315_v47, 0.0  ;;  %v6323_v42 = vmin.f32 %v1812_v28, %v1813_v32 }
 0x307   : > { %v1800_v3 = vmin.f32 %v1798_v2, %v1799_v34  ;;  %v1829_v63 = vsel %vm9043_vm1, %v1585_v1, inf  ;;  %v1957_v59 = vsel %vm9043_vm1, %v6304_v31, 0.0  ;;  %v6329_v7 = vmul.f32 %v6119_v36, %v1928_v11  ;;  %v6348_v34 = vpop.permute.xlu1 %803 }
 0x308   : > { %v2088_v20 = vadd.f32 %v2087_v13, %v2086_v22  ;;  %v2420_v44 = vsel %vm2411_vm8, %v1569_v12, -inf  ;;  %v2457_v37 = vsel %vm2411_vm8, %v1585_v1, inf  ;;  %v6334_v33 = vmul.f32 %v6091_v23, %v1654_v10  ;;  %9198 = vst [vmem:[#allocation56_spill] sm:$0xff] %v6348_v34 }
 0x309   : > { %9195 = vst [vmem:[#allocation53_spill] sm:$0xff] %v6329_v7  ;;  %v1671_v56 = vmax.f32 %v1669_v49, %v1670_v62  ;;  %v2118_v28 = vrot.slane %v2117_v50, 4  ;;  %v6336_v24 = vmax.f32 %v2420_v44, %v2423_v40  ;;  %v6338_v2 = vadd.f32 %v1941_v14, %v1940_v8 }
 0x30a   : > { %9196 = vst [vmem:[#allocation54_spill] sm:$0xff] %v6334_v33  ;;  %v2102_v35 = vadd.f32 %v2101_v18, %v2100_v9  ;;  %v6341_v30 = vmul.f32 %v6101_v27, %v1640_v19  ;;  %v6343_v58 = vmin.f32 %v2457_v37, %v2460_v15  ;;  %v6346_v22 = vmul.f32 %v1800_v3, %v6101_v27 }
 0x30b   : > { %v1830_v12 = vrot.slane %v1829_v63, 4  ;;  %v1958_v41 = vrot.slane %v1957_v59, 4  ;;  %v1519_v32 = vmax.f32 %v1469_v17, 0.0  ;;  %v2188_v49 = vmul.f32 %v2088_v20, %v6119_v36 }
 0x30c   : > { %9197 = vst [vmem:[#allocation55_spill] sm:$0xff] %v6341_v30  ;;  %v2220_v40 = vmul.f32 %v6329_v7, %v6329_v7  ;;  %v2487_v8 = vadd.f32 %v2486_v39, %v2485_v48  ;;  %v2524_v9 = vadd.f32 %v2523_v25, %v2522_v54  ;;  %vm9020_vm13 = vcmp.gt.f32.partialorder %v6348_v34, 0.0 }
 0x30d   : > { %v1672_v11 = vrot.slane %v1671_v56, 2  ;;  %v2119_v15 = vadd.f32 %v2118_v28, %v2117_v50  ;;  %v1567_v13 = vsel %vm9036_vm12, %v1519_v32, -1e+30  ;;  %v1583_v1 = vsel %vm9036_vm12, %v1519_v32, 1e+30 }
 0x30e   : > { %v1599_v10 = vmul.f32 %v1519_v32, %v6133_v46  ;;  %v1655_v62 = vsel %vm9043_vm1, %v1567_v13, -inf  ;;  %v1815_v17 = vsel %vm9043_vm1, %v1583_v1, inf  ;;  %v2416_v14 = vsel %vm2411_vm8, %v1567_v13, -inf }
 0x30f   : > { %v1656_v48 = vrot.slane %v1655_v62, 4  ;;  %v1816_v54 = vrot.slane %v1815_v17, 4  ;;  %v2429_v39 = vmax.f32 %v2416_v14, %v6336_v24  ;;  %v1480_v25 = vadd.f32 %v6137_v52, %v6051_v43 }
 0x310   : > { %v1615_v18 = vmul.f32 %v1599_v10, %v1519_v32  ;;  %v1943_v19 = vsel %vm9043_vm1, %v1599_v10, 0.0  ;;  %v2453_v50 = vsel %vm2411_vm8, %v1583_v1, inf  ;;  %v2488_v3 = vsel %vm2411_vm8, %v1599_v10, 0.0 }
 0x311   : > { %v2120_v20 = vrot.slane %v2119_v15, 2  ;;  %v1657_v44 = vmax.f32 %v1655_v62, %v1656_v48  ;;  %v1817_v37 = vmin.f32 %v1815_v17, %v1816_v54  ;;  %v1944_v28 = vrot.slane %v1943_v19, 4 }
 0x312   : > { %v2103_v13 = vsel %vm9043_vm1, %v1615_v18, 0.0  ;;  %v2466_v46 = vmin.f32 %v2453_v50, %v6343_v58  ;;  %v6370_v36 = vadd.f32 %v2488_v3, %v2487_v8  ;;  %v2525_v24 = vsel %vm2411_vm8, %v1615_v18, 0.0 }
 0x313   : > { %vm9019_vm14 = vcmp.gt.f32.partialorder %v6195_v45, 0.0  ;;  %v2236_v52 = vsub.f32 %v2188_v49, %v2220_v40  ;;  %v6374_v32 = vmin.f32 %v1829_v63, %v1830_v12  ;;  %v1658_v1 = vrot.slane %v1657_v44, 2 }
 0x314   : > { %v2104_v14 = vrot.slane %v2103_v13, 4  ;;  %v6376_v10 = vadd.f32 %v1958_v41, %v1957_v59  ;;  %v1818_v62 = vrot.slane %v1817_v37, 2  ;;  %v6378_v17 = vadd.f32 %v2525_v24, %v2524_v9 }
 0x315   : > { %v1522_v48 = vmax.f32 %v1480_v25, 0.0  ;;  %v6381_v54 = vmul.f32 %v2102_v35, %v6098_v26  ;;  %v2121_v8 = vadd.f32 %v2120_v20, %v2119_v15  ;;  %v1945_v18 = vadd.f32 %v1944_v28, %v1943_v19 }
 0x316   : > { %v6385_v49 = vmax.f32 %v1671_v56, %v1672_v11  ;;  %v1472_v59 = vadd.f32 %v6051_v43, %v6142_v0  ;;  %v2252_v12 = vmax.f32 %v2236_v52, 0.0  ;;  %v1659_v40 = vmax.f32 %v1657_v44, %v1658_v1 }
 0x317   : > { %9199 = vst [vmem:[#allocation57_spill] sm:$0xff] %v6381_v54  ;;  %v6388_v63 = vmul.f32 %v1522_v48, %v6348_v34  ;;  %v2105_v35 = vadd.f32 %v2104_v14, %v2103_v13  ;;  %v1819_v25 = vmin.f32 %v1817_v37, %v1818_v62  ;;  %v1570_v15 = vsel %vm9020_vm13, %v1522_v48, -1e+30 }
 0x318   : > { %9200 = vst [vmem:[#allocation58_spill] sm:$0xff] %v6385_v49  ;;  %v2122_v11 = vrot.slane %v2121_v8, 1  ;;  %v2492_v19 = vsel %vm2411_vm8, %v6304_v31, 0.0  ;;  %v1946_v3 = vrot.slane %v1945_v18, 2  ;;  %v1586_v0 = vsel %vm9020_vm13, %v1522_v48, 1e+30 }
 0x319   : > { %v6397_v56 = vmul.f32 %v6388_v63, %v1522_v48  ;;  %v2529_v44 = vsel %vm2411_vm8, %v6315_v47, 0.0  ;;  %v1520_v28 = vmax.f32 %v1472_v59, 0.0  ;;  %v6408_v13 = vadd.f32 1e-05, %v2252_v12 }
 0x31a   : > { %v1660_v24 = vrot.slane %v1659_v40, 1  ;;  %v2106_v52 = vrot.slane %v2105_v35, 2  ;;  %v2422_v1 = vsel %vm2411_vm8, %v1570_v15, -inf  ;;  %v1820_v31 = vrot.slane %v1819_v25, 1 }
 0x31b   : > { %v2124_v37 = vsel %vm9043_vm1, %v6397_v56, 0.0  ;;  %9201 = vst [vmem:[#allocation59_spill] sm:$0xff] %v6408_v13  ;;  %v6411_v62 = vmax.f32 %v2422_v1, %v2429_v39  ;;  %v2459_v48 = vsel %vm2411_vm8, %v1586_v0, inf  ;;  %v6414_v58 = vadd.f32 %v2122_v11, %v2121_v8 }
 0x31c   : > { %v2125_v14 = vrot.slane %v2124_v37, 4  ;;  %v6416_v20 = vadd.f32 %v1946_v3, %v1945_v18  ;;  %v1676_v47 = vsel %vm9043_vm1, %v1570_v15, -inf  ;;  %v6419_v9 = vmin.f32 %v2459_v48, %v2466_v46 }
 0x31d   : > { %9202 = vst [vmem:[#allocation60_spill] sm:$0xff] %v6414_v58  ;;  %v1836_v59 = vsel %vm9043_vm1, %v1586_v0, inf  ;;  %v1964_v12 = vsel %vm9043_vm1, %v6388_v63, 0.0  ;;  %v1568_v50 = vsel %vm9019_vm14, %v1520_v28, -1e+30  ;;  %v1600_v39 = vmul.f32 %v1520_v28, %v6195_v45 }
 0x31e   : > { %v6428_v8 = vmax.f32 %v1659_v40, %v1660_v24  ;;  %v2107_v18 = vadd.f32 %v2106_v52, %v2105_v35  ;;  %v1584_v15 = vsel %vm9019_vm14, %v1520_v28, 1e+30  ;;  %v1493_v46 = vadd.f32 %v6158_v21, %v6051_v43 }
 0x31f   : > { %v6434_v11 = vmin.f32 %v1819_v25, %v1820_v31  ;;  %v1677_v3 = vrot.slane %v1676_v47, 4  ;;  %v2126_v0 = vadd.f32 %v2125_v14, %v2124_v37  ;;  %v1616_v1 = vmul.f32 %v1600_v39, %v1520_v28 }
 0x320   : > { %9203 = vst [vmem:[#allocation61_spill] sm:$0xff] %v6428_v8  ;;  %v1837_v41 = vrot.slane %v1836_v59, 4  ;;  %v1965_v34 = vrot.slane %v1964_v12, 4  ;;  %v2418_v61 = vsel %vm2411_vm8, %v1568_v50, -inf  ;;  %v1662_v40 = vsel %vm9043_vm1, %v1568_v50, -inf }
 0x321   : > { %v1822_v35 = vsel %vm9043_vm1, %v1584_v15, inf  ;;  %v2431_v24 = vmax.f32 %v2418_v61, %v6411_v62  ;;  %v2455_v52 = vsel %vm2411_vm8, %v1584_v15, inf  ;;  %v2108_v21 = vrot.slane %v2107_v18, 1 }
 0x322   : > { %v1950_v25 = vsel %vm9043_vm1, %v1600_v39, 0.0  ;;  %v2110_v37 = vsel %vm9043_vm1, %v1616_v1, 0.0  ;;  %v2468_v28 = vmin.f32 %v2455_v52, %v6419_v9  ;;  %v6445_v31 = vmax.f32 %v1676_v47, %v1677_v3 }
 0x323   : > { %v2127_v14 = vrot.slane %v2126_v0, 2  ;;  %v2490_v48 = vsel %vm2411_vm8, %v1600_v39, 0.0  ;;  %v2527_v50 = vsel %vm2411_vm8, %v1616_v1, 0.0  ;;  %v6449_v45 = vmin.f32 %v1836_v59, %v1837_v41 }
 0x324   : > { %9204 = vst [vmem:[#allocation62_spill] sm:$0xff] %v6445_v31  ;;  %v1663_v33 = vrot.slane %v1662_v40, 4  ;;  %v1823_v61 = vrot.slane %v1822_v35, 4  ;;  %v2491_v62 = vadd.f32 %v2490_v48, %v6370_v36  ;;  %v1951_v15 = vrot.slane %v1950_v25, 4 }
 0x325   : > { %v2111_v30 = vrot.slane %v2110_v37, 4  ;;  %v2528_v8 = vadd.f32 %v2527_v50, %v6378_v17  ;;  %v1525_v49 = vmax.f32 %v1493_v46, 0.0  ;;  %v2109_v13 = vadd.f32 %v2108_v21, %v2107_v18 }
 0x326   : > { %v6453_v9 = vadd.f32 %v1965_v34, %v1964_v12  ;;  %v2494_v47 = vsel %vm2411_vm8, %v6388_v63, 0.0  ;;  %v2493_v39 = vadd.f32 %v2492_v19, %v2491_v62  ;;  %v2128_v59 = vadd.f32 %v2127_v14, %v2126_v0 }
 0x327   : > { %v6459_v3 = vadd.f32 %v2529_v44, %v2528_v8  ;;  %v1573_v36 = vsel %vm9018_vm15, %v1525_v49, -1e+30  ;;  %v1664_v1 = vmax.f32 %v1662_v40, %v1663_v33  ;;  %v1589_v17 = vsel %vm9018_vm15, %v1525_v49, 1e+30 }
 0x328   : > { %v6466_v34 = vmul.f32 %v1525_v49, %v6043_v60  ;;  %v1697_v63 = vsel %vm9043_vm1, %v1573_v36, -inf  ;;  %v1824_v19 = vmin.f32 %v1822_v35, %v1823_v61  ;;  %v1952_v12 = vadd.f32 %v1951_v15, %v1950_v25 }
 0x329   : > { %v2112_v18 = vadd.f32 %v2111_v30, %v2110_v37  ;;  %v2428_v46 = vsel %vm2411_vm8, %v1573_v36, -inf  ;;  %v1698_v8 = vrot.slane %v1697_v63, 4  ;;  %v1485_v0 = vadd.f32 %v6051_v43, %v6165_v5 }
 0x32a   : > { %v6471_v44 = vmul.f32 %v6466_v34, %v1525_v49  ;;  %v1985_v33 = vsel %vm9043_vm1, %v6466_v34, 0.0  ;;  %v1857_v48 = vsel %vm9043_vm1, %v1589_v17, inf  ;;  %v6478_v52 = vmax.f32 %v2428_v46, %v2431_v24 }
 0x32b   : > { %v1986_v40 = vrot.slane %v1985_v33, 4  ;;  %v2465_v35 = vsel %vm2411_vm8, %v1589_v17, inf  ;;  %v6483_v30 = vsel %vm2411_vm8, %v6397_v56, 0.0  ;;  %v1665_v49 = vrot.slane %v1664_v1, 2 }
 0x32c   : > { %v2145_v21 = vsel %vm9043_vm1, %v6471_v44, 0.0  ;;  %v6487_v25 = vmin.f32 %v2465_v35, %v2468_v28  ;;  %v2129_v37 = vrot.slane %v2128_v59, 1  ;;  %v2113_v14 = vrot.slane %v2112_v18, 2 }
 0x32d   : > { %v1987_v5 = vadd.f32 %v1986_v40, %v1985_v33  ;;  %v2146_v50 = vrot.slane %v2145_v21, 4  ;;  %v1825_v61 = vrot.slane %v1824_v19, 2  ;;  %v1953_v62 = vrot.slane %v1952_v12, 2 }
 0x32e   : > { %v1858_v24 = vrot.slane %v1857_v48, 4  ;;  %v1523_v15 = vmax.f32 %v1485_v0, 0.0  ;;  %v1699_v36 = vmax.f32 %v1697_v63, %v1698_v8  ;;  %v2495_v41 = vadd.f32 %v2494_v47, %v2493_v39 }
 0x32f   : > { %v1988_v17 = vrot.slane %v1987_v5, 2  ;;  %v2147_v46 = vadd.f32 %v2146_v50, %v2145_v21  ;;  %v6489_v56 = vmax.f32 %v1664_v1, %v1665_v49  ;;  %v2114_v33 = vadd.f32 %v2113_v14, %v2112_v18 }
 0x330   : > { %v1571_v60 = vsel %vm9017_vm0, %v1523_v15, -1e+30  ;;  %v1587_v28 = vsel %vm9017_vm0, %v1523_v15, 1e+30  ;;  %v1603_v35 = vmul.f32 %v1523_v15, %v6077_v16  ;;  %v1859_v0 = vmin.f32 %v1857_v48, %v1858_v24 }
 0x331   : > { %v1989_v40 = vadd.f32 %v1988_v17, %v1987_v5  ;;  %v2148_v31 = vrot.slane %v2147_v46, 2  ;;  %v1683_v51 = vsel %vm9043_vm1, %v1571_v60, -inf  ;;  %v1843_v47 = vsel %vm9043_vm1, %v1587_v28, inf }
 0x332   : > { %v1619_v63 = vmul.f32 %v1603_v35, %v1523_v15  ;;  %v1684_v8 = vrot.slane %v1683_v51, 4  ;;  %v1700_v39 = vrot.slane %v1699_v36, 2  ;;  %v1844_v21 = vrot.slane %v1843_v47, 4  ;;  %v6505_v15 = vpop.permute.xlu0 %831 }
 0x333   : > { %v1990_v1 = vrot.slane %v1989_v40, 1  ;;  %v2149_v49 = vadd.f32 %v2148_v31, %v2147_v46  ;;  %v6499_v50 = vmul.f32 %v2109_v13, %v6124_v38  ;;  %v1971_v16 = vsel %vm9043_vm1, %v1603_v35, 0.0  ;;  %9207 = vst [vmem:[#allocation65_spill] sm:$0xff] %v6505_v15 }
 0x334   : > { %v1685_v54 = vmax.f32 %v1683_v51, %v1684_v8  ;;  %v2131_v18 = vsel %vm9043_vm1, %v1619_v63, 0.0  ;;  %v6503_v14 = vadd.f32 %v2129_v37, %v2128_v59  ;;  %v2115_v5 = vrot.slane %v2114_v33, 1 }
 0x335   : > { %9205 = vst [vmem:[#allocation63_spill] sm:$0xff] %v6499_v50  ;;  %v1991_v48 = vadd.f32 %v1990_v1, %v1989_v40  ;;  %v2150_v24 = vrot.slane %v2149_v49, 1  ;;  %v6507_v17 = vmin.f32 %v1824_v19, %v1825_v61  ;;  %v1845_v58 = vmin.f32 %v1843_v47, %v1844_v21 }
 0x336   : > { %9206 = vst [vmem:[#allocation64_spill] sm:$0xff] %v6503_v14  ;;  %v1972_v31 = vrot.slane %v1971_v16, 4  ;;  %v2132_v46 = vrot.slane %v2131_v18, 4  ;;  %vm9016_vm3 = vcmp.gt.f32.partialorder %v6505_v15, 0.0  ;;  %v1667_v51 = vrot.slane %v6489_v56, 1 }
 0x337   : > { %v6511_v13 = vadd.f32 %v1953_v62, %v1952_v12  ;;  %v1701_v8 = vmax.f32 %v1699_v36, %v1700_v39  ;;  %v1860_v50 = vrot.slane %v1859_v0, 2  ;;  %v1686_v59 = vrot.slane %v1685_v54, 2 }
 0x338   : > { %v1973_v37 = vadd.f32 %v1972_v31, %v1971_v16  ;;  %v2133_v14 = vadd.f32 %v2132_v46, %v2131_v18  ;;  %v2424_v40 = vsel %vm2411_vm8, %v1571_v60, -inf  ;;  %v2116_v1 = vadd.f32 %v2115_v5, %v2114_v33 }
 0x339   : > { %v6515_v19 = vmul.f32 %v6163_v53, %v1991_v48  ;;  %v2151_v61 = vadd.f32 %v2150_v24, %v2149_v49  ;;  %v2433_v47 = vmax.f32 %v2424_v40, %v6478_v52  ;;  %v1846_v21 = vrot.slane %v1845_v58, 2 }
 0x33a   : > { %v1974_v7 = vrot.slane %v1973_v37, 2  ;;  %v2134_v27 = vrot.slane %v2133_v14, 2  ;;  %v2461_v12 = vsel %vm2411_vm8, %v1587_v28, inf  ;;  %v1702_v62 = vrot.slane %v1701_v8, 1 }
 0x33b   : > { %9208 = vst [vmem:[#allocation66_spill] sm:$0xff] %v6515_v19  ;;  %v1861_v36 = vmin.f32 %v1859_v0, %v1860_v50  ;;  %v2474_v39 = vmin.f32 %v2461_v12, %v6487_v25  ;;  %v2496_v16 = vsel %vm2411_vm8, %v1603_v35, 0.0  ;;  %v1687_v18 = vmax.f32 %v1685_v54, %v1686_v59 }
 0x33c   : > { %v1975_v60 = vadd.f32 %v1974_v7, %v1973_v37  ;;  %v2135_v33 = vadd.f32 %v2134_v27, %v2133_v14  ;;  %v6521_v5 = vadd.f32 %v2496_v16, %v2495_v41  ;;  %v2197_v49 = vmul.f32 %v2151_v61, %v6163_v53 }
 0x33d   : > { %v2229_v52 = vmul.f32 %v6515_v19, %v6515_v19  ;;  %v2532_v48 = vadd.f32 %v6483_v30, %v6459_v3  ;;  %v2533_v28 = vsel %vm2411_vm8, %v1619_v63, 0.0  ;;  %v1847_v35 = vmin.f32 %v1845_v58, %v1846_v21  ;;  %v9212_v21 = vld [vmem:[#allocation28_spill] sm:$0xff] }
 0x33e   : > { %v1976_v54 = vrot.slane %v1975_v60, 1  ;;  %v1496_v27 = vadd.f32 %v6173_v29, %v6051_v43  ;;  %v6534_v7 = vmax.f32 %v6489_v56, %v1667_v51  ;;  %v6538_v41 = vsel %vm2411_vm8, %v6466_v34, 0.0 }
 0x33f   : > { %v6540_v0 = vadd.f32 %v2533_v28, %v2532_v48  ;;  %v1488_v3 = vadd.f32 %v6051_v43, %v6179_v55  ;;  %v6545_v30 = vmul.f32 %v2116_v1, %v6149_v4  ;;  %v2136_v63 = vrot.slane %v2135_v33, 1 }
 0x340   : > { %9209 = vst [vmem:[#allocation67_spill] sm:$0xff] %v6534_v7  ;;  %v1977_v58 = vadd.f32 %v1976_v54, %v1975_v60  ;;  %v1526_v50 = vmax.f32 %v1496_v27, 0.0  ;;  %v1703_v14 = vmax.f32 %v1701_v8, %v1702_v62  ;;  %v1862_v29 = vrot.slane %v1861_v36, 1 }
 0x341   : > { %9210 = vst [vmem:[#allocation68_spill] sm:$0xff] %v6545_v30  ;;  %v2245_v24 = vsub.f32 %v2197_v49, %v2229_v52  ;;  %v1688_v56 = vrot.slane %v1687_v18, 1  ;;  %v1848_v31 = vrot.slane %v1847_v35, 1  ;;  %v1524_v51 = vmax.f32 %v1488_v3, 0.0 }
 0x342   : > { %v1574_v34 = vsel %vm9016_vm3, %v1526_v50, -1e+30  ;;  %v1590_v46 = vsel %vm9016_vm3, %v1526_v50, 1e+30  ;;  %v6552_v55 = vmul.f32 %v1526_v50, %v6505_v15  ;;  %v6558_v37 = vmul.f32 %v6144_v6, %v1977_v58  ;;  %v9222_v15 = vld [vmem:[#allocation40_spill] sm:$0xff] }
 0x343   : > { %v1704_v43 = vsel %vm9043_vm1, %v1574_v34, -inf  ;;  %v1864_v59 = vsel %vm9043_vm1, %v1590_v46, inf  ;;  %v2430_v8 = vsel %vm2411_vm8, %v1574_v34, -inf  ;;  %v2137_v40 = vadd.f32 %v2136_v63, %v2135_v33 }
 0x344   : > { %9211 = vst [vmem:[#allocation69_spill] sm:$0xff] %v6558_v37  ;;  %v1705_v1 = vrot.slane %v1704_v43, 4  ;;  %v6560_v61 = vmax.f32 %v2430_v8, %v2433_v47  ;;  %v6563_v12 = vmul.f32 %v9212_v21, %v1703_v14  ;;  %v1863_v62 = vmin.f32 %v1861_v36, %v1862_v29  ;;  %v6596_v8 = vpop.permute.xlu0 %852 }
 0x345   : > { %v6567_v16 = vsel %vm2411_vm8, %v6471_v44, 0.0  ;;  %v6570_v60 = vmul.f32 %v6552_v55, %v1526_v50  ;;  %v2261_v49 = vmax.f32 %v2245_v24, 0.0  ;;  %v1689_v52 = vmax.f32 %v1687_v18, %v1688_v56  ;;  %v9215_v56 = vld [vmem:[#allocation17_spill] sm:$0xff]  ;;  %9217 = vst [vmem:[#allocation73_spill] sm:$0xff] %v6596_v8 }
 0x346   : > { %9213 = vst [vmem:[#allocation70_spill] sm:$0xff] %v6563_v12  ;;  %v1865_v48 = vrot.slane %v1864_v59, 4  ;;  %v2467_v28 = vsel %vm2411_vm8, %v1590_v46, inf  ;;  %v1992_v47 = vsel %vm9043_vm1, %v6552_v55, 0.0  ;;  %v1572_v44 = vsel %vm8993_vm4, %v1524_v51, -1e+30 }
 0x347   : > { %v2152_v33 = vsel %vm9043_vm1, %v6570_v60, 0.0  ;;  %v6577_v54 = vmin.f32 %v2467_v28, %v2474_v39  ;;  %v1849_v36 = vmin.f32 %v1847_v35, %v1848_v31  ;;  %v2195_v27 = vmul.f32 %v6144_v6, %v2137_v40 }
 0x348   : > { %v2227_v18 = vmul.f32 %v6558_v37, %v6558_v37  ;;  %v1706_v3 = vmax.f32 %v1704_v43, %v1705_v1  ;;  %v2153_v58 = vrot.slane %v2152_v33, 4  ;;  %v1588_v63 = vsel %vm8993_vm4, %v1524_v51, 1e+30 }
 0x349   : > { %v1604_v50 = vmul.f32 %v1524_v51, %v6038_v57  ;;  %v1690_v14 = vsel %vm9043_vm1, %v1572_v44, -inf  ;;  %v6589_v39 = vmul.f32 %v1863_v62, %v9212_v21  ;;  %v1866_v35 = vmin.f32 %v1864_v59, %v1865_v48 }
 0x34a   : > { %v1993_v24 = vrot.slane %v1992_v47, 4  ;;  %v6593_v31 = vmul.f32 %v9215_v56, %v1689_v52  ;;  %v2154_v34 = vadd.f32 %v2153_v58, %v2152_v33  ;;  %v1850_v43 = vsel %vm9043_vm1, %v1588_v63, inf }
 0x34b   : > { %9214 = vst [vmem:[#allocation71_spill] sm:$0xff] %v6589_v39  ;;  %v1620_v46 = vmul.f32 %v1604_v50, %v1524_v51  ;;  %v6598_v40 = vadd.f32 1e-05, %v2261_v49  ;;  %v2243_v1 = vsub.f32 %v2195_v27, %v2227_v18  ;;  %v1707_v28 = vrot.slane %v1706_v3, 2  ;;  %v6612_v49 = vld [vmem:[%s8900_s10] ss:$0 sm:$0xff] }
 0x34c   : > { %9216 = vst [vmem:[#allocation72_spill] sm:$0xff] %v6593_v31  ;;  %v1691_v25 = vrot.slane %v1690_v14, 4  ;;  %vm8994_vm5 = vcmp.gt.f32.partialorder %v6596_v8, 0.0  ;;  %v6602_v62 = vmul.f32 %v9215_v56, %v1849_v36  ;;  %v1851_v59 = vrot.slane %v1850_v43, 4  ;;  %v9221_v27 = vld [vmem:[#allocation39_spill] sm:$0xff] }
 0x34d   : > { %9218 = vst [vmem:[#allocation74_spill] sm:$0xff] %v6598_v40  ;;  %v1978_v52 = vsel %vm9043_vm1, %v1604_v50, 0.0  ;;  %v2138_v48 = vsel %vm9043_vm1, %v1620_v46, 0.0  ;;  %v1867_v51 = vrot.slane %v1866_v35, 2  ;;  %v1994_v33 = vadd.f32 %v1993_v24, %v1992_v47 }
 0x34e   : > { %9219 = vst [vmem:[#allocation75_spill] sm:$0xff] %v6602_v62  ;;  %v6607_v58 = vrot.slane %v6144_v6, 1  ;;  %v1509_v18 = vadd.f32 %v6612_v49, %v9221_v27  ;;  %v2155_v36 = vrot.slane %v2154_v34, 2  ;;  %v1979_v29 = vrot.slane %v1978_v52, 4 }
 0x34f   : > { %v2139_v57 = vrot.slane %v2138_v48, 4  ;;  %v1501_v53 = vadd.f32 %v6612_v49, %v9222_v15  ;;  %v2259_v12 = vmax.f32 %v2243_v1, 0.0  ;;  %v1708_v31 = vmax.f32 %v1706_v3, %v1707_v28  ;;  %v9224_v28 = vld [vmem:[#allocation29_spill] sm:$0xff] }
 0x350   : > { %9220 = vst [vmem:[#allocation76_spill] sm:$0xff] %v6607_v58  ;;  %v1692_v47 = vmax.f32 %v1690_v14, %v1691_v25  ;;  %v6619_v24 = vrot.slane %v6144_v6, 4  ;;  %v1852_v7 = vmin.f32 %v1850_v43, %v1851_v59  ;;  %v1980_v40 = vadd.f32 %v1979_v29, %v1978_v52 }
 0x351   : > { %v2140_v37 = vadd.f32 %v2139_v57, %v2138_v48  ;;  %v2426_v19 = vsel %vm2411_vm8, %v1572_v44, -inf  ;;  %v1868_v21 = vmin.f32 %v1866_v35, %v1867_v51  ;;  %v1995_v30 = vrot.slane %v1994_v33, 2 }
 0x352   : > { %9223 = vst [vmem:[#allocation39_spill] sm:$0xff] %v6619_v24  ;;  %v2437_v27 = vmax.f32 %v2426_v19, %v6560_v61  ;;  %v2498_v39 = vsel %vm2411_vm8, %v1604_v50, 0.0  ;;  %v2156_v62 = vadd.f32 %v2155_v36, %v2154_v34  ;;  %v1981_v56 = vrot.slane %v1980_v40, 2 }
 0x353   : > { %v2141_v15 = vrot.slane %v2140_v37, 2  ;;  %v2463_v3 = vsel %vm2411_vm8, %v1588_v63, inf  ;;  %v1693_v25 = vrot.slane %v1692_v47, 2  ;;  %v2499_v43 = vadd.f32 %v2498_v39, %v6521_v5 }
 0x354   : > { %v2476_v14 = vmin.f32 %v2463_v3, %v6577_v54  ;;  %v2535_v57 = vsel %vm2411_vm8, %v1620_v46, 0.0  ;;  %v1709_v29 = vrot.slane %v1708_v31, 1  ;;  %v1853_v44 = vrot.slane %v1852_v7, 2 }
 0x355   : > { %v1982_v35 = vadd.f32 %v1981_v56, %v1980_v40  ;;  %v2142_v1 = vadd.f32 %v2141_v15, %v2140_v37  ;;  %vm9002_vm4 = vcmp.gt.f32.partialorder %v9224_v28, 0.0  ;;  %v1996_v19 = vadd.f32 %v1995_v30, %v1994_v33 }
 0x356   : > { %v6630_v61 = vadd.f32 %v6538_v41, %v2499_v43  ;;  %v2536_v50 = vadd.f32 %v2535_v57, %v6540_v0  ;;  %v1529_v63 = vmax.f32 %v1509_v18, 0.0  ;;  %v2157_v34 = vrot.slane %v2156_v62, 1 }
 0x357   : > { %v6635_v54 = vsel %vm2411_vm8, %v6552_v55, 0.0  ;;  %v6639_v5 = vsel %vm2411_vm8, %v6570_v60, 0.0  ;;  %v1983_v39 = vrot.slane %v1982_v35, 1  ;;  %v1869_v37 = vrot.slane %v1868_v21, 1 }
 0x358   : > { %9225 = vst [vmem:[#allocation40_spill] sm:$0xff] %v6630_v61  ;;  %9226 = vst [vmem:[#allocation77_spill] sm:$0xff] %v6635_v54  ;;  %v1694_v56 = vmax.f32 %v1692_v47, %v1693_v25  ;;  %v6642_v30 = vadd.f32 %v6567_v16, %v2536_v50  ;;  %v1577_v41 = vsel %vm8994_vm5, %v1529_v63, -1e+30  ;;  %v1854_v0 = vmin.f32 %v1852_v7, %v1853_v44  ;;  %v9236_v54 = vld [vmem:[#allocation43_spill] sm:$0xff] }
 0x359   : > { %v2143_v46 = vrot.slane %v2142_v1, 1  ;;  %v1593_v40 = vsel %vm8994_vm5, %v1529_v63, 1e+30  ;;  %v6649_v55 = vmul.f32 %v1529_v63, %v6596_v8  ;;  %v6651_v59 = vadd.f32 1e-05, %v2259_v12 }
 0x35a   : > { %v1710_v60 = vmax.f32 %v1708_v31, %v1709_v29  ;;  %v1997_v52 = vrot.slane %v1996_v19, 1  ;;  %v2436_v48 = vsel %vm2411_vm8, %v1577_v41, -inf  ;;  %v2158_v51 = vadd.f32 %v2157_v34, %v2156_v62  ;;  %v9229_v62 = vld [vmem:[#allocation34_spill] sm:$0xff] }
 0x35b   : > { %9227 = vst [vmem:[#allocation78_spill] sm:$0xff] %v6649_v55  ;;  %9228 = vst [vmem:[#allocation79_spill] sm:$0xff] %v6651_v59  ;;  %v1984_v16 = vadd.f32 %v1983_v39, %v1982_v35  ;;  %v6655_v33 = vmul.f32 %v6649_v55, %v1529_v63  ;;  %v1527_v18 = vmax.f32 %v1501_v53, 0.0  ;;  %v6657_v7 = vmin.f32 %v1868_v21, %v1869_v37  ;;  %v9231_v29 = vld [vmem:[#allocation46_spill] sm:$0xff] }
 0x35c   : > { %v1695_v36 = vrot.slane %v1694_v56, 1  ;;  %v6659_v47 = vmax.f32 %v2436_v48, %v2437_v27  ;;  %v2473_v15 = vsel %vm2411_vm8, %v1593_v40, inf  ;;  %v1855_v3 = vrot.slane %v1854_v0, 1 }
 0x35d   : > { %v2144_v12 = vadd.f32 %v2143_v46, %v2142_v1  ;;  %v1725_v31 = vsel %vm9043_vm1, %v1577_v41, -inf  ;;  %v2173_v25 = vsel %vm9043_vm1, %v6655_v33, 0.0  ;;  %v6666_v43 = vmul.f32 %v9229_v62, %v1710_v60 }
 0x35e   : > { %v6668_v57 = vadd.f32 %v1997_v52, %v1996_v19  ;;  %v2174_v53 = vrot.slane %v2173_v25, 4  ;;  %v6670_v21 = vmin.f32 %v2473_v15, %v2476_v14  ;;  %v6673_v27 = vmul.f32 %v2158_v51, %v9231_v29  ;;  %v6686_v14 = vpop.permute.xlu0 %859 }
 0x35f   : > { %9230 = vst [vmem:[#allocation34_spill] sm:$0xff] %v6666_v43  ;;  %v6676_v44 = vmul.f32 %v6607_v58, %v1984_v16  ;;  %v1885_v35 = vsel %vm9043_vm1, %v1593_v40, inf  ;;  %v1575_v1 = vsel %vm9002_vm4, %v1527_v18, -1e+30  ;;  %v1696_v50 = vmax.f32 %v1694_v56, %v1695_v36  ;;  %9233 = vst [vmem:[#allocation81_spill] sm:$0xff] %v6686_v14 }
 0x360   : > { %9232 = vst [vmem:[#allocation80_spill] sm:$0xff] %v6673_v27  ;;  %v1726_v63 = vrot.slane %v1725_v31, 4  ;;  %v1591_v19 = vsel %vm9002_vm4, %v1527_v18, 1e+30  ;;  %v6684_v34 = vmul.f32 %v1527_v18, %v9224_v28  ;;  %v1856_v39 = vmin.f32 %v1854_v0, %v1855_v3 }
 0x361   : > { %v2196_v37 = vmul.f32 %v2144_v12, %v6607_v58  ;;  %v2175_v41 = vadd.f32 %v2174_v53, %v2173_v25  ;;  %v1711_v46 = vsel %vm9043_vm1, %v1575_v1, -inf  ;;  %vm9015_vm5 = vcmp.gt.f32.partialorder %v6686_v14, 0.0  ;;  %v9234_v58 = vld [vmem:[#allocation38_spill] sm:$0xff] }
 0x362   : > { %v1886_v40 = vrot.slane %v1885_v35, 4  ;;  %v1623_v56 = vmul.f32 %v6684_v34, %v1527_v18  ;;  %v1712_v60 = vrot.slane %v1711_v46, 4  ;;  %v1871_v52 = vsel %vm9043_vm1, %v1591_v19, inf }
 0x363   : > { %v2228_v48 = vmul.f32 %v6676_v44, %v6676_v44  ;;  %v2013_v51 = vsel %vm9043_vm1, %v6649_v55, 0.0  ;;  %v1872_v0 = vrot.slane %v1871_v52, 4  ;;  %v1999_v16 = vsel %vm9043_vm1, %v6684_v34, 0.0 }
 0x364   : > { %v1727_v36 = vmax.f32 %v1725_v31, %v1726_v63  ;;  %v1713_v15 = vmax.f32 %v1711_v46, %v1712_v60  ;;  %v2000_v3 = vrot.slane %v1999_v16, 4  ;;  %v2159_v12 = vsel %vm9043_vm1, %v1623_v56, 0.0 }
 0x365   : > { %v2176_v25 = vrot.slane %v2175_v41, 2  ;;  %v2160_v18 = vrot.slane %v2159_v12, 4  ;;  %v2432_v53 = vsel %vm2411_vm8, %v1575_v1, -inf  ;;  %v2469_v28 = vsel %vm2411_vm8, %v1591_v19, inf }
 0x366   : > { %v6703_v8 = vmul.f32 %v9234_v58, %v1696_v50  ;;  %v6706_v43 = vmul.f32 %v1856_v39, %v9234_v58  ;;  %v1873_v55 = vmin.f32 %v1871_v52, %v1872_v0  ;;  %v2440_v59 = vmax.f32 %v2432_v53, %v6659_v47  ;;  %v9237_v0 = vld [vmem:[#allocation41_spill] sm:$0xff] }
 0x367   : > { %v2244_v31 = vsub.f32 %v2196_v37, %v2228_v48  ;;  %v2014_v63 = vrot.slane %v2013_v51, 4  ;;  %v1714_v46 = vrot.slane %v1713_v15, 2  ;;  %v2477_v60 = vmin.f32 %v2469_v28, %v6670_v21  ;;  %v9238_v21 = vld [vmem:[#allocation42_spill] sm:$0xff] }
 0x368   : > { %9235 = vst [vmem:[#allocation82_spill] sm:$0xff] %v6703_v8  ;;  %vm9014_vm4 = vcmp.gt.f32.partialorder %v9236_v54, 0.0  ;;  %v1728_v61 = vrot.slane %v1727_v36, 2  ;;  %v2001_v1 = vadd.f32 %v2000_v3, %v1999_v16  ;;  %v2161_v27 = vadd.f32 %v2160_v18, %v2159_v12 }
 0x369   : > { %v2540_v50 = vadd.f32 %v6639_v5, %v6642_v30  ;;  %v6713_v19 = vmin.f32 %v1885_v35, %v1886_v40  ;;  %v2177_v39 = vadd.f32 %v2176_v25, %v2175_v41  ;;  %v2541_v52 = vsel %vm2411_vm8, %v1623_v56, 0.0 }
 0x36a   : > { %v1512_v47 = vadd.f32 %v6612_v49, %v9237_v0  ;;  %v1874_v48 = vrot.slane %v1873_v55, 2  ;;  %v1504_v16 = vadd.f32 %v6612_v49, %v9238_v21  ;;  %v2260_v3 = vmax.f32 %v2244_v31, 0.0 }
 0x36b   : > { %v6719_v28 = vadd.f32 %v2541_v52, %v2540_v50  ;;  %v6723_v12 = vadd.f32 %v2014_v63, %v2013_v51  ;;  %v1715_v5 = vmax.f32 %v1713_v15, %v1714_v46  ;;  %v6725_v35 = vmax.f32 %v1727_v36, %v1728_v61 }
 0x36c   : > { %v1530_v30 = vmax.f32 %v1512_v47, 0.0  ;;  %v6729_v41 = vsel %vm2411_vm8, %v6655_v33, 0.0  ;;  %v2002_v40 = vrot.slane %v2001_v1, 2  ;;  %v2162_v56 = vrot.slane %v2161_v27, 2 }
 0x36d   : > { %9239 = vst [vmem:[#allocation41_spill] sm:$0xff] %v6725_v35  ;;  %v2178_v18 = vrot.slane %v2177_v39, 1  ;;  %v1528_v49 = vmax.f32 %v1504_v16, 0.0  ;;  %v1875_v31 = vmin.f32 %v1873_v55, %v1874_v48  ;;  %v6740_v33 = vadd.f32 1e-05, %v2260_v3 }
 0x36e   : > { %v1578_v53 = vsel %vm9015_vm5, %v1530_v30, -1e+30  ;;  %v1594_v51 = vsel %vm9015_vm5, %v1530_v30, 1e+30  ;;  %v6737_v61 = vmul.f32 %v1530_v30, %v6686_v14  ;;  %v1716_v63 = vrot.slane %v1715_v5, 1 }
 0x36f   : > { %v2438_v36 = vsel %vm2411_vm8, %v1578_v53, -inf  ;;  %9241 = vst [vmem:[#allocation83_spill] sm:$0xff] %v6740_v33  ;;  %v6746_v52 = vadd.f32 %v2002_v40, %v2001_v1  ;;  %v2163_v55 = vadd.f32 %v2162_v56, %v2161_v27  ;;  %v6749_v47 = vadd.f32 %v2178_v18, %v2177_v39 }
 0x370   : > { %9240 = vst [vmem:[#allocation42_spill] sm:$0xff] %v6737_v61  ;;  %v6743_v46 = vmax.f32 %v2438_v36, %v2440_v59  ;;  %v1626_v0 = vmul.f32 %v6737_v61, %v1530_v30  ;;  %v6753_v48 = vsel %vm2411_vm8, %v6684_v34, 0.0  ;;  %v2475_v21 = vsel %vm2411_vm8, %v1594_v51, inf }
 0x371   : > { %v1576_v16 = vsel %vm9014_vm4, %v1528_v49, -1e+30  ;;  %v1876_v59 = vrot.slane %v1875_v31, 1  ;;  %v6759_v36 = vmin.f32 %v2475_v21, %v2477_v60  ;;  %v1592_v27 = vsel %vm9014_vm4, %v1528_v49, 1e+30 }
 0x372   : > { %9242 = vst [vmem:[#allocation84_spill] sm:$0xff] %v6743_v46  ;;  %v2180_v3 = vsel %vm9043_vm1, %v1626_v0, 0.0  ;;  %v6763_v1 = vmax.f32 %v1715_v5, %v1716_v63  ;;  %v6766_v30 = vmul.f32 %v1528_v49, %v9236_v54  ;;  %v6769_v34 = vrot.slane %v6144_v6, 5 }
 0x373   : > { %9243 = vst [vmem:[#allocation85_spill] sm:$0xff] %v6759_v36  ;;  %v2181_v39 = vrot.slane %v2180_v3, 4  ;;  %v2164_v56 = vrot.slane %v2163_v55, 1  ;;  %v1718_v18 = vsel %vm9043_vm1, %v1576_v16, -inf  ;;  %v1878_v60 = vsel %vm9043_vm1, %v1592_v27, inf }
 0x374   : > { %9244 = vst [vmem:[#allocation86_spill] sm:$0xff] %v6763_v1  ;;  %9245 = vst [vmem:[#allocation87_spill] sm:$0xff] %v6769_v34  ;;  %v1732_v21 = vsel %vm9043_vm1, %v1578_v53, -inf  ;;  %v1624_v50 = vmul.f32 %v6766_v30, %v1528_v49  ;;  %v6777_v5 = vsel %vm2411_vm8, %v1576_v16, -inf  ;;  %v6780_v63 = vsel %vm2411_vm8, %v1592_v27, inf }
 0x375   : > { %9246 = vst [vmem:[#allocation88_spill] sm:$0xff] %v6777_v5  ;;  %9247 = vst [vmem:[#allocation89_spill] sm:$0xff] %v6780_v63  ;;  %v1892_v15 = vsel %vm9043_vm1, %v1594_v51, inf  ;;  %v9248_v25 = vrot.slane %v6374_v32, 2  ;;  %v2182_v54 = vadd.f32 %v2181_v39, %v2180_v3  ;;  %v1719_v49 = vrot.slane %v1718_v18, 4 }
 0x376   : > { %v1879_v14 = vrot.slane %v1878_v60, 4  ;;  %v9249_v16 = vrot.slane %v6507_v17, 1  ;;  %v2165_v1 = vadd.f32 %v2164_v56, %v2163_v55  ;;  %v2166_v51 = vsel %vm9043_vm1, %v1624_v50, 0.0 }
 0x377   : > { %v1833_v53 = vmin.f32 %v6374_v32, %v9248_v25  ;;  %v2543_v35 = vsel %vm2411_vm8, %v1624_v50, 0.0  ;;  %v1839_v40 = vrot.slane %v6449_v45, 2  ;;  %v1733_v46 = vrot.slane %v1732_v21, 4 }
 0x378   : > { %v1828_v27 = vmin.f32 %v6507_v17, %v9249_v16  ;;  %v1893_v37 = vrot.slane %v1892_v15, 4  ;;  %v2006_v36 = vsel %vm9043_vm1, %v6766_v30, 0.0  ;;  %v6798_v25 = vmin.f32 %v1875_v31, %v1876_v59 }
 0x379   : > { %v1834_v32 = vrot.slane %v1833_v53, 1  ;;  %v2167_v3 = vrot.slane %v2166_v51, 4  ;;  %v2544_v39 = vadd.f32 %v2543_v35, %v6719_v28  ;;  %v1840_v17 = vmin.f32 %v6449_v45, %v1839_v40 }
 0x37a   : > { %v6804_v55 = vsel %vm9043_vm1, %v6737_v61, 0.0  ;;  %v2183_v50 = vrot.slane %v2182_v54, 2  ;;  %v1720_v56 = vmax.f32 %v1718_v18, %v1719_v49  ;;  %v1880_v16 = vmin.f32 %v1878_v60, %v1879_v14  ;;  %v9251_v18 = vld [vmem:[#allocation31_spill] sm:$0xff] }
 0x37b   : > { %v2007_v63 = vrot.slane %v2006_v36, 4  ;;  %v2168_v5 = vadd.f32 %v2167_v3, %v2166_v51  ;;  %v6807_v8 = vadd.f32 %v6729_v41, %v2544_v39  ;;  %v1841_v33 = vrot.slane %v1840_v17, 1  ;;  %v9253_v51 = vld [vmem:[#allocation35_spill] sm:$0xff]  ;;  %v9256_v3 = vld [vmem:[#allocation36_spill] sm:$0xff] }
 0x37c   : > { %v6810_v31 = vmul.f32 %v2165_v1, %v6619_v24  ;;  %v6812_v59 = vmax.f32 %v1732_v21, %v1733_v46  ;;  %v6814_v28 = vmin.f32 %v1892_v15, %v1893_v37  ;;  %v1835_v45 = vmin.f32 %v1833_v53, %v1834_v32  ;;  %v9252_v1 = vld [vmem:[#allocation32_spill] sm:$0xff]  ;;  %v9254_v32 = vld [vmem:[#allocation50_spill] sm:$0xff] }
 0x37d   : > { %v2021_v35 = vrot.slane %v6804_v55, 4  ;;  %v2169_v40 = vrot.slane %v2168_v5, 2  ;;  %v1842_v61 = vmin.f32 %v1840_v17, %v1841_v33  ;;  %v1903_v14 = vmul.f32 %v6434_v11, %v9251_v18 }
 0x37e   : > { %9250 = vst [vmem:[#allocation90_spill] sm:$0xff] %v6812_v59  ;;  %v6820_v60 = vsel %vm2411_vm8, %v1626_v0, 0.0  ;;  %v1902_v41 = vmul.f32 %v6323_v42, %v6091_v23  ;;  %v1904_v49 = vmul.f32 %v1828_v27, %v9252_v1  ;;  %vm9050_vm4 = vcmask 1041409   ;;  %v9257_v42 = vld [vmem:[#allocation47_spill] sm:$0xff] }
 0x37f   : > { %v2184_v46 = vadd.f32 %v2183_v50, %v2182_v54  ;;  %v1721_v37 = vrot.slane %v1720_v56, 2  ;;  %v1881_v15 = vrot.slane %v1880_v16, 2  ;;  %v6825_v21 = vadd.f32 %v2007_v63, %v2006_v36 }
 0x380   : > { %v2170_v53 = vadd.f32 %v2169_v40, %v2168_v5  ;;  %v1905_v33 = vmul.f32 %v1835_v45, %v9253_v51  ;;  %vm9049_vm5 = vcmask 1042434   ;;  %v9255_v11 = vrot.slane %v6346_v22, 7 }
 0x381   : > { %v1906_v39 = vmul.f32 %v1842_v61, %v9256_v3  ;;  %vm9048_vm3 = vcmask 1043459   ;;  %v2634_v27 = vrot.slane %v9257_v42, 6  ;;  %v2638_v17 = vrot.slane %v1903_v14, 4 }
 0x382   : > { %v2633_v0 = vsel %vm9050_vm4, %v9255_v11, %v9254_v32  ;;  %vm9047_vm0 = vcmask 1044484   ;;  %vm9046_vm15 = vcmask 1045509   ;;  %v2636_v54 = vrot.slane %v1902_v41, 5 }
 0x383   : > { %v2640_v36 = vrot.slane %v1904_v49, 3  ;;  %vm9045_vm14 = vcmask 1046534   ;;  %v2635_v5 = vsel %vm9049_vm5, %v2634_v27, %v2633_v0  ;;  %v1955_v63 = vrot.slane %v6511_v13, 1 }
 0x384   : > { %v9258_v22 = vrot.slane %v6376_v10, 2  ;;  %vm9044_vm13 = vcmask 1047559   ;;  %v2637_v61 = vsel %vm9048_vm3, %v2636_v54, %v2635_v5  ;;  %v9259_v45 = vrot.slane %v6416_v20, 1 }
 0x385   : > { %v1967_v14 = vrot.slane %v6453_v9, 2  ;;  %v2639_v41 = vsel %vm9047_vm0, %v2638_v17, %v2637_v61  ;;  %v2642_v49 = vrot.slane %v1905_v33, 2  ;;  %v2644_v32 = vrot.slane %v1906_v39, 1 }
 0x386   : > { %v1961_v50 = vadd.f32 %v9258_v22, %v6376_v10  ;;  %v1949_v40 = vadd.f32 %v9259_v45, %v6416_v20  ;;  %v2641_v0 = vsel %vm9046_vm15, %v2640_v36, %v2639_v41  ;;  %v1956_v42 = vadd.f32 %v1955_v63, %v6511_v13  ;;  %v9260_v13 = vld [vmem:[#allocation15_spill] sm:$0xff]  ;;  %v9262_v63 = vld [vmem:[#allocation22_spill] sm:$0xff]  ;;  %v9265_v41 = vld [vmem:[#allocation33_spill] sm:$0xff] }
 0x387   : > { %v1968_v10 = vadd.f32 %v1967_v14, %v6453_v9  ;;  %v2062_v27 = vmul.f32 %v6098_v26, %v6338_v2  ;;  %v2185_v54 = vrot.slane %v2184_v46, 1  ;;  %v2171_v5 = vrot.slane %v2170_v53, 1  ;;  %v9263_v2 = vld [vmem:[#allocation53_spill] sm:$0xff]  ;;  %v9264_v14 = vld [vmem:[#allocation18_spill] sm:$0xff] }
 0x388   : > { %v1962_v11 = vrot.slane %v1961_v50, 1  ;;  %v2643_v20 = vsel %vm9045_vm14, %v2642_v49, %v2641_v0  ;;  %v6851_v45 = vmax.f32 %v1720_v56, %v1721_v37  ;;  %v2063_v17 = vmul.f32 %v6124_v38, %v1949_v40 }
 0x389   : > { %v2645_v33 = vsel %vm9044_vm13, %v2644_v32, %v2643_v20  ;;  %v1969_v39 = vrot.slane %v1968_v10, 1  ;;  %v1882_v36 = vmin.f32 %v1880_v16, %v1881_v15  ;;  %v6857_v9 = vrot.slane %v9260_v13, 6  ;;  %v5578_v16 = vld [vmem:[%s8901_s11 + $0x80] sm:$0xff]   ;;  %v9267_v20 = vld [vmem:[#allocation45_spill] sm:$0xff] }
 0x38a   : > { %v1963_v22 = vadd.f32 %v1962_v11, %v1961_v50  ;;  %2660 = vrot.lane.b32.xlu1 %v2645_v33, %s5727_s5  ;;  %v2204_v61 = vmul.f32 %v9263_v2, %v9262_v63  ;;  %v2205_v49 = vmul.f32 %v9265_v41, %v9264_v14  ;;  %v6864_v56 = vrot.slane %v9260_v13, 7  ;;  %v9268_v33 = vld [vmem:[#allocation16_spill] sm:$0xff]  ;;  %3031 = vmatpush1.bf16.msra.mxu1 %v5578_v16 }
 0x38b   : > { %9261 = vst [vmem:[#allocation50_spill] sm:$0xff] %v6857_v9  ;;  %v1970_v50 = vadd.f32 %v1969_v39, %v1968_v10  ;;  %v2064_v37 = vmul.f32 %v6149_v4, %v1956_v42  ;;  %v2206_v40 = vmul.f32 %v2062_v27, %v6091_v23  ;;  %v2009_v32 = vrot.slane %v6825_v21, 2  ;;  %v5579_v41 = vld [vmem:[%s8901_s11 + $0x88] sm:$0xff]  }
 0x38c   : > { %9266 = vst [vmem:[#allocation47_spill] sm:$0xff] %v6864_v56  ;;  %v2172_v11 = vadd.f32 %v2171_v5, %v2170_v53  ;;  %v2065_v0 = vmul.f32 %v6857_v9, %v1963_v22  ;;  %v2203_v39 = vmul.f32 %v9268_v33, %v9267_v20  ;;  %v2207_v42 = vmul.f32 %v2063_v17, %v9251_v18 }
 0x38d   : > { %v6875_v10 = vmul.f32 %v6864_v56, %v1970_v50  ;;  %v2682_v2 = vrot.slane %v2204_v61, 7  ;;  %v6886_v53 = vadd.f32 %v2021_v35, %v6804_v55  ;;  %v6888_v5 = vadd.f32 %v2185_v54, %v2184_v46 }
 0x38e   : > { %v2684_v50 = vrot.slane %v2205_v49, 6  ;;  %v9269_v15 = vmov 0   ;;  %v1883_v20 = vrot.slane %v1882_v36, 1  ;;  %v2208_v61 = vmul.f32 %v2064_v37, %v9252_v1 }
 0x38f   : > { %3032 = vmatprep.subr.bf16.mxu1 %v9269_v15  ;;  %v2683_v16 = vsel %vm9050_vm4, %v2682_v2, %v2203_v39  ;;  %v2686_v4 = vrot.slane %v2206_v40, 5  ;;  %v2209_v38 = vmul.f32 %v2065_v0, %v9253_v51  ;;  %v2210_v26 = vmul.f32 %v6875_v10, %v9256_v3  ;;  %v9270_v40 = vld [vmem:[#allocation60_spill] sm:$0xff] }
 0x390   : > { %v6897_v55 = vmul.f32 %v2062_v27, %v2062_v27  ;;  %v2685_v35 = vsel %vm9049_vm5, %v2684_v50, %v2683_v16  ;;  %v2010_v46 = vadd.f32 %v2009_v32, %v6825_v21  ;;  %v6902_v54 = vmul.f32 %v2172_v11, %v6769_v34  ;;  %3033 = vmatpush1.bf16.msra.mxu1 %v5579_v41  ;;  %v9271_v2 = vld [vmem:[#allocation64_spill] sm:$0xff] }
 0x391   : > { %v2687_v49 = vsel %vm9048_vm3, %v2686_v4, %v2685_v35  ;;  %v2688_v22 = vrot.slane %v2207_v42, 4  ;;  %v6907_v39 = vmul.f32 %v9270_v40, %v6857_v9  ;;  %v6911_v13 = vmul.f32 %v9271_v2, %v6864_v56  ;;  %3034 = vmatprep.subr.bf16.mxu1 %v9269_v15  ;;  %v9272_v42 = vld [vmem:[#allocation57_spill] sm:$0xff] }
 0x392   : > { %v6913_v27 = vmul.f32 %v2063_v17, %v2063_v17  ;;  %v6915_v50 = vmul.f32 %v2064_v37, %v2064_v37  ;;  %v6918_v21 = vmul.f32 %v2065_v0, %v2065_v0  ;;  %v2690_v32 = vrot.slane %v2208_v61, 3  ;;  %v9273_v40 = vld [vmem:[#allocation17_spill] sm:$0xff] }
 0x393   : > { %v2689_v4 = vsel %vm9047_vm0, %v2688_v22, %v2687_v49  ;;  %v1884_v11 = vmin.f32 %v1882_v36, %v1883_v20  ;;  %v2238_v41 = vsub.f32 %v9272_v42, %v6897_v55  ;;  %v2692_v16 = vrot.slane %v2209_v38, 2  ;;  %v6945_v55 = vld [vmem:[%s8901_s11 + $0x40] sm:$0xff]   ;;  %v5581_v49 = vld [vmem:[%s8901_s11 + $0x90] sm:$0xff]  }
 0x394   : > { %v2694_v35 = vrot.slane %v2210_v26, 1  ;;  %v6924_v2 = vrot.slane %v9273_v40, 4  ;;  %v2691_v17 = vsel %vm9046_vm15, %v2690_v32, %v2689_v4  ;;  %v6928_v37 = vrot.slane %v9273_v40, 5  ;;  %9278 = vst [vmem:[#allocation60_spill] sm:$0xff] %v6945_v55  ;;  %v9279_v42 = vld [vmem:[#allocation75_spill] sm:$0xff]  ;;  %5291 = vmatprep.subr.bf16.mxu0 %v6945_v55  ;;  %3035 = vmatpush1.bf16.msra.mxu1 %v5581_v49 }
 0x395   : > { %v6931_v0 = vrot.slane %v9273_v40, 6  ;;  %v9277_v22 = vrot.slane %v6713_v19, 2  ;;  %v2693_v20 = vsel %vm9045_vm14, %v2692_v16, %v2691_v17  ;;  %v1895_v38 = vrot.slane %v6814_v28, 2  ;;  %3036 = vmatprep.subr.bf16.mxu1 %v9269_v15 }
 0x396   : > { %9274 = vst [vmem:[#allocation53_spill] sm:$0xff] %v6924_v2  ;;  %9275 = vst [vmem:[#allocation33_spill] sm:$0xff] %v6928_v37  ;;  %v1910_v26 = vmul.f32 %v6657_v7, %v9229_v62  ;;  %v1911_v61 = vmul.f32 %v6798_v25, %v6924_v2  ;;  %v2695_v4 = vsel %vm9044_vm13, %v2694_v35, %v2693_v20  ;;  %v9280_v25 = vrot.slane %v6706_v43, 7 }
 0x397   : > { %9276 = vst [vmem:[#allocation45_spill] sm:$0xff] %v6931_v0  ;;  %v1889_v36 = vmin.f32 %v6713_v19, %v9277_v22  ;;  %v5582_v19 = vld [vmem:[%s8901_s11] sm:$0xff]   ;;  %v1912_v7 = vmul.f32 %v1884_v11, %v6928_v37  ;;  %2710 = vrot.lane.b32.xlu1 %v2695_v4, %s5730_s22  ;;  %v1896_v17 = vmin.f32 %v6814_v28, %v1895_v38  ;;  %v9282_v11 = vrot.slane %v6746_v52, 1 }
 0x398   : > { %v2647_v16 = vsel %vm9050_vm4, %v9280_v25, %v9279_v42  ;;  %v9281_v22 = vld [vmem:[#allocation71_spill] sm:$0xff]  ;;  %v2650_v9 = vrot.slane %v1910_v26, 5  ;;  %v2652_v59 = vrot.slane %v1911_v61, 4  ;;  %v2011_v43 = vrot.slane %v2010_v46, 1  ;;  %5292 = vmatpush3.bf16.msra.mxu0 %v5582_v19 }
 0x399   : > { %v1890_v32 = vrot.slane %v1889_v36, 1  ;;  %v2648_v56 = vrot.slane %v9281_v22, 6  ;;  %v2654_v20 = vrot.slane %v1912_v7, 3  ;;  %v2005_v3 = vadd.f32 %v9282_v11, %v6746_v52 }
 0x39a   : > { %v1897_v42 = vrot.slane %v1896_v17, 1  ;;  %v9283_v28 = vrot.slane %v6723_v12, 2  ;;  %v2023_v26 = vrot.slane %v6886_v53, 2  ;;  %v2012_v49 = vadd.f32 %v2011_v43, %v2010_v46 }
 0x39b   : > { %v1891_v35 = vmin.f32 %v1889_v36, %v1890_v32  ;;  %v2649_v4 = vsel %vm9049_vm5, %v2648_v56, %v2647_v16  ;;  %v6973_v36 = vrot.slane %v9273_v40, 7  ;;  %v9286_v16 = vld [vmem:[#allocation68_spill] sm:$0xff]  ;;  %v2071_v46 = vmul.f32 %v6619_v24, %v2005_v3 }
 0x39c   : > { %v2017_v38 = vadd.f32 %v9283_v28, %v6723_v12  ;;  %v2651_v52 = vsel %vm9048_vm3, %v2650_v9, %v2649_v4  ;;  %v1898_v19 = vmin.f32 %v1896_v17, %v1897_v42  ;;  %v2024_v7 = vadd.f32 %v2023_v26, %v6886_v53  ;;  %v9285_v12 = vld [vmem:[#allocation63_spill] sm:$0xff]  ;;  %v9324_v24 = vld [vmem:[#allocation48_spill] sm:$0xff] }
 0x39d   : > { %9284 = vst [vmem:[#allocation64_spill] sm:$0xff] %v6973_v36  ;;  %v1913_v61 = vmul.f32 %v1891_v35, %v6931_v0  ;;  %v2653_v32 = vsel %vm9047_vm0, %v2652_v59, %v2651_v52  ;;  %v2239_v25 = vsub.f32 %v9285_v12, %v6913_v27  ;;  %v2240_v22 = vsub.f32 %v9286_v16, %v6915_v50 }
 0x39e   : > { %v2018_v56 = vrot.slane %v2017_v38, 1  ;;  %v2655_v11 = vsel %vm9046_vm15, %v2654_v20, %v2653_v32  ;;  %v1914_v35 = vmul.f32 %v1898_v19, %v6973_v36  ;;  %v2025_v9 = vrot.slane %v2024_v7, 1 }
 0x39f   : > { %v2656_v28 = vrot.slane %v1913_v61, 2  ;;  %v2241_v59 = vsub.f32 %v6907_v39, %v6918_v21  ;;  %v6990_v17 = vrot.slane %v6144_v6, 6  ;;  %v2070_v27 = vmul.f32 %v9231_v29, %v6668_v57  ;;  %v5583_v57 = vld [vmem:[%s8901_s11 + $0x48] sm:$0xff]   ;;  %v9328_v29 = vld [vmem:[#allocation54_spill] sm:$0xff] }
 0x3a0   : > { %v2019_v55 = vadd.f32 %v2018_v56, %v2017_v38  ;;  %v2226_v50 = vmul.f32 %v6875_v10, %v6875_v10  ;;  %v2658_v20 = vrot.slane %v1914_v35, 1  ;;  %v2026_v43 = vadd.f32 %v2025_v9, %v2024_v7  ;;  %v5584_v10 = vld [vmem:[%s8901_s11 + $0x98] sm:$0xff]   ;;  %v9289_v61 = vld [vmem:[#allocation28_spill] sm:$0xff]  ;;  %5293 = vmatprep.subr.bf16.mxu0 %v5583_v57 }
 0x3a1   : > { %v2657_v53 = vsel %vm9045_vm14, %v2656_v28, %v2655_v11  ;;  %9287 = vst [vmem:[#allocation57_spill] sm:$0xff] %v6990_v17  ;;  %v2072_v42 = vmul.f32 %v6769_v34, %v2012_v49  ;;  %v2254_v4 = vmax.f32 %v2238_v41, 0.0  ;;  %v6998_v3 = vrot.slane %v6144_v6, 7  ;;  %v5585_v41 = vld [vmem:[%s8901_s11 + $0x8] sm:$0xff]   ;;  %v7019_v49 = vld [vmem:[%s8901_s11 + $0x50] sm:$0xff]   ;;  %3037 = vmatpush1.bf16.msra.mxu1 %v5584_v10 }
 0x3a2   : > { %v2073_v39 = vmul.f32 %v6990_v17, %v2019_v55  ;;  %v2212_v21 = vmul.f32 %v6676_v44, %v9234_v58  ;;  %v2255_v38 = vmax.f32 %v2239_v25, 0.0  ;;  %v2659_v26 = vsel %vm9044_vm13, %v2658_v20, %v2657_v53  ;;  %v9290_v55 = vld [vmem:[#allocation66_spill] sm:$0xff]  ;;  %v9291_v25 = vld [vmem:[#allocation69_spill] sm:$0xff]  ;;  %5294 = vmatpush3.bf16.msra.mxu0 %v5585_v41  ;;  %3038 = vmatprep.subr.bf16.mxu1 %v9269_v15 }
 0x3a3   : > { %9288 = vst [vmem:[#allocation75_spill] sm:$0xff] %v6998_v3  ;;  %v2213_v52 = vmul.f32 %v9290_v55, %v9289_v61  ;;  %v2215_v44 = vmul.f32 %v2071_v46, %v6924_v2  ;;  %v2256_v19 = vmax.f32 %v2240_v22, 0.0  ;;  %v2257_v32 = vmax.f32 %v2241_v59, 0.0  ;;  %2662 = vrot.lane.b32.xlu0 %v2659_v26, %s5727_s5  ;;  %v5587_v22 = vld [vmem:[%s8901_s11 + $0xa0] sm:$0xff]   ;;  %5295 = vmatprep.subr.bf16.mxu0 %v7019_v49 }
 0x3a4   : > { %v2074_v56 = vmul.f32 %v6998_v3, %v2026_v43  ;;  %v2214_v7 = vmul.f32 %v2070_v27, %v9229_v62  ;;  %v2242_v12 = vsub.f32 %v6911_v13, %v2226_v50  ;;  %v2211_v16 = vmul.f32 %v9273_v40, %v9291_v25  ;;  %v7037_v13 = vld [vmem:[%s8901_s11 + $0x10] sm:$0xff]  }
 0x3a5   : > { %v2216_v11 = vmul.f32 %v2072_v42, %v6928_v37  ;;  %v2696_v28 = vrot.slane %v2212_v21, 7  ;;  %v7031_v35 = vadd.f32 1e-05, %v2254_v4  ;;  %v2217_v9 = vmul.f32 %v2073_v39, %v6931_v0  ;;  %3039 = vmatpush1.bf16.msra.mxu1 %v5587_v22 }
 0x3a6   : > { %v2230_v59 = vmul.f32 %v2070_v27, %v2070_v27  ;;  %v2231_v53 = vmul.f32 %v2071_v46, %v2071_v46  ;;  %v2232_v50 = vmul.f32 %v2072_v42, %v2072_v42  ;;  %v2698_v43 = vrot.slane %v2213_v52, 6  ;;  %5296 = vmatpush3.bf16.msra.mxu0 %v7037_v13  ;;  %3040 = vmatprep.subr.bf16.mxu1 %v9269_v15 }
 0x3a7   : > { %v2697_v20 = vsel %vm9050_vm4, %v2696_v28, %v2211_v16  ;;  %v2702_v21 = vrot.slane %v2215_v44, 4  ;;  %v2201_v4 = vmul.f32 %v6749_v47, %v6990_v17  ;;  %v2218_v46 = vmul.f32 %v2074_v56, %v6973_v36  ;;  %v9292_v44 = vld [vmem:[#allocation80_spill] sm:$0xff] }
 0x3a8   : > { %v2233_v27 = vmul.f32 %v2073_v39, %v2073_v39  ;;  %v2700_v57 = vrot.slane %v2214_v7, 5  ;;  %v7045_v10 = vadd.f32 1e-05, %v2255_v38  ;;  %v7049_v42 = vmul.f32 %v6888_v5, %v6998_v3  ;;  %v9303_v3 = vld [vmem:[#allocation83_spill] sm:$0xff] }
 0x3a9   : > { %v2699_v41 = vsel %vm9049_vm5, %v2698_v43, %v2697_v20  ;;  %v2704_v26 = vrot.slane %v2216_v11, 3  ;;  %v2258_v55 = vmax.f32 %v2242_v12, 0.0  ;;  %v7052_v52 = vmul.f32 %v2074_v56, %v2074_v56  ;;  %v9293_v11 = vld [vmem:[#allocation52_spill] sm:$0xff]  ;;  %v9296_v20 = vld [vmem:[#allocation51_spill] sm:$0xff] }
 0x3aa   : > { %v2246_v25 = vsub.f32 %v9292_v44, %v2230_v59  ;;  %v2701_v47 = vsel %vm9048_vm3, %v2700_v57, %v2699_v41  ;;  %v2247_v39 = vsub.f32 %v6810_v31, %v2231_v53  ;;  %v2248_v5 = vsub.f32 %v6902_v54, %v2232_v50  ;;  %v9295_v53 = vld [vmem:[#allocation59_spill] sm:$0xff] }
 0x3ab   : > { %v2703_v38 = vsel %vm9047_vm0, %v2702_v21, %v2701_v47  ;;  %v2706_v7 = vrot.slane %v2217_v9, 2  ;;  %v2249_v16 = vsub.f32 %v2201_v4, %v2233_v27  ;;  %v2708_v56 = vrot.slane %v2218_v46, 1 }
 0x3ac   : > { %v2705_v12 = vsel %vm9046_vm15, %v2704_v26, %v2703_v38  ;;  %5615 = vrsqrt.f32 %v9293_v11  ;;  %v9294_v28 = vrot.slane %v6851_v45, 1  ;;  %v7068_v59 = vadd.f32 1e-05, %v2256_v19  ;;  %v9297_v26 = vld [vmem:[#allocation40_spill] sm:$0xff] }
 0x3ad   : > { %v2707_v31 = vsel %vm9045_vm14, %v2706_v7, %v2705_v12  ;;  %5617 = vrsqrt.f32 %v9295_v53  ;;  %v7072_v54 = vadd.f32 1e-05, %v2257_v32  ;;  %v7074_v9 = vadd.f32 1e-05, %v2258_v55  ;;  %v9298_v55 = vld [vmem:[#allocation77_spill] sm:$0xff] }
 0x3ae   : > { %v7066_v22 = vmax.f32 %v6851_v45, %v9294_v28  ;;  %v2709_v50 = vsel %vm9044_vm13, %v2708_v56, %v2707_v31  ;;  %5619 = vrsqrt.f32 %v9296_v20  ;;  %v7080_v21 = vmax.f32 %v2246_v25, 0.0 }
 0x3af   : > { %v7082_v45 = vmax.f32 %v2247_v39, 0.0  ;;  %2712 = vrot.lane.b32.xlu0 %v2709_v50, %s5730_s22  ;;  %5621 = vrsqrt.f32 %v7031_v35  ;;  %v7086_v19 = vmax.f32 %v2248_v5, 0.0  ;;  %v7088_v32 = vmax.f32 %v2249_v16, 0.0  ;;  %v9299_v16 = vld [vmem:[#allocation4_spill] sm:$0xff]  ;;  %v9301_v50 = vld [vmem:[#allocation78_spill] sm:$0xff] }
 0x3b0   : > { %vm2285_vm12 = vcmp.eq.f32.partialorder %v9293_v11, inf  ;;  %5623 = vrsqrt.f32 %v7045_v10  ;;  %vm2287_vm11 = vcmp.eq.f32.partialorder %v9293_v11, 0.0  ;;  %v2288_v4 = vand.u32 2147483648, %v9293_v11 }
 0x3b1   : > { %vm2292_vm10 = vcmp.eq.f32.partialorder %v9295_v53, inf  ;;  %5625 = vrsqrt.f32 %v7068_v59  ;;  %vm2294_vm9 = vcmp.eq.f32.partialorder %v9295_v53, 0.0  ;;  %v2295_v46 = vand.u32 2147483648, %v9295_v53 }
 0x3b2   : > { %vm2299_vm6 = vcmp.eq.f32.partialorder %v9296_v20, inf  ;;  %5627 = vrsqrt.f32 %v7072_v54  ;;  %vm2301_vm7 = vcmp.eq.f32.partialorder %v9296_v20, 0.0  ;;  %v2302_v27 = vand.u32 2147483648, %v9296_v20 }
 0x3b3   : > { %vm2306_vm2 = vcmp.eq.f32.partialorder %v7031_v35, inf  ;;  %5629 = vrsqrt.f32 %v7074_v9  ;;  %vm2308_vm1 = vcmp.eq.f32.partialorder %v7031_v35, 0.0  ;;  %v2309_v57 = vand.u32 2147483648, %v7031_v35 }
 0x3b4   : > { %vm2313_vm13 = vcmp.eq.f32.partialorder %v7045_v10, inf  ;;  %v2316_v41 = vand.u32 2147483648, %v7045_v10  ;;  %v2503_v44 = vadd.f32 %v9298_v55, %v9297_v26  ;;  %vm2315_vm14 = vcmp.eq.f32.partialorder %v7045_v10, 0.0 }
 0x3b5   : > { %v2323_v25 = vand.u32 2147483648, %v7068_v59  ;;  %v2506_v47 = vsel %vm2411_vm8, %v6766_v30, 0.0  ;;  %v7117_v39 = vadd.f32 %v6820_v60, %v6807_v8  ;;  %vm2322_vm0 = vcmp.eq.f32.partialorder %v7068_v59, 0.0  ;;  %v9300_v60 = vld [vmem:[#allocation79_spill] sm:$0xff] }
 0x3b6   : > { %v5616_v5 = vpop.eup %5615  ;;  %v2330_v38 = vand.u32 2147483648, %v7072_v54  ;;  %v2505_v7 = vadd.f32 %v6753_v48, %v2503_v44  ;;  %vm961_vm5 = vcmp.gt.f32.partialorder %v9299_v16, 0.0  ;;  %vm2329_vm4 = vcmp.eq.f32.partialorder %v7072_v54, 0.0 }
 0x3b7   : > { %v5618_v12 = vpop.eup %5617  ;;  %v2284_v56 = vmul.f32 %v5616_v5, %v9293_v11  ;;  %vm2334_vm15 = vcmp.eq.f32.partialorder %v7074_v9, inf  ;;  %v2337_v8 = vand.u32 2147483648, %v7074_v9  ;;  %v962_v30 = vsel %vm961_vm5, %v9299_v16, 1.0  ;;  %v9302_v16 = vld [vmem:[#allocation42_spill] sm:$0xff] }
 0x3b8   : > { %5631 = vrsqrt.f32 %v9300_v60  ;;  %v5620_v28 = vpop.eup %5619  ;;  %v2291_v31 = vmul.f32 %v5618_v12, %v9295_v53  ;;  %vm2336_vm3 = vcmp.eq.f32.partialorder %v7074_v9, 0.0  ;;  %v2507_v48 = vadd.f32 %v2506_v47, %v2505_v7 }
 0x3b9   : > { %v2508_v26 = vsel %vm2411_vm8, %v9301_v50, 0.0  ;;  %5633 = vrcp.f32 %v962_v30  ;;  %v5622_v55 = vpop.eup %5621  ;;  %v2286_v44 = vsel %vm2285_vm12, %v9293_v11, %v2284_v56  ;;  %v2298_v5 = vmul.f32 %v5620_v28, %v9296_v20 }
 0x3ba   : > { %v2510_v43 = vsel %vm2411_vm8, %v9302_v16, 0.0  ;;  %5635 = vrsqrt.f32 %v9303_v3  ;;  %v5624_v12 = vpop.eup %5623  ;;  %v2289_v47 = vsel %vm2287_vm11, %v2288_v4, %v2286_v44  ;;  %v2293_v7 = vsel %vm2292_vm10, %v9295_v53, %v2291_v31 }
 0x3bb   : > { %v2305_v30 = vmul.f32 %v5622_v55, %v7031_v35  ;;  %v2509_v50 = vadd.f32 %v2508_v26, %v2507_v48  ;;  %v5626_v17 = vpop.eup %5625  ;;  %v2296_v56 = vsel %vm2294_vm9, %v2295_v46, %v2293_v7  ;;  %v2300_v28 = vsel %vm2299_vm6, %v9296_v20, %v2298_v5  ;;  %v7164_v46 = vld [vmem:[%s8901_s11 + $0x58] sm:$0xff]   ;;  %v7169_v26 = vld [vmem:[%s8901_s11 + $0xa8] sm:$0xff]  }
 0x3bc   : > { %v2312_v16 = vmul.f32 %v5624_v12, %v7045_v10  ;;  %v2395_v11 = vmul.f32 %v9268_v33, %v2289_v47  ;;  %v5628_v4 = vpop.eup %5627  ;;  %v2303_v44 = vsel %vm2301_vm7, %v2302_v27, %v2300_v28  ;;  %v2319_v48 = vmul.f32 %v5626_v17, %v7068_v59  ;;  %v7174_v20 = vld [vmem:[%s8901_s11 + $0x18] sm:$0xff]   ;;  %5297 = vmatprep.subr.bf16.mxu0 %v7164_v46 }
 0x3bd   : > { %v2307_v31 = vsel %vm2306_vm2, %v7031_v35, %v2305_v30  ;;  %v2396_v53 = vmul.f32 %v2296_v56, %v9262_v63  ;;  %v5630_v27 = vpop.eup %5629  ;;  %v2326_v5 = vmul.f32 %v5628_v4, %v7072_v54  ;;  %v2397_v12 = vmul.f32 %v2303_v44, %v9264_v14  ;;  %3041 = vmatpush1.bf16.msra.mxu1 %v7169_v26 }
 0x3be   : > { %v2310_v17 = vsel %vm2308_vm1, %v2309_v57, %v2307_v31  ;;  %v2314_v55 = vsel %vm2313_vm13, %v7045_v10, %v2312_v16  ;;  %vm9304_vm2 = vcmp.eq.f32.partialorder %v7068_v59, inf  ;;  %v2333_v30 = vmul.f32 %v5630_v27, %v7074_v9  ;;  %v7194_v57 = vld [vmem:[%s8901_s11 + $0x60] sm:$0xff]   ;;  %5298 = vmatpush3.bf16.msra.mxu0 %v7174_v20  ;;  %v7207_v16 = vld [vmem:[%s8901_s11 + $0xb0] sm:$0xff]   ;;  %3042 = vmatprep.subr.bf16.mxu1 %v9269_v15 }
 0x3bf   : > { %v2317_v47 = vsel %vm2315_vm14, %v2316_v41, %v2314_v55  ;;  %v2321_v7 = vsel %vm9304_vm2, %v7068_v59, %v2319_v48  ;;  %v2398_v35 = vmul.f32 %v2310_v17, %v6091_v23  ;;  %vm9305_vm1 = vcmp.eq.f32.partialorder %v7072_v54, inf  ;;  %v7212_v59 = vld [vmem:[%s8901_s11 + $0x20] sm:$0xff]   ;;  %5299 = vmatprep.subr.bf16.mxu0 %v7194_v57  ;;  %v7225_v48 = vld [vmem:[%s8901_s11 + $0x68] sm:$0xff]  }
 0x3c0   : > { %v2324_v56 = vsel %vm2322_vm0, %v2323_v25, %v2321_v7  ;;  %v2328_v10 = vsel %vm9305_vm1, %v7072_v54, %v2326_v5  ;;  %v2399_v41 = vmul.f32 %v2317_v47, %v9251_v18  ;;  %v2732_v28 = vrot.slane %v2396_v53, 7  ;;  %v9307_v5 = vld [vmem:[#allocation36_spill] sm:$0xff] }
 0x3c1   : > { %v2331_v25 = vsel %vm2329_vm4, %v2330_v38, %v2328_v10  ;;  %v2335_v4 = vsel %vm2334_vm15, %v7074_v9, %v2333_v30  ;;  %v2400_v44 = vmul.f32 %v2324_v56, %v9252_v1  ;;  %v2734_v31 = vrot.slane %v2397_v12, 6  ;;  %v7233_v10 = vpop.permute.xlu1 %2514  ;;  %3043 = vmatpush1.bf16.msra.mxu1 %v7207_v16 }
 0x3c2   : > { %v5632_v53 = vpop.eup %5631  ;;  %v2338_v54 = vsel %vm2336_vm3, %v2337_v8, %v2335_v4  ;;  %v2401_v38 = vmul.f32 %v2331_v25, %v9253_v51  ;;  %vm9306_vm6 = vcmask 1041409   ;;  %v2736_v17 = vrot.slane %v2398_v35, 5  ;;  %9309 = vst [vmem:[#allocation71_spill] sm:$0xff] %v7233_v10  ;;  %5300 = vmatpush3.bf16.msra.mxu0 %v7212_v59  ;;  %3044 = vmatprep.subr.bf16.mxu1 %v9269_v15 }
 0x3c3   : > { %v2733_v27 = vsel %vm9306_vm6, %v2732_v28, %v2395_v11  ;;  %v5634_v55 = vpop.eup %5633  ;;  %v2402_v12 = vmul.f32 %v2338_v54, %v9307_v5  ;;  %vm9308_vm7 = vcmask 1042434   ;;  %v2738_v7 = vrot.slane %v2399_v41, 4  ;;  %v7247_v41 = vld [vmem:[%s8901_s11 + $0xb8] sm:$0xff]   ;;  %5301 = vmatprep.subr.bf16.mxu0 %v7225_v48 }
 0x3c4   : > { %v2735_v47 = vsel %vm9308_vm7, %v2734_v31, %v2733_v27  ;;  %v2740_v30 = vrot.slane %v2400_v44, 3  ;;  %v5636_v56 = vpop.eup %5635  ;;  %v9310_v34 = vsub.f32 %v7049_v42, %v7052_v52  ;;  %v7239_v8 = vadd.f32 1e-05, %v7080_v21  ;;  %v7258_v52 = vld [vmem:[%s8901_s11 + $0x28] sm:$0xff]   ;;  %v9315_v54 = vld [vmem:[#allocation74_spill] sm:$0xff] }
 0x3c5   : > { %vm9311_vm9 = vcmask 1043459   ;;  %v2511_v35 = vadd.f32 %v2510_v43, %v2509_v50  ;;  %vm9312_vm10 = vcmask 1044484   ;;  %v2742_v25 = vrot.slane %v2401_v38, 2  ;;  %3045 = vmatpush1.bf16.msra.mxu1 %v7247_v41 }
 0x3c6   : > { %v2266_v9 = vmax.f32 %v9310_v34, 0.0  ;;  %v2737_v11 = vsel %vm9311_vm9, %v2736_v17, %v2735_v47  ;;  %v2549_v34 = vmul.f32 %v7117_v39, %v7233_v10  ;;  %v2340_v42 = vmul.f32 %v5632_v53, %v9300_v60  ;;  %v7266_v39 = vld [vmem:[%s8901_s11 + $0x70] sm:$0xff]   ;;  %5302 = vmatpush3.bf16.msra.mxu0 %v7258_v52  ;;  %v7299_v47 = vpop.permute.xlu0 %2445  ;;  %3046 = vmatprep.subr.bf16.mxu1 %v9269_v15 }
 0x3c7   : > { %v2739_v28 = vsel %vm9312_vm10, %v2738_v7, %v2737_v11  ;;  %vm9313_vm11 = vcmask 1045509   ;;  %v2744_v21 = vrot.slane %v2402_v12, 1  ;;  %v2517_v50 = vmul.f32 %v7233_v10, %v2511_v35  ;;  %v7297_v12 = vld [vmem:[%s8901_s11 + $0x30] sm:$0xff]   ;;  %9317 = vst [vmem:[#allocation63_spill] sm:$0xff] %v7299_v47  ;;  %5303 = vmatprep.subr.bf16.mxu0 %v7266_v39  ;;  %v9323_v10 = vld [vmem:[#allocation67_spill] sm:$0xff] }
 0x3c8   : > { %v2741_v43 = vsel %vm9313_vm11, %v2740_v30, %v2739_v28  ;;  %v2347_v4 = vmul.f32 %v5636_v56, %v9303_v3  ;;  %v7269_v44 = vadd.f32 1e-05, %v7082_v45  ;;  %v7272_v31 = vadd.f32 1e-05, %v7086_v19  ;;  %v7285_v45 = vld [vmem:[%s8901_s11 + $0xc0] sm:$0xff]  }
 0x3c9   : > { %vm9314_vm12 = vcmask 1046534   ;;  %5637 = vrsqrt.f32 %v9315_v54  ;;  %v7277_v38 = vadd.f32 1e-05, %v7088_v32  ;;  %vm9316_vm13 = vcmask 1047559   ;;  %3047 = vmatpush1.bf16.msra.mxu1 %v7285_v45 }
 0x3ca   : > { %v2743_v53 = vsel %vm9314_vm12, %v2742_v25, %v2741_v43  ;;  %v2551_v17 = vmul.f32 %v2517_v50, %v2517_v50  ;;  %vm2341_vm14 = vcmp.eq.f32.partialorder %v9300_v60, inf  ;;  %v7287_v19 = vadd.f32 1e-05, %v2266_v9  ;;  %5304 = vmatpush3.bf16.msra.mxu0 %v7297_v12  ;;  %3048 = vmatprep.subr.bf16.mxu1 %v9269_v15 }
 0x3cb   : > { %v2745_v27 = vsel %vm9316_vm13, %v2744_v21, %v2743_v53  ;;  %v2342_v32 = vsel %vm2341_vm14, %v9300_v60, %v2340_v42  ;;  %vm2343_vm15 = vcmp.eq.f32.partialorder %v9300_v60, 0.0  ;;  %vm2348_vm0 = vcmp.eq.f32.partialorder %v9303_v3, inf }
 0x3cc   : > { %2760 = vrot.lane.b32.xlu1 %v2745_v27, %s5731_s1  ;;  %v2552_v7 = vsub.f32 %v2549_v34, %v2551_v17  ;;  %v2344_v30 = vand.u32 2147483648, %v9300_v60  ;;  %v2349_v56 = vsel %vm2348_vm0, %v9303_v3, %v2347_v4  ;;  %5639 = vrsqrt.f32 %v7239_v8  ;;  %v9318_v17 = vld [vmem:[#allocation58_spill] sm:$0xff] }
 0x3cd   : > { %v2550_v9 = vmul.f32 %v2517_v50, %v7299_v47  ;;  %v964_v11 = vmul.f32 2.0, %v5634_v55  ;;  %v2351_v35 = vand.u32 2147483648, %v9303_v3  ;;  %5641 = vrsqrt.f32 %v7269_v44 }
 0x3ce   : > { %v2553_v28 = vmax.f32 %v2552_v7, 0.0  ;;  %v2345_v25 = vsel %vm2343_vm15, %v2344_v30, %v2342_v32  ;;  %vm2350_vm3 = vcmp.eq.f32.partialorder %v9303_v3, 0.0  ;;  %5643 = vrsqrt.f32 %v7272_v31  ;;  %v9320_v30 = vld [vmem:[#allocation62_spill] sm:$0xff] }
 0x3cf   : > { %v2352_v34 = vsel %vm2350_vm3, %v2351_v35, %v2349_v56  ;;  %vm2355_vm4 = vcmp.eq.f32.partialorder %v9315_v54, inf  ;;  %vm2357_vm5 = vcmp.eq.f32.partialorder %v9315_v54, 0.0  ;;  %5645 = vrsqrt.f32 %v7277_v38 }
 0x3d0   : > { %2778 = vrot.lane.b32.xlu1 %v2550_v9, %s5727_s5  ;;  %v7319_v55 = vadd.f32 1e-05, %v2553_v28  ;;  %v2358_v60 = vand.u32 2147483648, %v9315_v54  ;;  %vm2362_vm2 = vcmp.eq.f32.partialorder %v7239_v8, inf  ;;  %5647 = vrsqrt.f32 %v7287_v19  ;;  %v9322_v28 = vld [vmem:[#allocation61_spill] sm:$0xff] }
 0x3d1   : > { %vm2364_vm1 = vcmp.eq.f32.partialorder %v7239_v8, 0.0  ;;  %v2365_v3 = vand.u32 2147483648, %v7239_v8  ;;  %vm2369_vm6 = vcmp.eq.f32.partialorder %v7269_v44, inf  ;;  %v2372_v42 = vand.u32 2147483648, %v7269_v44 }
 0x3d2   : > { %vm2371_vm7 = vcmp.eq.f32.partialorder %v7269_v44, 0.0  ;;  %vm2376_vm9 = vcmp.eq.f32.partialorder %v7272_v31, inf  ;;  %v2379_v43 = vand.u32 2147483648, %v7272_v31  ;;  %v2386_v21 = vand.u32 2147483648, %v7277_v38 }
 0x3d3   : > { %v2404_v50 = vmul.f32 %v2352_v34, %v9234_v58  ;;  %5649 = vrsqrt.f32 %v7319_v55  ;;  %v5638_v4 = vpop.eup %5637  ;;  %vm2378_vm10 = vcmp.eq.f32.partialorder %v7272_v31, 0.0  ;;  %vm2383_vm11 = vcmp.eq.f32.partialorder %v7277_v38, inf }
 0x3d4   : > { %2800 = vperm.xlu1 %5569, %v964_v11   ;;  %v2393_v53 = vand.u32 2147483648, %v7287_v19  ;;  %v2403_v27 = vmul.f32 %v9273_v40, %v2345_v25  ;;  %v9319_v32 = vrot.slane %v9318_v17, 1  ;;  %v9321_v56 = vrot.slane %v9320_v30, 2 }
 0x3d5   : > { %v2354_v35 = vmul.f32 %v5638_v4, %v9315_v54  ;;  %vm2385_vm12 = vcmp.eq.f32.partialorder %v7277_v38, 0.0  ;;  %vm2390_vm13 = vcmp.eq.f32.partialorder %v7287_v19, inf  ;;  %v2746_v11 = vrot.slane %v2404_v50, 7 }
 0x3d6   : > { %v1675_v7 = vmax.f32 %v9318_v17, %v9319_v32  ;;  %v1680_v9 = vmax.f32 %v9320_v30, %v9321_v56  ;;  %v1775_v34 = vmul.f32 %v9251_v18, %v9322_v28  ;;  %v1776_v25 = vmul.f32 %v9252_v1, %v9323_v10  ;;  %v9325_v30 = vld [vmem:[#allocation55_spill] sm:$0xff]  ;;  %v5640_v40 = vpop.eup %5639  ;;  %v9330_v10 = vld [vmem:[#allocation44_spill] sm:$0xff] }
 0x3d7   : > { %vm2392_vm14 = vcmp.eq.f32.partialorder %v7287_v19, 0.0  ;;  %v9326_v56 = vrot.slane %v9325_v30, 7  ;;  %vm9327_vm15 = vcmask 1041409   ;;  %v2585_v58 = vrot.slane %v9328_v29, 5 }
 0x3d8   : > { %v1681_v17 = vrot.slane %v1680_v9, 1  ;;  %v1777_v32 = vmul.f32 %v9253_v51, %v1675_v7  ;;  %v2356_v50 = vsel %vm2355_vm4, %v9315_v54, %v2354_v35  ;;  %vm9329_vm0 = vmmov %vm9327_vm15  ;;  %v9331_v1 = vrot.slane %v9330_v10, 6  ;;  %v5642_v7 = vpop.eup %5641 }
 0x3d9   : > { %v2581_v4 = vsel %vm9327_vm15, %v9326_v56, %v9324_v24  ;;  %v2747_v28 = vsel %vm9329_vm0, %v2746_v11, %v2403_v27  ;;  %vm9332_vm3 = vcmask 1042434   ;;  %v2588_v6 = vrot.slane %v1775_v34, 4  ;;  %v5644_v51 = vpop.eup %5643 }
 0x3da   : > { %v2584_v18 = vsel %vm9332_vm3, %v9331_v1, %v2581_v4  ;;  %v2359_v30 = vsel %vm2357_vm5, %v2358_v60, %v2356_v50  ;;  %v2361_v24 = vmul.f32 %v5640_v40, %v7239_v8  ;;  %v1682_v56 = vmax.f32 %v1680_v9, %v1681_v17  ;;  %v5646_v10 = vpop.eup %5645  ;;  %vm9335_vm5 = vmmov %vm9332_vm3 }
 0x3db   : > { %vm9333_vm15 = vcmask 1043459   ;;  %v2368_v63 = vmul.f32 %v5642_v7, %v7269_v44  ;;  %v2405_v35 = vmul.f32 %v2359_v30, %v9289_v61  ;;  %vm9334_vm4 = vcmask 1044484   ;;  %v5648_v9 = vpop.eup %5647 }
 0x3dc   : > { %v2587_v29 = vsel %vm9333_vm15, %v2585_v58, %v2584_v18  ;;  %v2591_v11 = vrot.slane %v1776_v25, 3  ;;  %v2363_v1 = vsel %vm2362_vm2, %v7239_v8, %v2361_v24  ;;  %v2375_v54 = vmul.f32 %v5644_v51, %v7272_v31  ;;  %v7387_v25 = vld [vmem:[%s8901_s11 + $0x78] sm:$0xff]   ;;  %v7392_v51 = vld [vmem:[%s8901_s11 + $0xc8] sm:$0xff]   ;;  %vm9336_vm2 = vmmov %vm9333_vm15 }
 0x3dd   : > { %v2590_v27 = vsel %vm9334_vm4, %v2588_v6, %v2587_v29  ;;  %v1778_v40 = vmul.f32 %v9307_v5, %v1682_v56  ;;  %v2594_v60 = vrot.slane %v1777_v32, 2  ;;  %v2366_v58 = vsel %vm2364_vm1, %v2365_v3, %v2363_v1  ;;  %v7397_v8 = vld [vmem:[%s8901_s11 + $0x38] sm:$0xff]   ;;  %v5650_v4 = vpop.eup %5649  ;;  %5305 = vmatprep.subr.bf16.mxu0 %v7387_v25  ;;  %3049 = vmatpush1.bf16.msra.mxu1 %v7392_v51  ;;  %vm9359_vm15 = vmmov %vm9336_vm2 }
 0x3de   : > { %v2370_v18 = vsel %vm2369_vm6, %v7269_v44, %v2368_v63  ;;  %v2382_v6 = vmul.f32 %v5646_v10, %v7277_v38  ;;  %v2748_v34 = vrot.slane %v2405_v35, 6  ;;  %v2377_v3 = vsel %vm2376_vm9, %v7272_v31, %v2375_v54  ;;  %5306 = vmatpush3.bf16.msra.mxu0 %v7397_v8  ;;  %vm9339_vm6 = vmmov %vm9334_vm4 }
 0x3df   : > { %v2373_v63 = vsel %vm2371_vm7, %v2372_v42, %v2370_v18  ;;  %v2389_v17 = vmul.f32 %v5648_v9, %v7287_v19  ;;  %v2406_v32 = vmul.f32 %v2366_v58, %v9229_v62  ;;  %v2380_v50 = vsel %vm2378_vm10, %v2379_v43, %v2377_v3 }
 0x3e0   : > { %v2384_v7 = vsel %vm2383_vm11, %v7277_v38, %v2382_v6  ;;  %v2407_v30 = vmul.f32 %v2373_v63, %v6924_v2  ;;  %v2749_v44 = vsel %vm9335_vm5, %v2748_v34, %v2747_v28  ;;  %v2408_v31 = vmul.f32 %v2380_v50, %v6928_v37 }
 0x3e1   : > { %v2387_v42 = vsel %vm2385_vm12, %v2386_v21, %v2384_v7  ;;  %v2391_v24 = vsel %vm2390_vm13, %v7287_v19, %v2389_v17  ;;  %v2750_v43 = vrot.slane %v2406_v32, 5  ;;  %v2556_v38 = vmul.f32 %v5650_v4, %v7319_v55  ;;  %v7429_v21 = vld [vmem:[%s8897_s7] sm:$0xff]   ;;  %v9343_v32 = vld [vmem:[#allocation41_spill] sm:$0xff] }
 0x3e2   : > { %v2394_v56 = vsel %vm2392_vm14, %v2393_v53, %v2391_v24  ;;  %v2409_v28 = vmul.f32 %v2387_v42, %v6931_v0  ;;  %v2752_v29 = vrot.slane %v2407_v30, 4  ;;  %5453 = vmatprep.subr.bf16.mxu1 %v7429_v21  ;;  %v2754_v1 = vrot.slane %v2408_v31, 3  ;;  %v9338_v53 = vld [vmem:[#allocation82_spill] sm:$0xff]  ;;  %vm9351_vm14 = vmmov %vm9329_vm0 }
 0x3e3   : > { %v2410_v35 = vmul.f32 %v2394_v56, %v6973_v36  ;;  %v2751_v10 = vsel %vm9336_vm2, %v2750_v43, %v2749_v44  ;;  %vm9337_vm1 = vcmask 1045509   ;;  %v2600_v54 = vrot.slane %v9338_v53, 7  ;;  %v9349_v44 = vld [vmem:[#allocation86_spill] sm:$0xff]  ;;  %v9350_v43 = vld [vmem:[#allocation72_spill] sm:$0xff]  ;;  %vm9355_vm0 = vmmov %vm9332_vm3 }
 0x3e4   : > { %v2593_v19 = vsel %vm9337_vm1, %v2591_v11, %v2590_v27  ;;  %v2753_v9 = vsel %vm9339_vm6, %v2752_v29, %v2751_v10  ;;  %v2756_v58 = vrot.slane %v2409_v28, 2  ;;  %vm9340_vm7 = vcmask 1046534   ;;  %vm9341_vm9 = vmmov %vm9337_vm1  ;;  %v9345_v11 = vld [vmem:[#allocation90_spill] sm:$0xff] }
 0x3e5   : > { %v2596_v18 = vsel %vm9340_vm7, %v2594_v60, %v2593_v19  ;;  %v2755_v6 = vsel %vm9341_vm9, %v2754_v1, %v2753_v9  ;;  %v2758_v34 = vrot.slane %v2410_v35, 1  ;;  %vm2557_vm10 = vcmp.eq.f32.partialorder %v7319_v55, inf  ;;  %vm9342_vm11 = vmmov %vm9340_vm7  ;;  %v9352_v28 = vld [vmem:[#allocation34_spill] sm:$0xff]  ;;  %v9356_v9 = vld [vmem:[#allocation88_spill] sm:$0xff] }
 0x3e6   : > { %v2597_v63 = vrot.slane %v1778_v40, 1  ;;  %v2757_v3 = vsel %vm9342_vm11, %v2756_v58, %v2755_v6  ;;  %v2558_v17 = vsel %vm2557_vm10, %v7319_v55, %v2556_v38  ;;  %v9344_v4 = vrot.slane %v9343_v32, 1  ;;  %v9353_v35 = vld [vmem:[#allocation70_spill] sm:$0xff]  ;;  %vm9360_vm5 = vmmov %vm9337_vm1 }
 0x3e7   : > { %v9346_v50 = vrot.slane %v9345_v11, 2  ;;  %vm9347_vm12 = vcmask 1047559   ;;  %v1783_v42 = vmul.f32 %v6924_v2, %v9349_v44  ;;  %v1784_v40 = vmul.f32 %v6928_v37, %v7066_v22  ;;  %v9357_v22 = vld [vmem:[#allocation84_spill] sm:$0xff]  ;;  %vm9361_vm2 = vmmov %vm9340_vm7 }
 0x3e8   : > { %v1731_v27 = vmax.f32 %v9343_v32, %v9344_v4  ;;  %v2759_v60 = vsel %vm9347_vm12, %v2758_v34, %v2757_v3  ;;  %vm9348_vm13 = vmmov %vm9347_vm12  ;;  %v2601_v56 = vsel %vm9351_vm14, %v2600_v54, %v9350_v43  ;;  %v2604_v29 = vrot.slane %v9352_v28, 5  ;;  %v7482_v28 = vpop.permute.xlu1 %2794 }
 0x3e9   : > { %v1736_v7 = vmax.f32 %v9345_v11, %v9346_v50  ;;  %v2599_v30 = vsel %vm9348_vm13, %v2597_v63, %v2596_v18  ;;  %2762 = vrot.lane.b32.xlu0 %v2759_v60, %s5731_s1  ;;  %v2560_v38 = vand.u32 2147483648, %v7319_v55  ;;  %v9354_v10 = vrot.slane %v9353_v35, 6  ;;  %vm9362_vm1 = vmmov %vm9347_vm12  ;;  %9366 = vst [vmem:[#allocation68_spill] sm:$0xff] %v7482_v28 }
 0x3ea   : > { %v1785_v31 = vmul.f32 %v6931_v0, %v1731_v27  ;;  %v2606_v19 = vrot.slane %v1783_v42, 4  ;;  %v2608_v53 = vrot.slane %v1784_v40, 3  ;;  %v9358_v58 = vmax.f32 %v9356_v9, %v9357_v22  ;;  %v9365_v42 = vld [vmem:[#allocation13_spill] sm:$0xff] }
 0x3eb   : > { %v1737_v24 = vrot.slane %v1736_v7, 1  ;;  %v2603_v1 = vsel %vm9355_vm0, %v9354_v10, %v2601_v56  ;;  %vm2559_vm3 = vcmp.eq.f32.partialorder %v7319_v55, 0.0  ;;  %v9070_v60 = vmov 0.0|0.0  }
 0x3ec   : > { %v2448_v18 = vmul.f32 %v7299_v47, %v9358_v58  ;;  %v2605_v54 = vsel %vm9359_vm15, %v2604_v29, %v2603_v1  ;;  %v2561_v34 = vsel %vm2559_vm3, %v2560_v38, %v2558_v17  ;;  %v2610_v3 = vrot.slane %v1785_v31, 2  ;;  %5528 = vmatprep.subr.bf16.mxu0 %v9070_v60  ;;  %v9363_v17 = vld [vmem:[#allocation5_spill] sm:$0xff] }
 0x3ed   : > { %v1738_v6 = vmax.f32 %v1736_v7, %v1737_v24  ;;  %v2607_v63 = vsel %vm9334_vm4, %v2606_v19, %v2605_v54  ;;  %v2562_v11 = vmul.f32 %v2561_v34, %v7299_v47  ;;  %v9364_v7 = vld [vmem:[#allocation7_spill] sm:$0xff]  ;;  %v942_v40 = vadd.f32 1.0, %v9365_v42 }
 0x3ee   : > { %2774 = vrot.lane.b32.xlu0 %v2448_v18, %s5731_s1  ;;  %v2609_v4 = vsel %vm9360_vm5, %v2608_v53, %v2607_v63  ;;  %v941_v44 = vadd.f32 1.0, %v9364_v7  ;;  %vm9132_vm9 = vcmask 785408   ;;  %vm9367_vm10 = vcmask 261120  }
 0x3ef   : > { %v1786_v32 = vmul.f32 %v6973_v36, %v1738_v6  ;;  %v2611_v27 = vsel %vm9361_vm2, %v2610_v3, %v2609_v4  ;;  %vm9368_vm11 = vcmask 523264   ;;  %vm9369_vm12 = vmmov %vm9367_vm10  ;;  %vm9130_vm15 = vmmov 0  }
 0x3f0   : > { %5651 = vlog2.f32 %v941_v44  ;;  %vm9371_vm13 = vmmov %vm9368_vm11 }
 0x3f1   : > { %v2612_v50 = vrot.slane %v1786_v32, 1  ;;  %5653 = vlog2.f32 %v942_v40  ;;  %v9375_v40 = vld [vmem:[#allocation89_spill] sm:$0xff]  ;;  %vm9379_vm14 = vmmov %vm9367_vm10 }
 0x3f2   : > { %2782 = vrot.lane.b32.xlu0 %v2562_v11, %s5730_s22  ;;  %vm9380_vm0 = vmmov %vm9368_vm11 }
 0x3f3   : > { %v2613_v55 = vsel %vm9362_vm1, %v2612_v50, %v2611_v27  ;;  %v1036_v50 = vld [vmem:[%s8903_s13] sm:$0xff]  ;;  %vm9383_vm3 = vmmov %vm9367_vm10 }
 0x3f4   : > { %vm9388_vm4 = vmmov %vm9380_vm0 }
 0x3f5   : > { %vm9389_vm5 = vmmov %vm9380_vm0 }
 0x3f6   : > { %2805 = vrot.lane.b32.xlu0 %v9363_v17, %s5731_s1  ;;  %vm9390_vm2 = vmmov %vm9380_vm0 }
 0x3f7   : > { %vm9392_vm1 = vmmov %vm9380_vm0 }
 0x3fa   : > { %v5652_v24 = vpop.eup %5651 }
 0x3fb   : > { %v5654_v31 = vpop.eup %5653  ;;  %v944_v43 = vmul.f32 0.6931472, %v5652_v24  ;;  %v9376_v24 = vld [vmem:[#allocation85_spill] sm:$0xff] }
 0x3fc   : > { %v946_v56 = vmul.f32 0.6931472, %v5654_v31  ;;  %v2661_v35 = vpop.permute.xlu1 %2660  ;;  %v9377_v31 = vmin.f32 %v9375_v40, %v9376_v24  ;;  %v1041_v40 = vld [vmem:[%s8903_s13 + $0x28] sm:$0xff] }
 0x3fd   : > { %vm953_vm6 = vcmp.gt.f32.partialorder %v944_v43, 0.0  ;;  %v2766_v9 = vsel %vm9367_vm10, %v2599_v30, %v2661_v35  ;;  %v7488_v34 = vmul.f32 0.5, %v944_v43  ;;  %vm9398_vm10 = vmmov %vm9380_vm0 }
 0x3fe   : > { %vm954_vm7 = vcmp.gt.f32.partialorder %v946_v56, 0.0  ;;  %v955_v29 = vsel %vm953_vm6, %v944_v43, 1.0  ;;  %v7493_v32 = vmul.f32 0.5, %v946_v56  ;;  %v2480_v43 = vmul.f32 %v9377_v31, %v7299_v47  ;;  %v1042_v31 = vld [vmem:[%s8903_s13 + $0x30] sm:$0xff]  ;;  %vm9393_vm6 = vmmov %vm9380_vm0 }
 0x3ff   : > { %v956_v38 = vsel %vm954_vm7, %v946_v56, 1.0  ;;  %5655 = vrcp.f32 %v955_v29  ;;  %9370 = vst [vmem:[#allocation28_spill] sm:$0xff] %v7488_v34  ;;  %vm9397_vm7 = vmmov %vm9380_vm0 }
 0x400   : > { %5657 = vrcp.f32 %v956_v38  ;;  %9373 = vst [vmem:[#allocation69_spill] sm:$0xff] %v7493_v32 }
 0x409   : > { %v2711_v1 = vpop.permute.xlu1 %2710  ;;  %v5656_v53 = vpop.eup %5655 }
 0x40a   : > { %v5658_v58 = vpop.eup %5657  ;;  %v2768_v18 = vsel %vm9368_vm11, %v2766_v9, %v2711_v1  ;;  %v7491_v3 = vmul.f32 2.0, %v5656_v53  ;;  %v1039_v53 = vld [vmem:[%s8903_s13 + $0x18] sm:$0xff]  ;;  %vm9399_vm11 = vmmov %vm9380_vm0 }
 0x40b   : > { %v7495_v4 = vmul.f32 2.0, %v5658_v58 }
 0x40c   : > { %9372 = vst [vmem:[#allocation66_spill] sm:$0xff] %v7491_v3 }
 0x40d   : > { %9374 = vst [vmem:[#allocation80_spill] sm:$0xff] %v7495_v4 }
 0x415   : > { %v2663_v10 = vpop.permute.xlu0 %2662 }
 0x416   : > { %v2767_v54 = vsel %vm9369_vm12, %v2613_v55, %v2663_v10  ;;  %v1037_v55 = vld [vmem:[%s8903_s13 + $0x8] sm:$0xff]  ;;  %vm9400_vm12 = vmmov %vm9380_vm0 }
 0x417   : > { %v7512_v35 = vpack.c.bf16 %v1037_v55, %v1036_v50 }
 0x419   : > { %9378 = vst [vmem:[#allocation52_spill] sm:$0xff] %v7512_v35 }
 0x421   : > { %v2713_v22 = vpop.permute.xlu0 %2712 }
 0x422   : > { %v2769_v63 = vsel %vm9371_vm13, %v2767_v54, %v2713_v22  ;;  %vm9401_vm13 = vmmov %vm9380_vm0 }
 0x43e   : > { %v2761_v19 = vpop.permute.xlu1 %2760 }
 0x43f   : > { %v2771_v6 = vsel %vm9132_vm9, %v2768_v18, %v2761_v19  ;;  %v1038_v19 = vld [vmem:[%s8903_s13 + $0x10] sm:$0xff]  ;;  %v5699_v18 = vld [vmem:[%s8897_s7 + $0x8] sm:$0xff]  }
 0x440   : > { %v2788_v30 = vmul.f32 %v2771_v6, %v7488_v34  ;;  %v2790_v17 = vmul.f32 %v2771_v6, %v7491_v3  ;;  %v7524_v58 = vpack.c.bf16 %v1039_v53, %v1038_v19  ;;  %v5212_v53 = vld [vmem:[%s8902_s12] ss:$0 sm:$0xff] }
 0x442   : > { %v2779_v10 = vpop.permute.xlu1 %2778  ;;  %9381 = vst [vmem:[#allocation59_spill] sm:$0xff] %v7524_v58 }
 0x45b   : > { %v2763_v27 = vpop.permute.xlu0 %2762 }
 0x45c   : > { %v2772_v11 = vsel %vm9132_vm9, %v2769_v63, %v2763_v27 }
 0x45d   : > { %v2789_v7 = vmul.f32 %v2772_v11, %v7493_v32  ;;  %v2791_v44 = vmul.f32 %v2772_v11, %v7495_v4  ;;  %v2808_v42 = vpack.c.bf16 %v2772_v11, %v2771_v6  ;;  %v7529_v6 = vpop.permute.xlu1 %2800  ;;  %v5700_v11 = vld [vmem:[%s8897_s7 + $0x10] sm:$0xff]  }
 0x45e   : > { %9382 = vst [vmem:[#allocation51_spill] sm:$0xff] %v7529_v6 }
 0x45f   : > { %v2810_v56 = vpack.c.bf16 %v2791_v44, %v2790_v17  ;;  %v2809_v38 = vpack.c.bf16 %v2789_v7, %v2788_v30  ;;  %v5701_v7 = vld [vmem:[%s8897_s7 + $0x18] sm:$0xff]   ;;  %v9384_v44 = vld [vmem:[#allocation60_spill] sm:$0xff] }
 0x460   : > { %v2775_v29 = vpop.permute.xlu0 %2774 }
 0x461   : > { %v2785_v1 = vsel %vm9379_vm14, %v2775_v29, %v2480_v43  ;;  %3014 = vmatprep.mubr.bf16.mxu0 %v2809_v38  ;;  %3063 = vmatmul.mubr.bf16.vlgmr.msra.gmra.mrb[16].mxu1 %v2810_v56  ;;  %v1043_v43 = vld [vmem:[%s8903_s13 + $0x38] sm:$0xff]  ;;  %v5702_v29 = vld [vmem:[%s8899_s9] sm:$0xff]   ;;  %v9387_v38 = vmov 0.0   ;;  %vm9402_vm14 = vmmov %vm9380_vm0 }
 0x462   : > { %3015 = vmatmul.mubr.bf16.vlgmr.msra.gmra.mrb[4].mxu0 %v2808_v42  ;;  %5454 = vmatpush3.bf16.msra.mxu1 %v7429_v21  ;;  %v2786_v9 = vsel %vm9380_vm0, %v2785_v1, %v2779_v10  ;;  %v1040_v42 = vld [vmem:[%s8903_s13 + $0x20] sm:$0xff]  ;;  %v7560_v56 = vpack.c.bf16 %v1043_v43, %v1042_v31 }
 0x463   : > { %5530 = vmatpush3.bf16.msra.mxu0 %v7512_v35  ;;  %5455 = vmatprep.subr.bf16.mxu1 %v5699_v18  ;;  %v7551_v24 = vpack.c.bf16 %v1041_v40, %v1040_v42 }
 0x464   : > { %v2783_v22 = vpop.permute.xlu0 %2782  ;;  %5531 = vmatprep.subr.bf16.mxu0 %v9070_v60  ;;  %9386 = vst [vmem:[#allocation77_spill] sm:$0xff] %v7560_v56 }
 0x465   : > { %v2787_v54 = vsel %vm9132_vm9, %v2786_v9, %v2783_v22  ;;  %9385 = vst [vmem:[#allocation40_spill] sm:$0xff] %v7551_v24 }
 0x466   : > { %v2797_v21 = vmul.f32 %v7482_v28, %v2787_v54  ;;  %v2803_v63 = vmul.f32 %v7529_v6, %v2787_v54  ;;  %5456 = vmatpush3.bf16.msra.mxu1 %v5699_v18  ;;  %v2811_v55 = vpack.c.bf16 %v2787_v54, %v2787_v54 }
 0x467   : > { %5533 = vmatpush3.bf16.msra.mxu0 %v7524_v58  ;;  %5457 = vmatprep.subr.bf16.mxu1 %v5700_v11 }
 0x468   : > { %v2806_v27 = vpop.permute.xlu0 %2805  ;;  %v2812_v30 = vpack.c.bf16 %v2797_v21, %v2797_v21  ;;  %5534 = vmatprep.subr.bf16.mxu0 %v9070_v60  ;;  %v2813_v17 = vpack.c.bf16 %v2803_v63, %v2803_v63 }
 0x469   : > { %v2814_v50 = vpack.c.bf16 %v2806_v27, %v2806_v27 }
 0x46a   : > { %3022 = vmatprep.mubr.bf16.mxu0 %v2812_v30  ;;  %5458 = vmatpush3.bf16.msra.mxu1 %v5700_v11 }
 0x46b   : > { %3023 = vmatmul.mubr.bf16.gmra.mrb[8].mxu0 %v2811_v55  ;;  %5240 = vmatprep.mubr.msk.bf16.mxu1 %vm9383_vm3, %v2814_v50  ;;  %vm9403_vm3 = vmmov %vm9380_vm0 }
 0x46c   : > { %3071 = vmatmul.mubr.bf16.gmra.mrb[20].mxu1 %v2813_v17  ;;  %5459 = vmatprep.subr.bf16.mxu1 %v5701_v7 }
 0x46d   : > { %5536 = vmatpush3.bf16.msra.mxu0 %v7551_v24  ;;  %5444 = vmatprep.mubr.msk.f32.mxu0 %vm9130_vm15, %v9387_v38 }
 0x46e   : > { %5460 = vmatpush3.bf16.msra.mxu1 %v5701_v7  ;;  %5537 = vmatprep.subr.bf16.mxu0 %v9070_v60 }
 0x46f   : > { %5348 = vmatprep.subr.bf16.mxu1 %v9384_v44 }
 0x471   : > { %5539 = vmatpush3.bf16.msra.mxu0 %v7560_v56 }
 0x472   : > { %5465 = vmatprep.subr.bf16.mxu0 %v5702_v29 }
 0x534   : > { %v3064_v10 = vpop.f32.mrb[16].mxu1 }
 0x535   : > { %v5307_v1 = vpop.f32.mrb[4].mxu0  ;;  %v3066_v19 = vpop.f32.mrb[17].mxu1 }
 0x536   : > { %v5308_v9 = vpop.f32.mrb[5].mxu0  ;;  %v3067_v22 = vpop.f32.mrb[18].mxu1 }
 0x537   : > { %v5309_v18 = vadd.f32 %v5308_v9, %v5307_v1  ;;  %v5310_v54 = vpop.f32.mrb[6].mxu0  ;;  %v3069_v21 = vpop.f32.mrb[19].mxu1 }
 0x538   : > { %v5311_v63 = vpop.f32.mrb[7].mxu0 }
 0x539   : > { %v3017_v27 = vadd.f32 %v5309_v18, %v5212_v53  ;;  %v5312_v30 = vadd.f32 %v5311_v63, %v5310_v54  ;;  %v1044_v63 = vld [vmem:[%s8904_s14] sm:$0xff] }
 0x53b   : > { %v3065_v11 = vadd.f32 %v3064_v10, %v3017_v27  ;;  %v3020_v50 = vadd.f32 %v5312_v30, %v5212_v53  ;;  %v1045_v27 = vld [vmem:[%s8904_s14 + $0x8] sm:$0xff] }
 0x53d   : > { %v3078_v55 = vmax.f32 %v3065_v11, 0.0  ;;  %v3068_v17 = vadd.f32 %v3067_v22, %v3020_v50  ;;  %v5703_v22 = vld [vmem:[%s8899_s9 + $0x8] sm:$0xff]  }
 0x53e   : > { %v5313_v7 = vpop.f32.mrb[8].mxu0 }
 0x53f   : > { %v5314_v44 = vpop.f32.mrb[9].mxu0  ;;  %v3072_v42 = vpop.f32.mrb[20].mxu1  ;;  %5445 = vmatmul.mubr.msk.f32.vlgmr.msra.gmra.mrb[12].mxu0 %vm9388_vm4, %v3078_v55  ;;  %v3079_v1 = vmax.f32 %v3068_v17, 0.0  ;;  %v1046_v17 = vld [vmem:[%s8904_s14 + $0x10] sm:$0xff]  ;;  %vm9404_vm4 = vcmask 261120  }
 0x540   : > { %v5315_v40 = vadd.f32 %v5314_v44, %v5313_v7  ;;  %v5316_v31 = vpop.f32.mrb[10].mxu0  ;;  %v3074_v43 = vpop.f32.mrb[21].mxu1  ;;  %5447 = vmatprep.mubr.msk.f32.mxu0 %vm9130_vm15, %v9387_v38  ;;  %5466 = vmatpush3.bf16.msra.mxu0 %v5702_v29  ;;  %v5704_v29 = vld [vmem:[%s8899_s9 + $0x10] sm:$0xff]  }
 0x541   : > { %v5317_v19 = vpop.f32.mrb[11].mxu0  ;;  %v3075_v60 = vpop.f32.mrb[22].mxu1  ;;  %5467 = vmatprep.subr.bf16.mxu0 %v5703_v22  ;;  %v5706_v43 = vld [vmem:[%s8901_s11] sm:$0xff]  }
 0x542   : > { %v3025_v9 = vadd.f32 %v5315_v40, %v5212_v53  ;;  %v3076_v10 = vpop.f32.mrb[23].mxu1  ;;  %v5705_v53 = vld [vmem:[%s8899_s9 + $0x18] sm:$0xff]   ;;  %v5707_v19 = vld [vmem:[%s8901_s11 + $0x48] sm:$0xff]  }
 0x543   : > { %5448 = vmatmul.mubr.msk.f32.gmra.mrb[14].mxu0 %vm9389_vm5, %v3079_v1  ;;  %v5708_v1 = vld [vmem:[%s8901_s11 + $0x8] sm:$0xff]  }
 0x544   : > { %v3073_v18 = vadd.f32 %v3072_v42, %v3025_v9  ;;  %5450 = vmatprep.mubr.msk.f32.mxu0 %vm9130_vm15, %v9387_v38  ;;  %5468 = vmatpush3.bf16.msra.mxu0 %v5703_v22 }
 0x545   : > { %5469 = vmatprep.subr.bf16.mxu0 %v5704_v29 }
 0x546   : > { %v3080_v60 = vmax.f32 %v3073_v18, 0.0 }
 0x548   : > { %5451 = vmatmul.mubr.msk.f32.gmra.mrb[16].mxu0 %vm9390_vm2, %v3080_v60 }
 0x549   : > { %5470 = vmatpush3.bf16.msra.mxu0 %v5704_v29 }
 0x54a   : > { %5471 = vmatprep.subr.bf16.mxu0 %v5705_v53 }
 0x54d   : > { %5472 = vmatpush3.bf16.msra.mxu0 %v5705_v53 }
 0x54e   : > { %4797 = vmatprep.subr.bf16.mxu0 %v9269_v15 }
 0x612   : > { %v3156_v54 = vpop.f32.mrb[12].mxu0 }
 0x613   : > { %v5446_v21 = vpop.f32.mrb[13].mxu0  ;;  %v3157_v11 = vadd.f32 %v3156_v54, %v1044_v63 }
 0x614   : > { %v9396_v21 = vld [vmem:[#allocation3_spill] sm:$0xff] }
 0x616   : > { %v3161_v30 = vpop.f32.mrb[14].mxu0 }
 0x617   : > { %v3162_v50 = vadd.f32 %v3161_v30, %v1045_v27  ;;  %v5449_v55 = vpop.f32.mrb[15].mxu0 }
 0x619   : > { %v7598_v7 = vpack.c.bf16 %v3162_v50, %v3157_v11 }
 0x61b   : > { %v3166_v44 = vpop.f32.mrb[16].mxu0  ;;  %5461 = vmatprep.mubr.msk.bf16.mxu1 %vm9392_vm1, %v7598_v7  ;;  %vm9408_vm1 = vmmov %vm9404_vm4 }
 0x61c   : > { %v7600_v42 = vadd.f32 %v3166_v44, %v1046_v17  ;;  %v5452_v40 = vpop.f32.mrb[17].mxu0 }
 0x61e   : > { %9391 = vst [vmem:[#allocation4_spill] sm:$0xff] %v7600_v42  ;;  %v3171_v31 = vpack.c.bf16 %v7600_v42, %v7600_v42 }
 0x620   : > { %5462 = vmatmul.mubr.msk.bf16.vlgmr.msra.gmra.mrb[24].mxu1 %vm9393_vm6, %v3171_v31  ;;  %vm9409_vm6 = vmmov %vm9408_vm1 }
 0x621   : > { %5349 = vmatpush3.bf16.msra.mxu1 %v5706_v43 }
 0x622   : > { %5350 = vmatprep.subr.bf16.mxu1 %v5707_v19 }
 0x625   : > { %5351 = vmatpush3.bf16.msra.mxu1 %v5708_v1 }
 0x626   : > { %5352 = vmatprep.subr.bf16.mxu1 %v7019_v49  ;;  %v9394_v49 = vmov 0.0|0.0  }
 0x629   : > { %5353 = vmatpush3.bf16.msra.mxu1 %v7037_v13 }
 0x62a   : > { %5354 = vmatprep.subr.bf16.mxu1 %v7164_v46 }
 0x62d   : > { %5355 = vmatpush3.bf16.msra.mxu1 %v7174_v20  ;;  %v5709_v20 = vld [vmem:[%s8898_s8] ss:$0 sm:$0xff] }
 0x62e   : > { %5356 = vmatprep.subr.bf16.mxu1 %v7194_v57 }
 0x631   : > { %5357 = vmatpush3.bf16.msra.mxu1 %v7212_v59 }
 0x632   : > { %5358 = vmatprep.subr.bf16.mxu1 %v7225_v48 }
 0x635   : > { %5359 = vmatpush3.bf16.msra.mxu1 %v7258_v52 }
 0x636   : > { %5360 = vmatprep.subr.bf16.mxu1 %v7266_v39  ;;  %v9395_v39 = vld [vmem:[#allocation6_spill] sm:$0xff] }
 0x639   : > { %5361 = vmatpush3.bf16.msra.mxu1 %v7297_v12 }
 0x63a   : > { %5362 = vmatprep.subr.bf16.mxu1 %v7387_v25 }
 0x63d   : > { %5363 = vmatpush3.bf16.msra.mxu1 %v7397_v8 }
 0x63e   : > { %5540 = vmatprep.subr.bf16.mxu1 %v9394_v49 }
 0x6f3   : > { %v7629_v13 = vpop.f32.mrb[24].mxu1 }
 0x6f4   : > { %v3212_v46 = vpop.f32.mrb[25].mxu1 }
 0x6f5   : > { %v3226_v57 = vadd.f32 %v5709_v20, %v3212_v46  ;;  %v5464_v59 = vpop.f32.mrb[26].mxu1 }
 0x6f6   : > { %v3215_v48 = vpop.f32.mrb[27].mxu1 }
 0x6f7   : > { %v3230_v52 = vcombine.high %v3226_v57, %v3226_v57  ;;  %v3237_v9 = vrot.slane %v3226_v57, %v9395_v39  ;;  %v3227_v12 = vadd.f32 %v5709_v20, %v3215_v48 }
 0x6f9   : > { %v3244_v25 = vrot.slane %v3230_v52, %v9395_v39  ;;  %v3245_v10 = vcombine.high %v3237_v9, %v3237_v9  ;;  %v3253_v8 = vrot.slane %v3237_v9, %v9395_v39  ;;  %v3279_v22 = vcombine.high %v3227_v12, %v3227_v12 }
 0x6fa   : > { %v3286_v18 = vrot.slane %v3227_v12, %v9395_v39 }
 0x6fb   : > { %v3246_v60 = vcombine.high %v3244_v25, %v3244_v25  ;;  %v3260_v29 = vrot.slane %v3244_v25, %v9395_v39  ;;  %v3267_v53 = vrot.slane %v3245_v10, %v9395_v39  ;;  %v3275_v54 = vcombine.high %v3253_v8, %v3253_v8 }
 0x6fc   : > { %v3331_v63 = vrot.slane %v3253_v8, %v9396_v21  ;;  %v3293_v27 = vrot.slane %v3279_v22, %v9395_v39  ;;  %v3294_v30 = vcombine.high %v3286_v18, %v3286_v18  ;;  %v3302_v11 = vrot.slane %v3286_v18, %v9395_v39 }
 0x6fd   : > { %v3274_v50 = vrot.slane %v3246_v60, %v9395_v39  ;;  %v3276_v55 = vcombine.high %v3260_v29, %v3260_v29  ;;  %v3277_v17 = vcombine.high %v3267_v53, %v3267_v53  ;;  %v3335_v44 = vrot.slane %v3267_v53, %v9396_v21 }
 0x6fe   : > { %v3339_v40 = vrot.slane %v3275_v54, %v9396_v21  ;;  %v3347_v31 = vrot.slane %v3260_v29, %v9396_v21  ;;  %v3408_v43 = vadd.f32 %v7629_v13, %v3331_v63  ;;  %v3295_v19 = vcombine.high %v3293_v27, %v3293_v27 }
 0x6ff   : > { %v3278_v1 = vcombine.high %v3274_v50, %v3274_v50  ;;  %v3343_v46 = vrot.slane %v3277_v17, %v9396_v21  ;;  %v3351_v20 = vrot.slane %v3274_v50, %v9396_v21  ;;  %v3355_v57 = vrot.slane %v3276_v55, %v9396_v21 }
 0x700   : > { %v3410_v59 = vadd.f32 %v7629_v13, %v3339_v40  ;;  %v3424_v48 = vmax.f32 %v3408_v43, 0.0  ;;  %v3309_v52 = vrot.slane %v3293_v27, %v9395_v39  ;;  %v3316_v9 = vrot.slane %v3294_v30, %v9395_v39 }
 0x701   : > { %v3411_v12 = vadd.f32 %v7629_v13, %v3343_v46  ;;  %v3323_v25 = vrot.slane %v3295_v19, %v9395_v39  ;;  %v3324_v10 = vcombine.high %v3302_v11, %v3302_v11  ;;  %v3363_v8 = vrot.slane %v3302_v11, %v9396_v21 }
 0x702   : > { %v3426_v22 = vmax.f32 %v3410_v59, 0.0  ;;  %v3325_v18 = vcombine.high %v3309_v52, %v3309_v52  ;;  %v3326_v60 = vcombine.high %v3316_v9, %v3316_v9  ;;  %v3367_v29 = vrot.slane %v3316_v9, %v9396_v21 }
 0x703   : > { %v3427_v53 = vmax.f32 %v3411_v12, 0.0  ;;  %v3327_v54 = vcombine.high %v3323_v25, %v3323_v25  ;;  %v3371_v63 = vrot.slane %v3324_v10, %v9396_v21  ;;  %v3379_v27 = vrot.slane %v3309_v52, %v9396_v21 }
 0x704   : > { %v3375_v30 = vrot.slane %v3326_v60, %v9396_v21  ;;  %v3383_v50 = vrot.slane %v3323_v25, %v9396_v21  ;;  %v3387_v39 = vrot.slane %v3325_v18, %v9396_v21  ;;  %v3416_v55 = vadd.f32 %v7629_v13, %v3363_v8 }
 0x705   : > { %v3441_v11 = vpack.c.bf16 %v3427_v53, %v3426_v22  ;;  %v3409_v17 = vadd.f32 %v7629_v13, %v3335_v44  ;;  %v3412_v40 = vadd.f32 %v7629_v13, %v3347_v31  ;;  %v3413_v43 = vadd.f32 %v7629_v13, %v3351_v20 }
 0x706   : > { %v3432_v19 = vmax.f32 %v3416_v55, 0.0  ;;  %v3359_v46 = vrot.slane %v3278_v1, %v9396_v21  ;;  %v3414_v59 = vadd.f32 %v7629_v13, %v3355_v57  ;;  %v3417_v52 = vadd.f32 %v7629_v13, %v3367_v29 }
 0x707   : > { %v3425_v9 = vmax.f32 %v3409_v17, 0.0  ;;  %v3428_v12 = vmax.f32 %v3412_v40, 0.0  ;;  %v3429_v25 = vmax.f32 %v3413_v43, 0.0  ;;  %v3418_v10 = vadd.f32 %v7629_v13, %v3371_v63 }
 0x708   : > { %v3415_v8 = vadd.f32 %v7629_v13, %v3359_v46  ;;  %v3430_v22 = vmax.f32 %v3414_v59, 0.0  ;;  %v3433_v44 = vmax.f32 %v3417_v52, 0.0  ;;  %v3419_v31 = vadd.f32 %v7629_v13, %v3375_v30  ;;  %v5713_v46 = vld [vmem:[%s8901_s11 + $0x98] sm:$0xff]   ;;  %v5714_v59 = vld [vmem:[%s8901_s11 + $0xa0] sm:$0xff]  }
 0x709   : > { %v3440_v18 = vpack.c.bf16 %v3425_v9, %v3424_v48  ;;  %v3442_v20 = vpack.c.bf16 %v3429_v25, %v3428_v12  ;;  %v3434_v60 = vmax.f32 %v3418_v10, 0.0  ;;  %v3420_v1 = vadd.f32 %v7629_v13, %v3379_v27  ;;  %v9405_v25 = vld [vmem:[#allocation11_spill] sm:$0xff] }
 0x70a   : > { %v3431_v53 = vmax.f32 %v3415_v8, 0.0  ;;  %v3444_v57 = vpack.c.bf16 %v3433_v44, %v3432_v19  ;;  %v3435_v55 = vmax.f32 %v3419_v31, 0.0  ;;  %v3421_v29 = vadd.f32 %v7629_v13, %v3383_v50  ;;  %v5710_v50 = vld [vmem:[%s8901_s11 + $0x80] sm:$0xff]  }
 0x70b   : > { %5473 = vmatprep.mubr.msk.bf16.mxu0 %vm9397_vm7, %v3440_v18  ;;  %v3391_v63 = vrot.slane %v3327_v54, %v9396_v21  ;;  %v3422_v17 = vadd.f32 %v7629_v13, %v3387_v39  ;;  %v3436_v48 = vmax.f32 %v3420_v1, 0.0  ;;  %vm9406_vm5 = vcmp.gt.f32.partialorder %v9405_v25, 0.0  ;;  %vm9410_vm7 = vmmov %vm9408_vm1 }
 0x70c   : > { %5474 = vmatmul.mubr.msk.bf16.vlgmr.msra.gmra.mrb[20].mxu0 %vm9398_vm10, %v3441_v11  ;;  %v3443_v40 = vpack.c.bf16 %v3431_v53, %v3430_v22  ;;  %v3445_v30 = vpack.c.bf16 %v3435_v55, %v3434_v60  ;;  %v3437_v43 = vmax.f32 %v3421_v29, 0.0  ;;  %v5711_v11 = vld [vmem:[%s8901_s11 + $0x88] sm:$0xff]   ;;  %vm9407_vm2 = vmmov %vm9406_vm5 }
 0x70d   : > { %5477 = vmatprep.mubr.msk.bf16.mxu0 %vm9399_vm11, %v3442_v20  ;;  %v3423_v27 = vadd.f32 %v7629_v13, %v3391_v63  ;;  %4798 = vmatpush1.bf16.msra.mxu0 %v5710_v50  ;;  %v3438_v21 = vmax.f32 %v3422_v17, 0.0  ;;  %v5712_v13 = vld [vmem:[%s8901_s11 + $0x90] sm:$0xff]  }
 0x70e   : > { %v3446_v19 = vpack.c.bf16 %v3437_v43, %v3436_v48  ;;  %4799 = vmatprep.subr.bf16.mxu0 %v9269_v15  ;;  %v9411_v53 = vld [vmem:[#allocation8_spill] sm:$0xff] }
 0x70f   : > { %v3439_v54 = vmax.f32 %v3423_v27, 0.0  ;;  %vm9412_vm10 = vcmp.gt.f32.partialorder %v9411_v53, 0.0 }
 0x710   : > { %vm9413_vm11 = vmmov %vm9412_vm10 }
 0x711   : > { %v3447_v39 = vpack.c.bf16 %v3439_v54, %v3438_v21  ;;  %4800 = vmatpush1.bf16.msra.mxu0 %v5711_v11 }
 0x712   : > { %4801 = vmatprep.subr.bf16.mxu0 %v9269_v15 }
 0x714   : > { %5478 = vmatmul.mubr.msk.bf16.gmra.mrb[24].mxu0 %vm9400_vm12, %v3443_v40  ;;  %vm9414_vm12 = vmmov %vm9408_vm1 }
 0x715   : > { %5481 = vmatprep.mubr.msk.bf16.mxu0 %vm9401_vm13, %v3444_v57  ;;  %4802 = vmatpush1.bf16.msra.mxu0 %v5712_v13  ;;  %vm9415_vm13 = vmmov %vm9408_vm1 }
 0x716   : > { %4803 = vmatprep.subr.bf16.mxu0 %v9269_v15 }
 0x719   : > { %4804 = vmatpush1.bf16.msra.mxu0 %v5713_v46 }
 0x71a   : > { %4805 = vmatprep.subr.bf16.mxu0 %v9269_v15 }
 0x71c   : > { %5482 = vmatmul.mubr.msk.bf16.gmra.mrb[28].mxu0 %vm9402_vm14, %v3445_v30  ;;  %vm9416_vm14 = vmmov %vm9408_vm1 }
 0x71d   : > { %5485 = vmatprep.mubr.msk.bf16.mxu0 %vm9380_vm0, %v3446_v19  ;;  %4806 = vmatpush1.bf16.msra.mxu0 %v5714_v59  ;;  %vm9417_vm0 = vmmov %vm9408_vm1 }
 0x71e   : > { %4807 = vmatprep.subr.bf16.mxu0 %v9269_v15 }
 0x721   : > { %4808 = vmatpush1.bf16.msra.mxu0 %v7169_v26 }
 0x722   : > { %4809 = vmatprep.subr.bf16.mxu0 %v9269_v15 }
 0x724   : > { %5486 = vmatmul.mubr.msk.bf16.gmra.mrb[32].mxu0 %vm9403_vm3, %v3447_v39  ;;  %vm9418_vm3 = vmmov %vm9417_vm0 }
 0x725   : > { %5254 = vmatprep.mubr.msk.bf16.mxu0 %vm9404_vm4, %v7598_v7  ;;  %4810 = vmatpush1.bf16.msra.mxu0 %v7207_v16  ;;  %v7721_v7 = vld [vmem:[%s8900_s10] ss:$0 sm:$0xff] }
 0x726   : > { %4811 = vmatprep.subr.bf16.mxu0 %v9269_v15 }
 0x729   : > { %4812 = vmatpush1.bf16.msra.mxu0 %v7247_v41 }
 0x72a   : > { %4813 = vmatprep.subr.bf16.mxu0 %v9269_v15 }
 0x72d   : > { %4814 = vmatpush1.bf16.msra.mxu0 %v7285_v45 }
 0x72e   : > { %4815 = vmatprep.subr.bf16.mxu0 %v9269_v15 }
 0x731   : > { %4816 = vmatpush1.bf16.msra.mxu0 %v7392_v51 }
 0x732   : > { %5522 = vmatprep.subr.bf16.mxu0 %v9387_v38 }
 0x7df   : > { %v5475_v26 = vpop.f32.mrb[20].mxu0 }
 0x7e0   : > { %v3515_v16 = vadd.f32 %v7721_v7, %v5475_v26  ;;  %v3506_v52 = vpop.f32.mrb[21].mxu0 }
 0x7e1   : > { %v3507_v41 = vadd.f32 %v7721_v7, %v3506_v52  ;;  %v5476_v9 = vpop.f32.mrb[22].mxu0 }
 0x7e2   : > { %v3571_v12 = vmax.f32 %v3515_v16, 0.0  ;;  %v7725_v45 = vpop.f32.mrb[23].mxu0 }
 0x7e3   : > { %v3569_v15 = vmax.f32 %v3507_v41, 0.0 }
 0x7e4   : > { %v3587_v51 = vsel %vm9406_vm5, %v3571_v12, -1e+30  ;;  %v3603_v10 = vsel %vm9407_vm2, %v3571_v12, 1e+30  ;;  %v7732_v8 = vmul.f32 %v3571_v12, %v9405_v25  ;;  %vm9424_vm2 = vmmov %vm9417_vm0 }
 0x7e5   : > { %v3663_v22 = vsel %vm9408_vm1, %v3587_v51, -inf  ;;  %v3791_v44 = vsel %vm9409_vm6, %v3603_v10, inf  ;;  %v3585_v57 = vsel %vm9412_vm10, %v3569_v15, -1e+30  ;;  %v3601_v55 = vsel %vm9413_vm11, %v3569_v15, 1e+30  ;;  %vm9425_vm1 = vmmov %vm9417_vm0 }
 0x7e6   : > { %v7737_v31 = vmul.f32 %v7732_v8, %v3571_v12  ;;  %v3664_v18 = vrot.slane %v3663_v22, 4  ;;  %v3792_v20 = vrot.slane %v3791_v44, 4  ;;  %v3919_v60 = vsel %vm9410_vm7, %v7732_v8, 0.0  ;;  %vm9427_vm6 = vmmov %vm9417_vm0 }
 0x7e7   : > { %v3920_v1 = vrot.slane %v3919_v60, 4  ;;  %v7747_v40 = vpop.f32.mrb[24].mxu0  ;;  %v7750_v43 = vmul.f32 %v3569_v15, %v9411_v53  ;;  %v3649_v27 = vsel %vm9415_vm13, %v3585_v57, -inf  ;;  %v3777_v39 = vsel %vm9416_vm14, %v3601_v55, inf  ;;  %vm9430_vm7 = vmmov %vm9417_vm0 }
 0x7e8   : > { %v3665_v29 = vmax.f32 %v3663_v22, %v3664_v18  ;;  %v3793_v63 = vmin.f32 %v3791_v44, %v3792_v20  ;;  %v4047_v17 = vsel %vm9414_vm12, %v7737_v31, 0.0  ;;  %v7753_v50 = vpop.f32.mrb[25].mxu0  ;;  %v3650_v54 = vrot.slane %v3649_v27, 4  ;;  %vm9435_vm12 = vmmov %vm9417_vm0 }
 0x7e9   : > { %v3921_v30 = vadd.f32 %v3920_v1, %v3919_v60  ;;  %v4048_v48 = vrot.slane %v4047_v17, 4  ;;  %v7756_v11 = vpop.f32.mrb[26].mxu0  ;;  %v7759_v59 = vmul.f32 %v7750_v43, %v3569_v15  ;;  %v3778_v26 = vrot.slane %v3777_v39, 4  ;;  %vm9436_vm13 = vmmov %vm9417_vm0 }
 0x7ea   : > { %v3666_v19 = vrot.slane %v3665_v29, 2  ;;  %v3794_v21 = vrot.slane %v3793_v63, 2  ;;  %v7761_v16 = vpop.f32.mrb[27].mxu0  ;;  %v3651_v52 = vmax.f32 %v3649_v27, %v3650_v54  ;;  %v3905_v41 = vsel %vm9417_vm0, %v7750_v43, 0.0  ;;  %vm9437_vm14 = vmmov %vm9417_vm0 }
 0x7eb   : > { %v3922_v13 = vrot.slane %v3921_v30, 2  ;;  %v4049_v46 = vadd.f32 %v4048_v48, %v4047_v17  ;;  %v3906_v22 = vrot.slane %v3905_v41, 4  ;;  %v3518_v44 = vadd.f32 %v7721_v7, %v5476_v9 }
 0x7ec   : > { %v3779_v18 = vmin.f32 %v3777_v39, %v3778_v26  ;;  %v4033_v20 = vsel %vm9418_vm3, %v7759_v59, 0.0  ;;  %v3667_v60 = vmax.f32 %v3665_v29, %v3666_v19  ;;  %v3795_v1 = vmin.f32 %v3793_v63, %v3794_v21 }
 0x7ed   : > { %v3923_v12 = vadd.f32 %v3922_v13, %v3921_v30  ;;  %v4050_v25 = vrot.slane %v4049_v46, 2  ;;  %v3652_v15 = vrot.slane %v3651_v52, 2  ;;  %v3907_v53 = vadd.f32 %v3906_v22, %v3905_v41 }
 0x7ee   : > { %v4034_v54 = vrot.slane %v4033_v20, 4  ;;  %v3572_v13 = vmax.f32 %v3518_v44, 0.0  ;;  %v4371_v9 = vsel %vm2411_vm8, %v3587_v51, -inf  ;;  %v4403_v39 = vsel %vm2411_vm8, %v3603_v10, inf }
 0x7ef   : > { %v7768_v17 = vpop.f32.mrb[28].mxu0  ;;  %v3924_v48 = vrot.slane %v3923_v12, 1  ;;  %v4051_v27 = vadd.f32 %v4050_v25, %v4049_v46  ;;  %v3908_v30 = vrot.slane %v3907_v53, 2  ;;  %v3780_v26 = vrot.slane %v3779_v18, 2 }
 0x7f0   : > { %v7770_v56 = vpop.f32.mrb[29].mxu0  ;;  %v4035_v29 = vadd.f32 %v4034_v54, %v4033_v20  ;;  %v3668_v19 = vrot.slane %v3667_v60, 1  ;;  %v3796_v21 = vrot.slane %v3795_v1, 1  ;;  %v3653_v41 = vmax.f32 %v3651_v52, %v3652_v15 }
 0x7f1   : > { %v7772_v24 = vpop.f32.mrb[30].mxu0  ;;  %v3909_v22 = vadd.f32 %v3908_v30, %v3907_v53  ;;  %v3925_v46 = vadd.f32 %v3924_v48, %v3923_v12  ;;  %v4052_v25 = vrot.slane %v4051_v27, 1  ;;  %v4369_v58 = vsel %vm2411_vm8, %v3585_v57, -inf  ;;  %v9419_v12 = vld [vmem:[#allocation19_spill] sm:$0xff]  ;;  %v9421_v57 = vld [vmem:[#allocation14_spill] sm:$0xff] }
 0x7f2   : > { %v7776_v63 = vpop.f32.mrb[31].mxu0  ;;  %v4036_v38 = vrot.slane %v4035_v29, 2  ;;  %v3781_v49 = vmin.f32 %v3779_v18, %v3780_v26  ;;  %v4378_v6 = vmax.f32 %v4371_v9, %v4369_v58  ;;  %v4401_v51 = vsel %vm2411_vm8, %v3601_v55, inf }
 0x7f3   : > { %v3910_v44 = vrot.slane %v3909_v22, 1  ;;  %v3669_v10 = vmax.f32 %v3667_v60, %v3668_v19  ;;  %v3654_v28 = vrot.slane %v3653_v41, 1  ;;  %v4410_v20 = vmin.f32 %v4403_v39, %v4401_v51 }
 0x7f4   : > { %v4037_v35 = vadd.f32 %v4036_v38, %v4035_v29  ;;  %v3510_v54 = vadd.f32 %v7721_v7, %v7725_v45  ;;  %v3797_v52 = vmin.f32 %v3795_v1, %v3796_v21  ;;  %v7785_v15 = vmul.f32 %v3925_v46, %v9419_v12 }
 0x7f5   : > { %v4053_v53 = vadd.f32 %v4052_v25, %v4051_v27  ;;  %vm9422_vm4 = vcmp.gt.f32.partialorder %v9421_v57, 0.0  ;;  %v3911_v58 = vadd.f32 %v3910_v44, %v3909_v22  ;;  %v7794_v48 = vmul.f32 %v3572_v13, %v9421_v57 }
 0x7f6   : > { %9420 = vst [vmem:[#allocation79_spill] sm:$0xff] %v7785_v15  ;;  %v3588_v18 = vsel %vm9422_vm4, %v3572_v13, -1e+30  ;;  %v4038_v55 = vrot.slane %v4037_v35, 1  ;;  %vm9423_vm5 = vmmov %vm9422_vm4  ;;  %v3782_v1 = vrot.slane %v3781_v49, 1  ;;  %v7802_v39 = vmul.f32 %v3669_v10, %v9264_v14  ;;  %v9428_v10 = vld [vmem:[#allocation15_spill] sm:$0xff] }
 0x7f7   : > { %v7782_v4 = vpop.f32.mrb[32].mxu0  ;;  %v3604_v60 = vsel %vm9423_vm5, %v3572_v13, 1e+30  ;;  %v3670_v30 = vsel %vm9424_vm2, %v3588_v18, -inf  ;;  %v4372_v9 = vsel %vm2411_vm8, %v3588_v18, -inf  ;;  %v3655_v26 = vmax.f32 %v3653_v41, %v3654_v28  ;;  %vm9442_vm5 = vmmov %vm9417_vm0 }
 0x7f8   : > { %v7789_v38 = vpop.f32.mrb[33].mxu0  ;;  %v3798_v27 = vsel %vm9425_vm1, %v3604_v60, inf  ;;  %9426 = vst [vmem:[#allocation78_spill] sm:$0xff] %v7802_v39  ;;  %v7805_v29 = vmul.f32 %v7794_v48, %v3572_v13  ;;  %v3671_v19 = vrot.slane %v3670_v30, 4  ;;  %v4147_v22 = vmul.f32 %v4053_v53, %v9419_v12  ;;  %vm9443_vm2 = vmmov %vm9417_vm0 }
 0x7f9   : > { %v7796_v45 = vpop.f32.mrb[34].mxu0  ;;  %v3799_v46 = vrot.slane %v3798_v27, 4  ;;  %v3926_v25 = vsel %vm9427_vm6, %v7794_v48, 0.0  ;;  %v7812_v44 = vmax.f32 %v4372_v9, %v4378_v6  ;;  %v4179_v51 = vmul.f32 %v7785_v15, %v7785_v15  ;;  %vm9445_vm1 = vmmov %vm9417_vm0 }
 0x7fa   : > { %v7807_v21 = vpop.f32.mrb[35].mxu0  ;;  %v7817_v57 = vmul.f32 %v9428_v10, %v3911_v58  ;;  %v4039_v28 = vadd.f32 %v4038_v55, %v4037_v35  ;;  %v4404_v13 = vsel %vm2411_vm8, %v3604_v60, inf  ;;  %v3783_v41 = vmin.f32 %v3781_v49, %v3782_v1  ;;  %vm9449_vm6 = vmmov %vm9417_vm0 }
 0x7fb   : > { %v3672_v18 = vmax.f32 %v3670_v30, %v3671_v19  ;;  %v7820_v32 = vmin.f32 %v4404_v13, %v4410_v20  ;;  %v4436_v12 = vsel %vm2411_vm8, %v7732_v8, 0.0  ;;  %v7826_v6 = vsel %vm2411_vm8, %v7737_v31, 0.0 }
 0x7fc   : > { %9429 = vst [vmem:[#allocation42_spill] sm:$0xff] %v7817_v57  ;;  %v3927_v53 = vrot.slane %v3926_v25, 4  ;;  %v4054_v9 = vsel %vm9430_vm7, %v7805_v29, 0.0  ;;  %v7831_v58 = vmul.f32 %v3797_v52, %v9264_v14  ;;  %v3800_v49 = vmin.f32 %v3798_v27, %v3799_v46  ;;  %v9432_v52 = vld [vmem:[#allocation9_spill] sm:$0xff] }
 0x7fd   : > { %v3570_v55 = vmax.f32 %v3510_v54, 0.0  ;;  %v4195_v20 = vsub.f32 %v4147_v22, %v4179_v51  ;;  %v7835_v60 = vmul.f32 %v9268_v33, %v3655_v26  ;;  %v4145_v8 = vmul.f32 %v9428_v10, %v4039_v28 }
 0x7fe   : > { %v4177_v31 = vmul.f32 %v7817_v57, %v7817_v57  ;;  %v7841_v1 = vmul.f32 %v9268_v33, %v3783_v41  ;;  %v3673_v30 = vrot.slane %v3672_v18, 2  ;;  %v4055_v19 = vrot.slane %v4054_v9, 4  ;;  %v9439_v57 = vld [vmem:[#allocation49_spill] sm:$0xff] }
 0x7ff   : > { %9431 = vst [vmem:[#allocation83_spill] sm:$0xff] %v7835_v60  ;;  %vm9433_vm10 = vcmp.gt.f32.partialorder %v9432_v52, 0.0  ;;  %v4433_v54 = vsel %vm2411_vm8, %v7750_v43, 0.0  ;;  %v3928_v27 = vadd.f32 %v3927_v53, %v3926_v25  ;;  %v3618_v22 = vmul.f32 %v3570_v55, %v9432_v52 }
 0x800   : > { %v3586_v13 = vsel %vm9433_vm10, %v3570_v55, -1e+30  ;;  %vm9434_vm11 = vmmov %vm9433_vm10  ;;  %v4465_v46 = vsel %vm2411_vm8, %v7759_v59, 0.0  ;;  %v3801_v51 = vrot.slane %v3800_v49, 2  ;;  %v4211_v41 = vmax.f32 %v4195_v20, 0.0 }
 0x801   : > { %v3602_v26 = vsel %vm9434_vm11, %v3570_v55, 1e+30  ;;  %v3656_v10 = vsel %vm9435_vm12, %v3586_v13, -inf  ;;  %v4193_v35 = vsub.f32 %v4145_v8, %v4177_v31  ;;  %v3634_v3 = vmul.f32 %v3618_v22, %v3570_v55  ;;  %vm9456_vm11 = vmmov %vm9417_vm0 }
 0x802   : > { %v3784_v28 = vsel %vm9436_vm13, %v3602_v26, inf  ;;  %v3657_v34 = vrot.slane %v3656_v10, 4  ;;  %v3674_v42 = vmax.f32 %v3672_v18, %v3673_v30  ;;  %v4056_v43 = vadd.f32 %v4055_v19, %v4054_v9  ;;  %vm9457_vm12 = vmmov %vm9417_vm0 }
 0x803   : > { %v3785_v25 = vrot.slane %v3784_v28, 4  ;;  %v3912_v53 = vsel %vm9437_vm14, %v3618_v22, 0.0  ;;  %v3929_v39 = vrot.slane %v3928_v27, 2  ;;  %v3531_v59 = vadd.f32 %v7721_v7, %v7747_v40  ;;  %vm9458_vm13 = vmmov %vm9417_vm0 }
 0x804   : > { %v3658_v60 = vmax.f32 %v3656_v10, %v3657_v34  ;;  %v3913_v52 = vrot.slane %v3912_v53, 4  ;;  %v3802_v47 = vmin.f32 %v3800_v49, %v3801_v51  ;;  %v4040_v0 = vsel %vm9417_vm0, %v3634_v3, 0.0  ;;  %vm9459_vm14 = vmmov %vm9417_vm0 }
 0x805   : > { %v3786_v36 = vmin.f32 %v3784_v28, %v3785_v25  ;;  %v4370_v20 = vsel %vm2411_vm8, %v3586_v13, -inf  ;;  %v4041_v31 = vrot.slane %v4040_v0, 4  ;;  %v4057_v9 = vrot.slane %v4056_v43, 2 }
 0x806   : > { %v3659_v8 = vrot.slane %v3658_v60, 2  ;;  %v3914_v55 = vadd.f32 %v3913_v52, %v3912_v53  ;;  %v4380_v18 = vmax.f32 %v4370_v20, %v7812_v44  ;;  %v4402_v19 = vsel %vm2411_vm8, %v3602_v26, inf }
 0x807   : > { %v3787_v30 = vrot.slane %v3786_v36, 2  ;;  %v4434_v34 = vsel %vm2411_vm8, %v3618_v22, 0.0  ;;  %v3675_v10 = vrot.slane %v3674_v42, 1  ;;  %v4042_v40 = vadd.f32 %v4041_v31, %v4040_v0 }
 0x808   : > { %v3915_v37 = vrot.slane %v3914_v55, 2  ;;  %v4412_v49 = vmin.f32 %v4402_v19, %v7820_v32  ;;  %v3660_v51 = vmax.f32 %v3658_v60, %v3659_v8  ;;  %v4435_v28 = vadd.f32 %v4434_v34, %v4433_v54 }
 0x809   : > { %v4466_v13 = vsel %vm2411_vm8, %v3634_v3, 0.0  ;;  %v3575_v25 = vmax.f32 %v3531_v59, 0.0  ;;  %v3788_v53 = vmin.f32 %v3786_v36, %v3787_v30  ;;  %v4043_v2 = vrot.slane %v4042_v40, 2 }
 0x80a   : > { %v3916_v52 = vadd.f32 %v3915_v37, %v3914_v55  ;;  %v4467_v44 = vadd.f32 %v4466_v13, %v4465_v46  ;;  %v7864_v20 = vadd.f32 1e-05, %v4211_v41  ;;  %v4209_v33 = vmax.f32 %v4193_v35, 0.0 }
 0x80b   : > { %v4437_v26 = vadd.f32 %v4436_v12, %v4435_v28  ;;  %vm9440_vm3 = vcmp.gt.f32.partialorder %v9439_v57, 0.0  ;;  %v4044_v0 = vadd.f32 %v4043_v2, %v4042_v40  ;;  %v3930_v3 = vadd.f32 %v3929_v39, %v3928_v27 }
 0x80c   : > { %9438 = vst [vmem:[#allocation74_spill] sm:$0xff] %v7864_v20  ;;  %v3591_v22 = vsel %vm9440_vm3, %v3575_v25, -1e+30  ;;  %v3917_v15 = vrot.slane %v3916_v52, 1  ;;  %v4469_v32 = vadd.f32 %v7826_v6, %v4467_v44  ;;  %vm9441_vm4 = vmmov %vm9440_vm3  ;;  %v4058_v54 = vadd.f32 %v4057_v9, %v4056_v43 }
 0x80d   : > { %v3607_v60 = vsel %vm9441_vm4, %v3575_v25, 1e+30  ;;  %v3661_v36 = vrot.slane %v3660_v51, 1  ;;  %v7872_v37 = vmul.f32 %v3575_v25, %v9439_v57  ;;  %v3676_v46 = vmax.f32 %v3674_v42, %v3675_v10  ;;  %vm9467_vm4 = vmmov %vm9445_vm1 }
 0x80e   : > { %v3803_v41 = vrot.slane %v3802_v47, 1  ;;  %v4438_v12 = vsel %vm2411_vm8, %v7794_v48, 0.0  ;;  %v3789_v35 = vrot.slane %v3788_v53, 1  ;;  %v4045_v59 = vrot.slane %v4044_v0, 1 }
 0x80f   : > { %v7877_v2 = vmul.f32 %v7872_v37, %v3575_v25  ;;  %v3691_v6 = vsel %vm9442_vm5, %v3591_v22, -inf  ;;  %v3819_v8 = vsel %vm9443_vm2, %v3607_v60, inf  ;;  %v7881_v39 = vadd.f32 1e-05, %v4209_v33  ;;  %vm9468_vm5 = vmmov %vm9445_vm1 }
 0x810   : > { %v4470_v57 = vsel %vm2411_vm8, %v7805_v29, 0.0  ;;  %v3918_v27 = vadd.f32 %v3917_v15, %v3916_v52  ;;  %v3523_v42 = vadd.f32 %v7721_v7, %v7753_v50  ;;  %v3931_v43 = vrot.slane %v3930_v3, 1  ;;  %v9447_v50 = vld [vmem:[#allocation23_spill] sm:$0xff]  ;;  %vm9469_vm2 = vmmov %vm9445_vm1 }
 0x811   : > { %9444 = vst [vmem:[#allocation58_spill] sm:$0xff] %v7881_v39  ;;  %v4059_v48 = vrot.slane %v4058_v54, 1  ;;  %v3662_v55 = vmax.f32 %v3660_v51, %v3661_v36  ;;  %v4075_v31 = vsel %vm9445_vm1, %v7877_v2, 0.0  ;;  %v7889_v9 = vmin.f32 %v3802_v47, %v3803_v41 }
 0x812   : > { %v3790_v30 = vmin.f32 %v3788_v53, %v3789_v35  ;;  %v3692_v19 = vrot.slane %v3691_v6, 4  ;;  %v3820_v34 = vrot.slane %v3819_v8, 4  ;;  %v7892_v33 = vmul.f32 %v3676_v46, %v6091_v23  ;;  %v9451_v53 = vld [vmem:[#allocation22_spill] sm:$0xff] }
 0x813   : > { %v4046_v10 = vadd.f32 %v4045_v59, %v4044_v0  ;;  %v4377_v15 = vsel %vm2411_vm8, %v3591_v22, -inf  ;;  %v4409_v29 = vsel %vm2411_vm8, %v3607_v60, inf  ;;  %v7897_v40 = vmul.f32 %v3918_v27, %v9447_v50  ;;  %v9453_v59 = vld [vmem:[#allocation25_spill] sm:$0xff] }
 0x814   : > { %9446 = vst [vmem:[#allocation62_spill] sm:$0xff] %v7892_v33  ;;  %v3947_v51 = vsel %vm9449_vm6, %v7872_v37, 0.0  ;;  %v4076_v28 = vrot.slane %v4075_v31, 4  ;;  %v7901_v47 = vmax.f32 %v4377_v15, %v4380_v18  ;;  %v7903_v13 = vadd.f32 %v3931_v43, %v3930_v3 }
 0x815   : > { %9448 = vst [vmem:[#allocation61_spill] sm:$0xff] %v7897_v40  ;;  %v4060_v25 = vadd.f32 %v4059_v48, %v4058_v54  ;;  %v7906_v52 = vmul.f32 %v3662_v55, %v9451_v53  ;;  %v7908_v44 = vmin.f32 %v4409_v29, %v4412_v49  ;;  %v7911_v22 = vmul.f32 %v3790_v30, %v9451_v53 }
 0x816   : > { %9450 = vst [vmem:[#allocation67_spill] sm:$0xff] %v7903_v13  ;;  %v3693_v0 = vmax.f32 %v3691_v6, %v3692_v19  ;;  %v7913_v60 = vmin.f32 %v3819_v8, %v3820_v34  ;;  %v3573_v36 = vmax.f32 %v3523_v42, 0.0  ;;  %v4146_v46 = vmul.f32 %v4046_v10, %v9447_v50 }
 0x817   : > { %9452 = vst [vmem:[#allocation48_spill] sm:$0xff] %v7906_v52  ;;  %v3948_v41 = vrot.slane %v3947_v51, 4  ;;  %v4439_v18 = vadd.f32 %v4438_v12, %v4437_v26  ;;  %v4471_v35 = vadd.f32 %v4470_v57, %v4469_v32  ;;  %v4178_v3 = vmul.f32 %v7897_v40, %v7897_v40  ;;  %v9472_v52 = vld [vmem:[#allocation37_spill] sm:$0xff] }
 0x818   : > { %v4077_v54 = vadd.f32 %v4076_v28, %v4075_v31  ;;  %vm9454_vm7 = vcmp.gt.f32.partialorder %v9453_v59, 0.0  ;;  %v3621_v6 = vmul.f32 %v3573_v36, %v9453_v59  ;;  %v3534_v57 = vadd.f32 %v7721_v7, %v7756_v11 }
 0x819   : > { %v3589_v49 = vsel %vm9454_vm7, %v3573_v36, -1e+30  ;;  %vm9455_vm10 = vmmov %vm9454_vm7  ;;  %v3694_v19 = vrot.slane %v3693_v0, 2  ;;  %v7937_v11 = vadd.f32 %v3948_v41, %v3947_v51  ;;  %v9464_v41 = vld [vmem:[#allocation56_spill] sm:$0xff]  ;;  %vm9473_vm6 = vcmp.gt.f32.partialorder %v9472_v52, 0.0 }
 0x81a   : > { %v3605_v27 = vsel %vm9455_vm10, %v3573_v36, 1e+30  ;;  %v3677_v8 = vsel %vm9456_vm11, %v3589_v49, -inf  ;;  %v4373_v43 = vsel %vm2411_vm8, %v3589_v49, -inf  ;;  %v3637_v48 = vmul.f32 %v3621_v6, %v3573_v36  ;;  %vm9475_vm7 = vmmov %vm9473_vm6 }
 0x81b   : > { %v3805_v42 = vsel %vm9457_vm12, %v3605_v27, inf  ;;  %v3678_v26 = vrot.slane %v3677_v8, 4  ;;  %v4386_v12 = vmax.f32 %v4373_v43, %v7901_v47  ;;  %v3933_v55 = vsel %vm9458_vm13, %v3621_v6, 0.0  ;;  %9460 = vst [vmem:[#allocation55_spill] sm:$0xff] %v7937_v11  ;;  %vm9477_vm10 = vmmov %vm9445_vm1 }
 0x81c   : > { %v3806_v32 = vrot.slane %v3805_v42, 4  ;;  %v4405_v31 = vsel %vm2411_vm8, %v3605_v27, inf  ;;  %v4440_v30 = vsel %vm2411_vm8, %v3621_v6, 0.0  ;;  %v3934_v15 = vrot.slane %v3933_v55, 4  ;;  %v9461_v27 = vld [vmem:[#allocation21_spill] sm:$0xff]  ;;  %vm9479_vm11 = vmmov %vm9445_vm1 }
 0x81d   : > { %v3679_v34 = vmax.f32 %v3677_v8, %v3678_v26  ;;  %v4061_v29 = vsel %vm9459_vm14, %v3637_v48, 0.0  ;;  %v4418_v50 = vmin.f32 %v4405_v31, %v7908_v44  ;;  %v7934_v28 = vadd.f32 %v4440_v30, %v4439_v18  ;;  %vm9481_vm12 = vmmov %vm9445_vm1 }
 0x81e   : > { %v3807_v10 = vmin.f32 %v3805_v42, %v3806_v32  ;;  %v4472_v47 = vsel %vm2411_vm8, %v3637_v48, 0.0  ;;  %v4078_v36 = vrot.slane %v4077_v54, 2  ;;  %v4062_v49 = vrot.slane %v4061_v29, 4  ;;  %vm9482_vm13 = vmmov %vm9445_vm1 }
 0x81f   : > { %v3680_v59 = vrot.slane %v3679_v34, 2  ;;  %v7940_v43 = vmul.f32 %v4060_v25, %v9461_v27  ;;  %v7943_v8 = vadd.f32 %v4472_v47, %v4471_v35  ;;  %v3576_v42 = vmax.f32 %v3534_v57, 0.0 }
 0x820   : > { %v4194_v26 = vsub.f32 %v4146_v46, %v4178_v3  ;;  %v3808_v18 = vrot.slane %v3807_v10, 2  ;;  %v4063_v32 = vadd.f32 %v4062_v49, %v4061_v29  ;;  %v7946_v31 = vmax.f32 %v3693_v0, %v3694_v19 }
 0x821   : > { %9462 = vst [vmem:[#allocation54_spill] sm:$0xff] %v7940_v43  ;;  %v3935_v51 = vadd.f32 %v3934_v15, %v3933_v55  ;;  %v7949_v48 = vmul.f32 %v3576_v42, %v9464_v41  ;;  %v3526_v25 = vadd.f32 %v7721_v7, %v7761_v16  ;;  %v4079_v47 = vadd.f32 %v4078_v36, %v4077_v54 }
 0x822   : > { %9463 = vst [vmem:[#allocation44_spill] sm:$0xff] %v7946_v31  ;;  %v3681_v57 = vmax.f32 %v3679_v34, %v3680_v59  ;;  %v7957_v46 = vsel %vm2411_vm8, %v7872_v37, 0.0  ;;  %v7961_v0 = vsel %vm2411_vm8, %v7877_v2, 0.0  ;;  %vm9465_vm0 = vcmp.gt.f32.partialorder %v9464_v41, 0.0 }
 0x823   : > { %v3592_v3 = vsel %vm9465_vm0, %v3576_v42, -1e+30  ;;  %v3640_v55 = vmul.f32 %v7949_v48, %v3576_v42  ;;  %v4210_v16 = vmax.f32 %v4194_v26, 0.0  ;;  %v3809_v19 = vmin.f32 %v3807_v10, %v3808_v18  ;;  %vm9466_vm3 = vmmov %vm9465_vm0 }
 0x824   : > { %v4064_v15 = vrot.slane %v4063_v32, 2  ;;  %v3608_v54 = vsel %vm9466_vm3, %v3576_v42, 1e+30  ;;  %v3936_v29 = vrot.slane %v3935_v51, 2  ;;  %v3574_v36 = vmax.f32 %v3526_v25, 0.0  ;;  %vm9486_vm3 = vmmov %vm9445_vm1 }
 0x825   : > { %v4082_v37 = vsel %vm9467_vm4, %v3640_v55, 0.0  ;;  %v4080_v59 = vrot.slane %v4079_v47, 1  ;;  %v3682_v2 = vrot.slane %v3681_v57, 1  ;;  %v3698_v49 = vsel %vm9468_vm5, %v3592_v3, -inf  ;;  %vm9487_vm4 = vmmov %vm9445_vm1 }
 0x826   : > { %v4379_v6 = vsel %vm2411_vm8, %v3592_v3, -inf  ;;  %v3826_v35 = vsel %vm9469_vm2, %v3608_v54, inf  ;;  %v4083_v26 = vrot.slane %v4082_v37, 4  ;;  %v4411_v18 = vsel %vm2411_vm8, %v3608_v54, inf  ;;  %vm9488_vm5 = vmmov %vm9445_vm1 }
 0x827   : > { %v7973_v10 = vmax.f32 %v4379_v6, %v4386_v12  ;;  %v3810_v42 = vrot.slane %v3809_v19, 1  ;;  %v4065_v41 = vadd.f32 %v4064_v15, %v4063_v32  ;;  %v3954_v34 = vsel %vm9445_vm1, %v7949_v48, 0.0  ;;  %vm9491_vm2 = vmmov %vm9445_vm1 }
 0x828   : > { %v7978_v44 = vmin.f32 %v4411_v18, %v4418_v50  ;;  %v7980_v25 = vadd.f32 1e-05, %v4210_v16  ;;  %v7982_v30 = vadd.f32 %v3936_v29, %v3935_v51  ;;  %v3590_v3 = vsel %vm9473_vm6, %v3574_v36, -1e+30 }
 0x829   : > { %v3622_v33 = vmul.f32 %v3574_v36, %v9472_v52  ;;  %v7987_v12 = vadd.f32 %v4080_v59, %v4079_v47  ;;  %v3699_v6 = vrot.slane %v3698_v49, 4  ;;  %v3827_v54 = vrot.slane %v3826_v35, 4 }
 0x82a   : > { %9470 = vst [vmem:[#allocation82_spill] sm:$0xff] %v7980_v25  ;;  %9471 = vst [vmem:[#allocation41_spill] sm:$0xff] %v7982_v30  ;;  %v3606_v32 = vsel %vm9475_vm7, %v3574_v36, 1e+30  ;;  %v3955_v15 = vrot.slane %v3954_v34, 4  ;;  %v4084_v31 = vadd.f32 %v4083_v26, %v4082_v37  ;;  %v3547_v16 = vadd.f32 %v7721_v7, %v7768_v17 }
 0x82b   : > { %9474 = vst [vmem:[#allocation90_spill] sm:$0xff] %v7987_v12  ;;  %v3638_v50 = vmul.f32 %v3622_v33, %v3574_v36  ;;  %v7993_v51 = vmax.f32 %v3681_v57, %v3682_v2  ;;  %v7995_v29 = vmin.f32 %v3809_v19, %v3810_v42  ;;  %v4066_v18 = vrot.slane %v4065_v41, 1  ;;  %vm9495_vm7 = vmmov %vm9491_vm2 }
 0x82c   : > { %v4375_v20 = vsel %vm2411_vm8, %v3590_v3, -inf  ;;  %v3684_v59 = vsel %vm9477_vm10, %v3590_v3, -inf  ;;  %v4407_v25 = vsel %vm2411_vm8, %v3606_v32, inf  ;;  %v8002_v37 = vmax.f32 %v3698_v49, %v3699_v6  ;;  %vm9496_vm10 = vmmov %vm9491_vm2 }
 0x82d   : > { %9476 = vst [vmem:[#allocation86_spill] sm:$0xff] %v7993_v51  ;;  %v4388_v52 = vmax.f32 %v4375_v20, %v7973_v10  ;;  %v8004_v36 = vmin.f32 %v3826_v35, %v3827_v54  ;;  %v4068_v17 = vsel %vm9479_vm11, %v3638_v50, 0.0  ;;  %v4420_v57 = vmin.f32 %v4407_v25, %v7978_v44  ;;  %vm9498_vm11 = vmmov %vm9491_vm2 }
 0x82e   : > { %9478 = vst [vmem:[#allocation72_spill] sm:$0xff] %v8002_v37  ;;  %v8008_v19 = vadd.f32 %v3955_v15, %v3954_v34  ;;  %v4085_v2 = vrot.slane %v4084_v31, 2  ;;  %v4442_v26 = vsel %vm2411_vm8, %v3622_v33, 0.0  ;;  %v4474_v42 = vsel %vm2411_vm8, %v3638_v50, 0.0 }
 0x82f   : > { %v4067_v3 = vadd.f32 %v4066_v18, %v4065_v41  ;;  %v3685_v47 = vrot.slane %v3684_v59, 4  ;;  %v3812_v20 = vsel %vm9481_vm12, %v3606_v32, inf  ;;  %v4443_v49 = vadd.f32 %v4442_v26, %v7934_v28  ;;  %vm9499_vm12 = vmmov %vm9491_vm2 }
 0x830   : > { %9480 = vst [vmem:[#allocation34_spill] sm:$0xff] %v8008_v19  ;;  %v3940_v35 = vsel %vm9482_vm13, %v3622_v33, 0.0  ;;  %v4069_v10 = vrot.slane %v4068_v17, 4  ;;  %v4475_v6 = vadd.f32 %v4474_v42, %v7943_v8  ;;  %v3579_v54 = vmax.f32 %v3547_v16, 0.0  ;;  %v9483_v33 = vld [vmem:[#allocation12_spill] sm:$0xff] }
 0x831   : > { %v4446_v34 = vsel %vm2411_vm8, %v7949_v48, 0.0  ;;  %v8020_v25 = vsel %vm2411_vm8, %v3640_v55, 0.0  ;;  %v4445_v41 = vadd.f32 %v7957_v46, %v4443_v49  ;;  %v4086_v15 = vadd.f32 %v4085_v2, %v4084_v31 }
 0x832   : > { %v3813_v32 = vrot.slane %v3812_v20, 4  ;;  %v8024_v28 = vadd.f32 %v7961_v0, %v4475_v6  ;;  %vm9484_vm14 = vcmp.gt.f32.partialorder %v9483_v33, 0.0  ;;  %v3941_v8 = vrot.slane %v3940_v35, 4 }
 0x833   : > { %v3595_v50 = vsel %vm9484_vm14, %v3579_v54, -1e+30  ;;  %vm9485_vm0 = vmmov %vm9484_vm14  ;;  %v8031_v18 = vmul.f32 %v3579_v54, %v9483_v33  ;;  %v3686_v55 = vmax.f32 %v3684_v59, %v3685_v47  ;;  %v4070_v26 = vadd.f32 %v4069_v10, %v4068_v17  ;;  %v9489_v59 = vld [vmem:[#allocation24_spill] sm:$0xff] }
 0x834   : > { %v3611_v16 = vsel %vm9485_vm0, %v3579_v54, 1e+30  ;;  %v3719_v48 = vsel %vm9486_vm3, %v3595_v50, -inf  ;;  %v4385_v46 = vsel %vm2411_vm8, %v3595_v50, -inf  ;;  %v3539_v49 = vadd.f32 %v7721_v7, %v7770_v56  ;;  %vm9507_vm0 = vmmov %vm9491_vm2 }
 0x835   : > { %v3847_v31 = vsel %vm9487_vm4, %v3611_v16, inf  ;;  %v8037_v0 = vmul.f32 %v8031_v18, %v3579_v54  ;;  %v3720_v2 = vrot.slane %v3719_v48, 4  ;;  %v3975_v42 = vsel %vm9488_vm5, %v8031_v18, 0.0  ;;  %vm9508_vm3 = vmmov %vm9507_vm0 }
 0x836   : > { %v3848_v6 = vrot.slane %v3847_v31, 4  ;;  %v3976_v33 = vrot.slane %v3975_v42, 4  ;;  %v8043_v44 = vmax.f32 %v4385_v46, %v4388_v52  ;;  %v4417_v47 = vsel %vm2411_vm8, %v3611_v16, inf  ;;  %vm9510_vm4 = vmmov %vm9507_vm0 }
 0x837   : > { %v8047_v17 = vmul.f32 %v4067_v3, %v9489_v59  ;;  %v3814_v10 = vmin.f32 %v3812_v20, %v3813_v32  ;;  %v4103_v54 = vsel %vm9491_vm2, %v8037_v0, 0.0  ;;  %v8051_v50 = vmin.f32 %v4417_v47, %v4420_v57  ;;  %v9492_v20 = vld [vmem:[#allocation20_spill] sm:$0xff]  ;;  %vm9511_vm5 = vmmov %vm9507_vm0 }
 0x838   : > { %v4087_v51 = vrot.slane %v4086_v15, 1  ;;  %v4071_v37 = vrot.slane %v4070_v26, 2  ;;  %v3977_v39 = vadd.f32 %v3976_v33, %v3975_v42  ;;  %v4104_v43 = vrot.slane %v4103_v54, 4 }
 0x839   : > { %9490 = vst [vmem:[#allocation70_spill] sm:$0xff] %v8047_v17  ;;  %v3687_v56 = vrot.slane %v3686_v55, 2  ;;  %v8053_v12 = vadd.f32 %v3941_v8, %v3940_v35  ;;  %v3721_v52 = vmax.f32 %v3719_v48, %v3720_v2  ;;  %v3577_v46 = vmax.f32 %v3539_v49, 0.0 }
 0x83a   : > { %v3849_v14 = vmin.f32 %v3847_v31, %v3848_v6  ;;  %v3978_v16 = vrot.slane %v3977_v39, 2  ;;  %v4105_v40 = vadd.f32 %v4104_v43, %v4103_v54  ;;  %v4447_v3 = vadd.f32 %v4446_v34, %v4445_v41 }
 0x83b   : > { %v3815_v17 = vrot.slane %v3814_v10, 2  ;;  %vm9493_vm1 = vcmp.gt.f32.partialorder %v9492_v20, 0.0  ;;  %v3625_v47 = vmul.f32 %v3577_v46, %v9492_v20  ;;  %v4072_v42 = vadd.f32 %v4071_v37, %v4070_v26 }
 0x83c   : > { %v3593_v32 = vsel %vm9493_vm1, %v3577_v46, -1e+30  ;;  %vm9494_vm6 = vmmov %vm9493_vm1  ;;  %v3979_v33 = vadd.f32 %v3978_v16, %v3977_v39  ;;  %v4106_v53 = vrot.slane %v4105_v40, 2  ;;  %v3722_v8 = vrot.slane %v3721_v52, 2 }
 0x83d   : > { %v3609_v57 = vsel %vm9494_vm6, %v3577_v46, 1e+30  ;;  %v3705_v35 = vsel %vm9495_vm7, %v3593_v32, -inf  ;;  %v3641_v48 = vmul.f32 %v3625_v47, %v3577_v46  ;;  %v3850_v34 = vrot.slane %v3849_v14, 2  ;;  %vm9519_vm6 = vmmov %vm9507_vm0 }
 0x83e   : > { %v3706_v31 = vrot.slane %v3705_v35, 4  ;;  %v3833_v43 = vsel %vm9496_vm10, %v3609_v57, inf  ;;  %v3980_v41 = vrot.slane %v3979_v33, 1  ;;  %v4107_v2 = vadd.f32 %v4106_v53, %v4105_v40  ;;  %vm9521_vm7 = vmmov %vm9507_vm0 }
 0x83f   : > { %v3834_v49 = vrot.slane %v3833_v43, 4  ;;  %v8062_v6 = vadd.f32 %v4087_v51, %v4086_v15  ;;  %v3961_v59 = vsel %vm9498_vm11, %v3625_v47, 0.0  ;;  %v4089_v37 = vsel %vm9499_vm12, %v3641_v48, 0.0  ;;  %vm9522_vm10 = vmmov %vm9507_vm0 }
 0x840   : > { %v3707_v54 = vmax.f32 %v3705_v35, %v3706_v31  ;;  %v3688_v39 = vmax.f32 %v3686_v55, %v3687_v56  ;;  %v3981_v26 = vadd.f32 %v3980_v41, %v3979_v33  ;;  %v4108_v16 = vrot.slane %v4107_v2, 1  ;;  %v9500_v55 = vld [vmem:[#allocation30_spill] sm:$0xff]  ;;  %vm9523_vm11 = vmmov %vm9507_vm0 }
 0x841   : > { %9497 = vst [vmem:[#allocation88_spill] sm:$0xff] %v8062_v6  ;;  %v3835_v20 = vmin.f32 %v3833_v43, %v3834_v49  ;;  %v3943_v46 = vrot.slane %v8053_v12, 2  ;;  %v4073_v13 = vrot.slane %v4072_v42, 1  ;;  %v3962_v27 = vrot.slane %v3961_v59, 4 }
 0x842   : > { %v4090_v19 = vrot.slane %v4089_v37, 4  ;;  %v8067_v5 = vmin.f32 %v3814_v10, %v3815_v17  ;;  %v3723_v40 = vmax.f32 %v3721_v52, %v3722_v8  ;;  %v3851_v53 = vmin.f32 %v3849_v14, %v3850_v34 }
 0x843   : > { %v3708_v51 = vrot.slane %v3707_v54, 2  ;;  %v4109_v15 = vadd.f32 %v4108_v16, %v4107_v2  ;;  %v3963_v35 = vadd.f32 %v3962_v27, %v3961_v59  ;;  %v4381_v6 = vsel %vm2411_vm8, %v3593_v32, -inf }
 0x844   : > { %v4091_v31 = vadd.f32 %v4090_v19, %v4089_v37  ;;  %v3689_v11 = vrot.slane %v3688_v39, 1  ;;  %v8071_v56 = vmul.f32 %v3981_v26, %v9500_v55  ;;  %v3836_v33 = vrot.slane %v3835_v20, 2 }
 0x845   : > { %v4390_v43 = vmax.f32 %v4381_v6, %v8043_v44  ;;  %v4074_v41 = vadd.f32 %v4073_v13, %v4072_v42  ;;  %v3964_v49 = vrot.slane %v3963_v35, 2  ;;  %v4413_v17 = vsel %vm2411_vm8, %v3609_v57, inf }
 0x846   : > { %9501 = vst [vmem:[#allocation84_spill] sm:$0xff] %v8071_v56  ;;  %v4092_v30 = vrot.slane %v4091_v31, 2  ;;  %v3724_v10 = vrot.slane %v3723_v40, 1  ;;  %v3852_v14 = vrot.slane %v3851_v53, 1  ;;  %v4426_v52 = vmin.f32 %v4413_v17, %v8051_v50 }
 0x847   : > { %v4448_v27 = vsel %vm2411_vm8, %v3625_v47, 0.0  ;;  %v4155_v19 = vmul.f32 %v4109_v15, %v9500_v55  ;;  %v3709_v59 = vmax.f32 %v3707_v54, %v3708_v51  ;;  %v3965_v32 = vadd.f32 %v3964_v49, %v3963_v35 }
 0x848   : > { %v8078_v8 = vadd.f32 %v4448_v27, %v4447_v3  ;;  %v4187_v44 = vmul.f32 %v8071_v56, %v8071_v56  ;;  %v3837_v13 = vmin.f32 %v3835_v20, %v3836_v33  ;;  %v4479_v42 = vadd.f32 %v8020_v25, %v8024_v28  ;;  %v9503_v28 = vld [vmem:[#allocation27_spill] sm:$0xff]  ;;  %v9504_v20 = vld [vmem:[#allocation65_spill] sm:$0xff] }
 0x849   : > { %v4480_v57 = vsel %vm2411_vm8, %v3641_v48, 0.0  ;;  %v8087_v50 = vadd.f32 %v3943_v46, %v8053_v12  ;;  %v4093_v47 = vadd.f32 %v4092_v30, %v4091_v31  ;;  %v3550_v2 = vadd.f32 %v7721_v7, %v7772_v24 }
 0x84a   : > { %v8091_v3 = vmax.f32 %v3688_v39, %v3689_v11  ;;  %v8095_v6 = vsel %vm2411_vm8, %v8031_v18, 0.0  ;;  %v8097_v54 = vadd.f32 %v4480_v57, %v4479_v42  ;;  %v3542_v25 = vadd.f32 %v7721_v7, %v7776_v63  ;;  %v9512_v57 = vld [vmem:[#allocation10_spill] sm:$0xff] }
 0x84b   : > { %v8102_v48 = vmul.f32 %v4074_v41, %v9503_v28  ;;  %v3725_v12 = vmax.f32 %v3723_v40, %v3724_v10  ;;  %v3966_v37 = vrot.slane %v3965_v32, 1  ;;  %v3580_v30 = vmax.f32 %v3550_v2, 0.0 }
 0x84c   : > { %9502 = vst [vmem:[#allocation5_spill] sm:$0xff] %v8091_v3  ;;  %v3853_v26 = vmin.f32 %v3851_v53, %v3852_v14  ;;  %v4203_v16 = vsub.f32 %v4155_v19, %v4187_v44  ;;  %v3710_v24 = vrot.slane %v3709_v59, 1  ;;  %v3838_v11 = vrot.slane %v3837_v13, 1 }
 0x84d   : > { %v4094_v39 = vrot.slane %v4093_v47, 1  ;;  %vm9505_vm13 = vcmp.gt.f32.partialorder %v9504_v20, 0.0  ;;  %v3578_v51 = vmax.f32 %v3542_v25, 0.0  ;;  %v3628_v63 = vmul.f32 %v3580_v30, %v9504_v20  ;;  %v9515_v25 = vld [vmem:[#allocation26_spill] sm:$0xff] }
 0x84e   : > { %v3596_v18 = vsel %vm9505_vm13, %v3580_v30, -1e+30  ;;  %vm9506_vm14 = vmmov %vm9505_vm13  ;;  %v3967_v53 = vadd.f32 %v3966_v37, %v3965_v32  ;;  %v8115_v41 = vmul.f32 %v3725_v12, %v9289_v61  ;;  %v4219_v49 = vmax.f32 %v4203_v16, 0.0  ;;  %v9520_v16 = vld [vmem:[#allocation17_spill] sm:$0xff] }
 0x84f   : > { %v3612_v46 = vsel %vm9506_vm14, %v3580_v30, 1e+30  ;;  %v3726_v15 = vsel %vm9507_vm0, %v3596_v18, -inf  ;;  %v4387_v35 = vsel %vm2411_vm8, %v3596_v18, -inf  ;;  %v8119_v17 = vsel %vm2411_vm8, %v8037_v0, 0.0  ;;  %vm9528_vm14 = vmmov %vm9507_vm0 }
 0x850   : > { %v3854_v40 = vsel %vm9508_vm3, %v3612_v46, inf  ;;  %v3727_v31 = vrot.slane %v3726_v15, 4  ;;  %v8112_v33 = vmax.f32 %v4387_v35, %v4390_v43  ;;  %9509 = vst [vmem:[#allocation7_spill] sm:$0xff] %v8115_v41  ;;  %v8121_v10 = vmul.f32 %v3628_v63, %v3580_v30  ;;  %vm9531_vm3 = vmmov %vm9507_vm0 }
 0x851   : > { %v3855_v55 = vrot.slane %v3854_v40, 4  ;;  %v8124_v14 = vmul.f32 %v3853_v26, %v9289_v61  ;;  %v3839_v27 = vmin.f32 %v3837_v13, %v3838_v11  ;;  %v4095_v19 = vadd.f32 %v4094_v39, %v4093_v47 }
 0x852   : > { %v4419_v32 = vsel %vm2411_vm8, %v3612_v46, inf  ;;  %v3982_v43 = vsel %vm9510_vm4, %v3628_v63, 0.0  ;;  %v4110_v44 = vsel %vm9511_vm5, %v8121_v10, 0.0  ;;  %vm9513_vm2 = vcmp.gt.f32.partialorder %v9512_v57, 0.0  ;;  %vm9534_vm4 = vmmov %vm9507_vm0 }
 0x853   : > { %v8130_v42 = vmin.f32 %v4419_v32, %v4426_v52  ;;  %v3594_v0 = vsel %vm9513_vm2, %v3578_v51, -1e+30  ;;  %v8134_v2 = vmax.f32 %v3709_v59, %v3710_v24  ;;  %v8137_v12 = vmul.f32 %v9515_v25, %v3967_v53  ;;  %vm9518_vm1 = vmmov %vm9513_vm2 }
 0x854   : > { %v3728_v37 = vmax.f32 %v3726_v15, %v3727_v31  ;;  %v3856_v13 = vmin.f32 %v3854_v40, %v3855_v55  ;;  %v8139_v47 = vadd.f32 1e-05, %v4219_v49  ;;  %v3610_v30 = vsel %vm9518_vm1, %v3578_v51, 1e+30  ;;  %vm9538_vm1 = vmmov %vm9507_vm0 }
 0x855   : > { %9514 = vst [vmem:[#allocation13_spill] sm:$0xff] %v8134_v2  ;;  %9516 = vst [vmem:[#allocation89_spill] sm:$0xff] %v8137_v12  ;;  %v3626_v26 = vmul.f32 %v3578_v51, %v9512_v57  ;;  %v3712_v52 = vsel %vm9519_vm6, %v3594_v0, -inf  ;;  %v8146_v11 = vmul.f32 %v9520_v16, %v3839_v27  ;;  %v3983_v39 = vrot.slane %v3982_v43, 4 }
 0x856   : > { %9517 = vst [vmem:[#allocation85_spill] sm:$0xff] %v8139_v47  ;;  %v4111_v59 = vrot.slane %v4110_v44, 4  ;;  %v3563_v24 = vadd.f32 %v7721_v7, %v7782_v4  ;;  %v4153_v20 = vmul.f32 %v9515_v25, %v4095_v19  ;;  %v3713_v46 = vrot.slane %v3712_v52, 4  ;;  %vm9539_vm6 = vmmov %vm9507_vm0 }
 0x857   : > { %v3642_v18 = vmul.f32 %v3626_v26, %v3578_v51  ;;  %v3840_v15 = vsel %vm9521_vm7, %v3610_v30, inf  ;;  %v4185_v40 = vmul.f32 %v8137_v12, %v8137_v12  ;;  %v3729_v35 = vrot.slane %v3728_v37, 2  ;;  %vm9540_vm7 = vmmov %vm9507_vm0 }
 0x858   : > { %v3857_v53 = vrot.slane %v3856_v13, 2  ;;  %v3841_v31 = vrot.slane %v3840_v15, 4  ;;  %v3714_v55 = vmax.f32 %v3712_v52, %v3713_v46  ;;  %v3968_v49 = vsel %vm9522_vm10, %v3626_v26, 0.0  ;;  %vm9541_vm10 = vmmov %vm9507_vm0 }
 0x859   : > { %v4096_v27 = vsel %vm9523_vm11, %v3642_v18, 0.0  ;;  %v3555_v4 = vadd.f32 %v7721_v7, %v7789_v38  ;;  %v3984_v32 = vadd.f32 %v3983_v39, %v3982_v43  ;;  %v4112_v19 = vadd.f32 %v4111_v59, %v4110_v44 }
 0x85a   : > { %v3842_v51 = vmin.f32 %v3840_v15, %v3841_v31  ;;  %v8160_v57 = vadd.f32 %v7721_v7, %v7796_v45  ;;  %v3715_v25 = vrot.slane %v3714_v55, 2  ;;  %v3969_v34 = vrot.slane %v3968_v49, 4 }
 0x85b   : > { %v4097_v2 = vrot.slane %v4096_v27, 4  ;;  %v8164_v52 = vadd.f32 %v7721_v7, %v7807_v21  ;;  %v4201_v46 = vsub.f32 %v4153_v20, %v4185_v40  ;;  %v3730_v41 = vmax.f32 %v3728_v37, %v3729_v35 }
 0x85c   : > { %v3858_v3 = vmin.f32 %v3856_v13, %v3857_v53  ;;  %v8167_v47 = vsel %vm2411_vm8, %v3628_v63, 0.0  ;;  %v3843_v38 = vrot.slane %v3842_v51, 2  ;;  %v3970_v43 = vadd.f32 %v3969_v34, %v3968_v49 }
 0x85d   : > { %v4098_v44 = vadd.f32 %v4097_v2, %v4096_v27  ;;  %v4383_v39 = vsel %vm2411_vm8, %v3594_v0, -inf  ;;  %v3985_v45 = vrot.slane %v3984_v32, 2  ;;  %v4113_v59 = vrot.slane %v4112_v19, 2 }
 0x85e   : > { %v4394_v15 = vmax.f32 %v4383_v39, %v8112_v33  ;;  %v4450_v31 = vsel %vm2411_vm8, %v3626_v26, 0.0  ;;  %v3716_v16 = vmax.f32 %v3714_v55, %v3715_v25  ;;  %v3971_v7 = vrot.slane %v3970_v43, 2 }
 0x85f   : > { %v4099_v21 = vrot.slane %v4098_v44, 2  ;;  %v4415_v37 = vsel %vm2411_vm8, %v3610_v30, inf  ;;  %v3731_v13 = vrot.slane %v3730_v41, 1  ;;  %v4451_v20 = vadd.f32 %v4450_v31, %v8078_v8 }
 0x860   : > { %v4428_v63 = vmin.f32 %v4415_v37, %v8130_v42  ;;  %v4482_v34 = vsel %vm2411_vm8, %v3642_v18, 0.0  ;;  %v4217_v2 = vmax.f32 %v4201_v46, 0.0  ;;  %v3844_v0 = vmin.f32 %v3842_v51, %v3843_v38  ;;  %v9524_v51 = vld [vmem:[#allocation73_spill] sm:$0xff] }
 0x861   : > { %v3972_v40 = vadd.f32 %v3971_v7, %v3970_v43  ;;  %v4100_v35 = vadd.f32 %v4099_v21, %v4098_v44  ;;  %v3859_v53 = vrot.slane %v3858_v3, 1  ;;  %v8177_v33 = vadd.f32 %v8095_v6, %v4451_v20  ;;  %v9530_v20 = vld [vmem:[#allocation76_spill] sm:$0xff] }
 0x862   : > { %v4483_v26 = vadd.f32 %v4482_v34, %v8097_v54  ;;  %v3583_v55 = vmax.f32 %v3563_v24, 0.0  ;;  %v3986_v49 = vadd.f32 %v3985_v45, %v3984_v32  ;;  %v4114_v30 = vadd.f32 %v4113_v59, %v4112_v19 }
 0x863   : > { %v3717_v27 = vrot.slane %v3716_v16, 1  ;;  %v3973_v25 = vrot.slane %v3972_v40, 1  ;;  %v3732_v42 = vmax.f32 %v3730_v41, %v3731_v13  ;;  %v8182_v8 = vsel %vm2411_vm8, %v8121_v10, 0.0 }
 0x864   : > { %v8185_v18 = vadd.f32 %v8119_v17, %v4483_v26  ;;  %vm9525_vm12 = vcmp.gt.f32.partialorder %v9524_v51, 0.0  ;;  %v3845_v6 = vrot.slane %v3844_v0, 1  ;;  %v4101_v38 = vrot.slane %v4100_v35, 1 }
 0x865   : > { %v3599_v46 = vsel %vm9525_vm12, %v3583_v55, -1e+30  ;;  %vm9526_vm13 = vmmov %vm9525_vm12  ;;  %v8192_v24 = vmul.f32 %v3583_v55, %v9524_v51  ;;  %v8194_v32 = vadd.f32 1e-05, %v4217_v2  ;;  %v8196_v41 = vmin.f32 %v3858_v3, %v3859_v53 }
 0x866   : > { %v3615_v54 = vsel %vm9526_vm13, %v3583_v55, 1e+30  ;;  %v3974_v10 = vadd.f32 %v3973_v25, %v3972_v40  ;;  %v4393_v19 = vsel %vm2411_vm8, %v3599_v46, -inf  ;;  %v3987_v17 = vrot.slane %v3986_v49, 1  ;;  %vm9548_vm13 = vmmov %vm9507_vm0 }
 0x867   : > { %9527 = vst [vmem:[#allocation60_spill] sm:$0xff] %v8194_v32  ;;  %v4115_v43 = vrot.slane %v4114_v30, 1  ;;  %v3718_v44 = vmax.f32 %v3716_v16, %v3717_v27  ;;  %v8200_v39 = vmul.f32 %v8192_v24, %v3583_v55  ;;  %v3747_v45 = vsel %vm9528_vm14, %v3599_v46, -inf  ;;  %v9535_v27 = vld [vmem:[#allocation29_spill] sm:$0xff] }
 0x868   : > { %v8203_v59 = vmax.f32 %v4393_v19, %v4394_v15  ;;  %v4425_v31 = vsel %vm2411_vm8, %v3615_v54, inf  ;;  %v3581_v7 = vmax.f32 %v3555_v4, 0.0  ;;  %v8207_v21 = vmul.f32 %v3732_v42, %v9229_v62  ;;  %v9532_v4 = vld [vmem:[#allocation38_spill] sm:$0xff] }
 0x869   : > { %v3846_v3 = vmin.f32 %v3844_v0, %v3845_v6  ;;  %v4102_v37 = vadd.f32 %v4101_v38, %v4100_v35  ;;  %v4131_v13 = vsel %vm9507_vm0, %v8200_v39, 0.0  ;;  %v8212_v16 = vmul.f32 %v3974_v10, %v9530_v20 }
 0x86a   : > { %9529 = vst [vmem:[#allocation6_spill] sm:$0xff] %v8207_v21  ;;  %v3875_v34 = vsel %vm9531_vm3, %v3615_v54, inf  ;;  %v4132_v2 = vrot.slane %v4131_v13, 4  ;;  %v8215_v40 = vmin.f32 %v4425_v31, %v4428_v63  ;;  %v8217_v15 = vadd.f32 %v3987_v17, %v3986_v49  ;;  %vm9555_vm3 = vmmov %vm9538_vm1 }
 0x86b   : > { %v4116_v53 = vadd.f32 %v4115_v43, %v4114_v30  ;;  %v8220_v26 = vmul.f32 %v3718_v44, %v9532_v4  ;;  %v3748_v55 = vrot.slane %v3747_v45, 4  ;;  %v4003_v0 = vsel %vm9534_vm4, %v8192_v24, 0.0  ;;  %vm9556_vm4 = vmmov %vm9538_vm1 }
 0x86c   : > { %v4133_v35 = vadd.f32 %v4132_v2, %v4131_v13  ;;  %vm9536_vm5 = vcmp.gt.f32.partialorder %v9535_v27, 0.0  ;;  %v8229_v63 = vmul.f32 %v3846_v3, %v9532_v4  ;;  %v4154_v49 = vmul.f32 %v4102_v37, %v9530_v20 }
 0x86d   : > { %9533 = vst [vmem:[#allocation3_spill] sm:$0xff] %v8220_v26  ;;  %v3597_v25 = vsel %vm9536_vm5, %v3581_v7, -1e+30  ;;  %vm9537_vm2 = vmmov %vm9536_vm5  ;;  %v3876_v30 = vrot.slane %v3875_v34, 4  ;;  %v3629_v51 = vmul.f32 %v3581_v7, %v9535_v27  ;;  %v4186_v46 = vmul.f32 %v8212_v16, %v8212_v16 }
 0x86e   : > { %v3613_v42 = vsel %vm9537_vm2, %v3581_v7, 1e+30  ;;  %v3733_v6 = vsel %vm9538_vm1, %v3597_v25, -inf  ;;  %v4389_v54 = vsel %vm2411_vm8, %v3597_v25, -inf  ;;  %v3749_v10 = vmax.f32 %v3747_v45, %v3748_v55  ;;  %vm9557_vm5 = vmmov %vm9538_vm1 }
 0x86f   : > { %v3861_v38 = vsel %vm9539_vm6, %v3613_v42, inf  ;;  %v4004_v19 = vrot.slane %v4003_v0, 4  ;;  %v3645_v17 = vmul.f32 %v3629_v51, %v3581_v7  ;;  %v3734_v43 = vrot.slane %v3733_v6, 4  ;;  %vm9558_vm2 = vmmov %vm9538_vm1 }
 0x870   : > { %v4134_v44 = vrot.slane %v4133_v35, 2  ;;  %v3862_v31 = vrot.slane %v3861_v38, 4  ;;  %v3989_v3 = vsel %vm9540_vm7, %v3629_v51, 0.0  ;;  %v4397_v37 = vmax.f32 %v4389_v54, %v8203_v59  ;;  %vm9561_vm6 = vmmov %vm9538_vm1 }
 0x871   : > { %v3735_v13 = vmax.f32 %v3733_v6, %v3734_v43  ;;  %v3990_v20 = vrot.slane %v3989_v3, 4  ;;  %v4117_v2 = vsel %vm9541_vm10, %v3645_v17, 0.0  ;;  %v4421_v27 = vsel %vm2411_vm8, %v3613_v42, inf  ;;  %vm9562_vm7 = vmmov %vm9538_vm1 }
 0x872   : > { %v8242_v21 = vmin.f32 %v3875_v34, %v3876_v30  ;;  %v3863_v32 = vmin.f32 %v3861_v38, %v3862_v31  ;;  %v4118_v25 = vrot.slane %v4117_v2, 4  ;;  %v4429_v45 = vmin.f32 %v4421_v27, %v8215_v40 }
 0x873   : > { %v3736_v7 = vrot.slane %v3735_v13, 2  ;;  %v3991_v55 = vadd.f32 %v3990_v20, %v3989_v3  ;;  %v4455_v12 = vadd.f32 %v8167_v47, %v8177_v33  ;;  %v4456_v56 = vsel %vm2411_vm8, %v3629_v51, 0.0  ;;  %v9542_v33 = vld [vmem:[#allocation46_spill] sm:$0xff]  ;;  %v9564_v20 = vld [vmem:[#allocation39_spill] sm:$0xff] }
 0x874   : > { %v4202_v59 = vsub.f32 %v4154_v49, %v4186_v46  ;;  %v3750_v6 = vrot.slane %v3749_v10, 2  ;;  %v4119_v54 = vadd.f32 %v4118_v25, %v4117_v2  ;;  %v4487_v43 = vadd.f32 %v8182_v8, %v8185_v18 }
 0x875   : > { %v4135_v42 = vadd.f32 %v4134_v44, %v4133_v35  ;;  %v3864_v34 = vrot.slane %v3863_v32, 2  ;;  %v8250_v30 = vadd.f32 %v4456_v56, %v4455_v12  ;;  %v4488_v38 = vsel %vm2411_vm8, %v3645_v17, 0.0  ;;  %v9543_v35 = vld [vmem:[#allocation81_spill] sm:$0xff] }
 0x876   : > { %v3737_v40 = vmax.f32 %v3735_v13, %v3736_v7  ;;  %v3992_v31 = vrot.slane %v3991_v55, 2  ;;  %v8253_v3 = vadd.f32 %v4488_v38, %v4487_v43  ;;  %v3584_v47 = vmax.f32 %v8160_v57, 0.0 }
 0x877   : > { %v8257_v51 = vmul.f32 %v4116_v53, %v9542_v33  ;;  %v8263_v8 = vsel %vm2411_vm8, %v8192_v24, 0.0  ;;  %v4218_v56 = vmax.f32 %v4202_v59, 0.0  ;;  %v8265_v12 = vadd.f32 %v4004_v19, %v4003_v0 }
 0x878   : > { %v4120_v18 = vrot.slane %v4119_v54, 2  ;;  %vm9544_vm11 = vcmp.gt.f32.partialorder %v9543_v35, 0.0  ;;  %v8269_v44 = vmax.f32 %v3749_v10, %v3750_v6  ;;  %v4136_v57 = vrot.slane %v4135_v42, 1 }
 0x879   : > { %v3600_v17 = vsel %vm9544_vm11, %v3584_v47, -1e+30  ;;  %v3865_v53 = vmin.f32 %v3863_v32, %v3864_v34  ;;  %v3632_v13 = vmul.f32 %v3584_v47, %v9543_v35  ;;  %v4492_v2 = vsel %vm2411_vm8, %v8200_v39, 0.0  ;;  %vm9546_vm12 = vmmov %vm9544_vm11 }
 0x87a   : > { %9545 = vst [vmem:[#allocation11_spill] sm:$0xff] %v8269_v44  ;;  %v3738_v24 = vrot.slane %v3737_v40, 1  ;;  %v8275_v27 = vadd.f32 %v3992_v31, %v3991_v55  ;;  %v3616_v0 = vsel %vm9546_vm12, %v3584_v47, 1e+30  ;;  %v4395_v25 = vsel %vm2411_vm8, %v3600_v17, -inf }
 0x87b   : > { %v3648_v19 = vmul.f32 %v3632_v13, %v3584_v47  ;;  %v3582_v10 = vmax.f32 %v8164_v52, 0.0  ;;  %v8281_v7 = vadd.f32 1e-05, %v4218_v56  ;;  %v4121_v59 = vadd.f32 %v4120_v18, %v4119_v54  ;;  %v9552_v18 = vld [vmem:[#allocation43_spill] sm:$0xff] }
 0x87c   : > { %v8284_v6 = vmax.f32 %v4395_v25, %v4397_v37  ;;  %v8287_v43 = vadd.f32 %v4136_v57, %v4135_v42  ;;  %v3866_v55 = vrot.slane %v3865_v53, 1  ;;  %v8290_v38 = vmax.f32 %v3737_v40, %v3738_v24 }
 0x87d   : > { %v4138_v34 = vsel %vm9548_vm13, %v3648_v19, 0.0  ;;  %v4427_v52 = vsel %vm2411_vm8, %v3616_v0, inf  ;;  %v9550_v47 = vrot.slane %v8067_v5, 1  ;;  %vm9553_vm14 = vcmp.gt.f32.partialorder %v9552_v18, 0.0 }
 0x87e   : > { %9547 = vst [vmem:[#allocation8_spill] sm:$0xff] %v8284_v6  ;;  %9549 = vst [vmem:[#allocation19_spill] sm:$0xff] %v8290_v38  ;;  %v4139_v54 = vrot.slane %v4138_v34, 4  ;;  %v8297_v37 = vmin.f32 %v4427_v52, %v4429_v45  ;;  %v3598_v42 = vsel %vm9553_vm14, %v3582_v10, -1e+30  ;;  %v4122_v57 = vrot.slane %v4121_v59, 1 }
 0x87f   : > { %v3818_v56 = vmin.f32 %v8067_v5, %v9550_v47  ;;  %vm9554_vm0 = vmmov %vm9553_vm14  ;;  %v8304_v40 = vsel %vm9555_vm3, %v3600_v17, -inf  ;;  %v3882_v24 = vsel %vm9556_vm4, %v3616_v0, inf  ;;  %v3630_v25 = vmul.f32 %v3582_v10, %v9552_v18 }
 0x880   : > { %9551 = vst [vmem:[#allocation14_spill] sm:$0xff] %v8297_v37  ;;  %v3614_v35 = vsel %vm9554_vm0, %v3582_v10, 1e+30  ;;  %v8308_v49 = vmin.f32 %v3865_v53, %v3866_v55  ;;  %v8311_v5 = vsel %vm9557_vm5, %v3632_v13, 0.0  ;;  %v3740_v45 = vsel %vm9558_vm2, %v3598_v42, -inf }
 0x881   : > { %v8315_v52 = vsel %vm2411_vm8, %v3598_v42, -inf  ;;  %v3646_v47 = vmul.f32 %v3630_v25, %v3582_v10  ;;  %v3868_v39 = vsel %vm9538_vm1, %v3614_v35, inf  ;;  %v8321_v0 = vsel %vm2411_vm8, %v3614_v35, inf }
 0x882   : > { %9559 = vst [vmem:[#allocation15_spill] sm:$0xff] %v8315_v52  ;;  %9560 = vst [vmem:[#allocation9_spill] sm:$0xff] %v8321_v0  ;;  %v3883_v55 = vrot.slane %v3882_v24, 4  ;;  %v4140_v18 = vadd.f32 %v4139_v54, %v4138_v34  ;;  %v4123_v31 = vadd.f32 %v4122_v57, %v4121_v59  ;;  %v4458_v10 = vsel %vm2411_vm8, %v3630_v25, 0.0 }
 0x883   : > { %v4124_v42 = vsel %vm9561_vm6, %v3646_v47, 0.0  ;;  %v4490_v46 = vsel %vm2411_vm8, %v3646_v47, 0.0  ;;  %v3741_v17 = vrot.slane %v3740_v45, 4  ;;  %v3869_v26 = vrot.slane %v3868_v39, 4 }
 0x884   : > { %v4125_v35 = vrot.slane %v4124_v42, 4  ;;  %v3996_v38 = vsel %vm9562_vm7, %v3630_v25, 0.0  ;;  %v4459_v53 = vadd.f32 %v4458_v10, %v8250_v30  ;;  %v4491_v34 = vadd.f32 %v4490_v46, %v8253_v3 }
 0x885   : > { %v9563_v54 = vrot.slane %v7913_v60, 2  ;;  %v8336_v57 = vmin.f32 %v3882_v24, %v3883_v55  ;;  %v4141_v32 = vrot.slane %v4140_v18, 2  ;;  %v4462_v47 = vsel %vm2411_vm8, %v3632_v13, 0.0 }
 0x886   : > { %v4126_v37 = vadd.f32 %v4125_v35, %v4124_v42  ;;  %v8340_v0 = vmul.f32 %v4123_v31, %v9564_v20  ;;  %v4461_v44 = vadd.f32 %v8263_v8, %v4459_v53  ;;  %v4493_v25 = vadd.f32 %v4492_v2, %v4491_v34  ;;  %v9565_v42 = vld [vmem:[#allocation31_spill] sm:$0xff] }
 0x887   : > { %v3823_v59 = vmin.f32 %v7913_v60, %v9563_v54  ;;  %v4494_v30 = vsel %vm2411_vm8, %v3648_v19, 0.0  ;;  %v3742_v3 = vmax.f32 %v3740_v45, %v3741_v17  ;;  %v3870_v46 = vmin.f32 %v3868_v39, %v3869_v26  ;;  %v9566_v2 = vld [vmem:[#allocation71_spill] sm:$0xff] }
 0x888   : > { %v3997_v10 = vrot.slane %v3996_v38, 4  ;;  %v4463_v52 = vadd.f32 %v4462_v47, %v4461_v44  ;;  %v4495_v60 = vadd.f32 %v4494_v30, %v4493_v25  ;;  %v3829_v55 = vrot.slane %v8004_v36, 2  ;;  %v9568_v44 = vld [vmem:[#allocation32_spill] sm:$0xff]  ;;  %v9569_v45 = vld [vmem:[#allocation35_spill] sm:$0xff] }
 0x889   : > { %v3824_v6 = vrot.slane %v3823_v59, 1  ;;  %v4142_v54 = vadd.f32 %v4141_v32, %v4140_v18  ;;  %v4127_v13 = vrot.slane %v4126_v37, 2  ;;  %v3892_v31 = vmul.f32 %v7889_v9, %v6091_v23 }
 0x88a   : > { %v3893_v8 = vmul.f32 %v7995_v29, %v9565_v42  ;;  %v8350_v53 = vmul.f32 %v4463_v52, %v9566_v2  ;;  %v8353_v19 = vmul.f32 %v4495_v60, %v9566_v2  ;;  %v3830_v26 = vmin.f32 %v8004_v36, %v3829_v55  ;;  %v9575_v60 = vld [vmem:[#allocation41_spill] sm:$0xff] }
 0x88b   : > { %v3825_v24 = vmin.f32 %v3823_v59, %v3824_v6  ;;  %v3894_v6 = vmul.f32 %v3818_v56, %v9568_v44  ;;  %v3743_v39 = vrot.slane %v3742_v3, 2  ;;  %v9570_v17 = vrot.slane %v7911_v22, 7 }
 0x88c   : > { %9567 = vst [vmem:[#allocation49_spill] sm:$0xff] %v8350_v53  ;;  %vm9571_vm8 = vcmask 1041409   ;;  %v4574_v29 = vrot.slane %v7831_v58, 6  ;;  %v8365_v52 = vmul.f32 %v8350_v53, %v8350_v53  ;;  %v3831_v18 = vrot.slane %v3830_v26, 1 }
 0x88d   : > { %v3895_v32 = vmul.f32 %v3825_v24, %v9569_v45  ;;  %v4573_v9 = vsel %vm9571_vm8, %v9570_v17, %v7841_v1  ;;  %v4576_v35 = vrot.slane %v3892_v31, 5  ;;  %v4578_v34 = vrot.slane %v3893_v8, 4  ;;  %v9577_v8 = vld [vmem:[#allocation55_spill] sm:$0xff]  ;;  %vm9597_vm3 = vmmov %vm9571_vm8 }
 0x88e   : > { %v3871_v36 = vrot.slane %v3870_v46, 2  ;;  %v4128_v59 = vadd.f32 %v4127_v13, %v4126_v37  ;;  %vm9572_vm10 = vcmask 1042434   ;;  %v4580_v47 = vrot.slane %v3894_v6, 3  ;;  %v9579_v6 = vld [vmem:[#allocation36_spill] sm:$0xff]  ;;  %vm9612_vm8 = vmmov %vm9597_vm3 }
 0x88f   : > { %v4575_v56 = vsel %vm9572_vm10, %v4574_v29, %v4573_v9  ;;  %v4499_v25 = vsub.f32 %v8353_v19, %v8365_v52  ;;  %v3832_v22 = vmin.f32 %v3830_v26, %v3831_v18  ;;  %vm9573_vm11 = vcmask 1043459   ;;  %v9581_v26 = vld [vmem:[#allocation34_spill] sm:$0xff]  ;;  %vm9599_vm4 = vmmov %vm9572_vm10 }
 0x890   : > { %v4577_v1 = vsel %vm9573_vm11, %v4576_v35, %v4575_v56  ;;  %v4582_v30 = vrot.slane %v3895_v32, 2  ;;  %vm9574_vm12 = vcmask 1044484   ;;  %v9576_v24 = vrot.slane %v9575_v60, 1  ;;  %vm9602_vm5 = vmmov %vm9573_vm11 }
 0x891   : > { %v4579_v58 = vsel %vm9574_vm12, %v4578_v34, %v4577_v1  ;;  %v3945_v31 = vrot.slane %v8087_v50, 1  ;;  %v9578_v37 = vrot.slane %v9577_v8, 2  ;;  %v3998_v2 = vadd.f32 %v3997_v10, %v3996_v38  ;;  %v9583_v1 = vld [vmem:[#allocation21_spill] sm:$0xff]  ;;  %vm9604_vm2 = vmmov %vm9574_vm12 }
 0x892   : > { %v3939_v55 = vadd.f32 %v9576_v24, %v9575_v60  ;;  %v3896_v17 = vmul.f32 %v3832_v22, %v9579_v6  ;;  %vm9580_vm13 = vcmask 1045509   ;;  %v3957_v9 = vrot.slane %v9581_v26, 2  ;;  %v9584_v60 = vld [vmem:[#allocation67_spill] sm:$0xff]  ;;  %vm9613_vm10 = vmmov %vm9599_vm4 }
 0x893   : > { %v3951_v13 = vadd.f32 %v9578_v37, %v9577_v8  ;;  %v4581_v19 = vsel %vm9580_vm13, %v4580_v47, %v4579_v58  ;;  %v4143_v32 = vrot.slane %v4142_v54, 1  ;;  %vm9582_vm14 = vcmask 1046534   ;;  %v9586_v58 = vld [vmem:[#allocation24_spill] sm:$0xff]  ;;  %vm9605_vm1 = vmmov %vm9580_vm13 }
 0x894   : > { %v4583_v29 = vsel %vm9582_vm14, %v4582_v30, %v4581_v19  ;;  %v3946_v52 = vadd.f32 %v3945_v31, %v8087_v50  ;;  %v3872_v35 = vmin.f32 %v3870_v46, %v3871_v36  ;;  %v4584_v34 = vrot.slane %v3896_v17, 1  ;;  %v9588_v36 = vld [vmem:[#allocation22_spill] sm:$0xff]  ;;  %v9589_v31 = vld [vmem:[#allocation61_spill] sm:$0xff]  ;;  %vm9607_vm6 = vmmov %vm9582_vm14 }
 0x895   : > { %v3952_v18 = vrot.slane %v3951_v13, 1  ;;  %v3958_v56 = vadd.f32 %v3957_v9, %v9581_v26  ;;  %v4020_v24 = vmul.f32 %v9584_v60, %v9583_v1  ;;  %v9585_v38 = vrot.slane %v8311_v5, 4  ;;  %v9591_v9 = vld [vmem:[#allocation79_spill] sm:$0xff]  ;;  %v9592_v1 = vld [vmem:[#allocation50_spill] sm:$0xff]  ;;  %v9594_v60 = vld [vmem:[#allocation16_spill] sm:$0xff] }
 0x896   : > { %v4129_v47 = vrot.slane %v4128_v59, 1  ;;  %v4021_v8 = vmul.f32 %v3939_v55, %v9586_v58  ;;  %vm9587_vm0 = vcmask 1047559   ;;  %v4022_v46 = vmul.f32 %v3946_v52, %v9503_v28  ;;  %v9593_v52 = vld [vmem:[#allocation42_spill] sm:$0xff]  ;;  %vm9617_vm11 = vmmov %vm9602_vm5 }
 0x897   : > { %v8390_v10 = vadd.f32 %v9585_v38, %v8311_v5  ;;  %v3953_v22 = vadd.f32 %v3952_v18, %v3951_v13  ;;  %v4585_v30 = vsel %vm9587_vm0, %v4584_v34, %v4583_v29  ;;  %v3959_v50 = vrot.slane %v3958_v56, 1  ;;  %v9590_v5 = vld [vmem:[#allocation18_spill] sm:$0xff]  ;;  %vm9610_vm7 = vmmov %vm9587_vm0 }
 0x898   : > { %v4162_v37 = vmul.f32 %v9589_v31, %v9588_v36  ;;  %v8397_v17 = vadd.f32 %v4143_v32, %v4142_v54  ;;  %v8399_v19 = vmax.f32 %v3742_v3, %v3743_v39  ;;  %v3999_v26 = vrot.slane %v3998_v2, 2  ;;  %4600 = vrot.lane.b32.xlu1 %v4585_v30, %s5727_s5  ;;  %v9595_v39 = vld [vmem:[#allocation47_spill] sm:$0xff]  ;;  %v9596_v58 = vld [vmem:[#allocation90_spill] sm:$0xff]  ;;  %vm9618_vm12 = vmmov %vm9604_vm2 }
 0x899   : > { %v4163_v13 = vmul.f32 %v9591_v9, %v9590_v5  ;;  %v3873_v18 = vrot.slane %v3872_v35, 1  ;;  %v3960_v55 = vadd.f32 %v3959_v50, %v3958_v56  ;;  %v4023_v29 = vmul.f32 %v3953_v22, %v9592_v1  ;;  %vm9620_vm13 = vmmov %vm9605_vm1 }
 0x89a   : > { %v4164_v34 = vmul.f32 %v4020_v24, %v6091_v23  ;;  %v4130_v28 = vadd.f32 %v4129_v47, %v4128_v59  ;;  %v4161_v38 = vmul.f32 %v9594_v60, %v9593_v52  ;;  %v4165_v54 = vmul.f32 %v4021_v8, %v9565_v42  ;;  %v9598_v42 = vld [vmem:[#allocation87_spill] sm:$0xff]  ;;  %vm9621_vm14 = vmmov %vm9607_vm6 }
 0x89b   : > { %v4622_v3 = vrot.slane %v4162_v37, 7  ;;  %v4024_v32 = vmul.f32 %v3960_v55, %v9595_v39  ;;  %v8412_v30 = vmul.f32 %v9596_v58, %v9592_v1  ;;  %v4166_v31 = vmul.f32 %v4022_v46, %v9568_v44 }
 0x89c   : > { %v4180_v56 = vmul.f32 %v4020_v24, %v4020_v24  ;;  %v4181_v50 = vmul.f32 %v4021_v8, %v4021_v8  ;;  %v8415_v22 = vmul.f32 %v4022_v46, %v4022_v46  ;;  %v4624_v47 = vrot.slane %v4163_v13, 6  ;;  %v9600_v46 = vld [vmem:[#allocation88_spill] sm:$0xff]  ;;  %v9601_v13 = vld [vmem:[#allocation54_spill] sm:$0xff] }
 0x89d   : > { %v4623_v59 = vsel %vm9597_vm3, %v4622_v3, %v4161_v38  ;;  %v4167_v9 = vmul.f32 %v4023_v29, %v9569_v45  ;;  %v4168_v52 = vmul.f32 %v4024_v32, %v9579_v6  ;;  %v8420_v37 = vmul.f32 %v4023_v29, %v4023_v29  ;;  %v9603_v29 = vld [vmem:[#allocation70_spill] sm:$0xff] }
 0x89e   : > { %v4626_v55 = vrot.slane %v4164_v34, 5  ;;  %v4000_v53 = vadd.f32 %v3999_v26, %v3998_v2  ;;  %v8423_v1 = vmul.f32 %v4130_v28, %v9598_v42  ;;  %v4625_v58 = vsel %vm9599_vm4, %v4624_v47, %v4623_v59 }
 0x89f   : > { %v4628_v24 = vrot.slane %v4165_v54, 4  ;;  %v8426_v8 = vmax.f32 %v4499_v25, 0.0  ;;  %v8430_v38 = vmul.f32 %v9600_v46, %v9595_v39  ;;  %v4196_v3 = vsub.f32 %v9601_v13, %v4180_v56 }
 0x8a0   : > { %v4627_v6 = vsel %vm9602_vm5, %v4626_v55, %v4625_v58  ;;  %v4197_v45 = vsub.f32 %v9603_v29, %v4181_v50  ;;  %v4198_v2 = vsub.f32 %v8102_v48, %v8415_v22  ;;  %v4630_v34 = vrot.slane %v4166_v31, 3  ;;  %v9608_v31 = vld [vmem:[#allocation53_spill] sm:$0xff] }
 0x8a1   : > { %v4629_v26 = vsel %vm9604_vm2, %v4628_v24, %v4627_v6  ;;  %v4199_v25 = vsub.f32 %v8412_v30, %v8420_v37  ;;  %v4632_v28 = vrot.slane %v4167_v9, 2  ;;  %v4634_v54 = vrot.slane %v4168_v52, 1  ;;  %v9609_v52 = vld [vmem:[#allocation33_spill] sm:$0xff] }
 0x8a2   : > { %v3874_v59 = vmin.f32 %v3872_v35, %v3873_v18  ;;  %v4631_v39 = vsel %vm9605_vm1, %v4630_v34, %v4629_v26  ;;  %v9606_v56 = vrot.slane %v8242_v21, 2  ;;  %v3885_v50 = vrot.slane %v8336_v57, 2 }
 0x8a3   : > { %v3900_v48 = vmul.f32 %v8196_v41, %v9229_v62  ;;  %v8447_v22 = vmul.f32 %v4024_v32, %v4024_v32  ;;  %v4633_v6 = vsel %vm9607_vm6, %v4632_v28, %v4631_v39  ;;  %v3901_v9 = vmul.f32 %v8308_v49, %v9608_v31 }
 0x8a4   : > { %v3879_v47 = vmin.f32 %v8242_v21, %v9606_v56  ;;  %v3902_v35 = vmul.f32 %v3874_v59, %v9609_v52  ;;  %v4635_v18 = vsel %vm9610_vm7, %v4634_v54, %v4633_v6  ;;  %v3886_v58 = vmin.f32 %v8336_v57, %v3885_v50  ;;  %vm9630_vm7 = vmmov %vm9587_vm0 }
 0x8a5   : > { %v9611_v21 = vrot.slane %v8229_v63, 7  ;;  %v8459_v41 = vmax.f32 %v4196_v3, 0.0  ;;  %4650 = vrot.lane.b32.xlu1 %v4635_v18, %s5730_s22  ;;  %v4588_v32 = vrot.slane %v8124_v14, 6  ;;  %v4590_v46 = vrot.slane %v3900_v48, 5  ;;  %v9616_v14 = vld [vmem:[#allocation45_spill] sm:$0xff] }
 0x8a6   : > { %v3880_v55 = vrot.slane %v3879_v47, 1  ;;  %v4592_v49 = vrot.slane %v3901_v9, 4  ;;  %v3887_v29 = vrot.slane %v3886_v58, 1  ;;  %v4594_v26 = vrot.slane %v3902_v35, 3  ;;  %v9619_v35 = vld [vmem:[#allocation64_spill] sm:$0xff] }
 0x8a7   : > { %v4587_v24 = vsel %vm9612_vm8, %v9611_v21, %v8146_v11  ;;  %v4001_v34 = vrot.slane %v4000_v53, 1  ;;  %v9614_v57 = vrot.slane %v8275_v27, 1  ;;  %v9615_v11 = vrot.slane %v8265_v12, 2 }
 0x8a8   : > { %v3881_v13 = vmin.f32 %v3879_v47, %v3880_v55  ;;  %v4589_v28 = vsel %vm9613_vm10, %v4588_v32, %v4587_v24  ;;  %v4013_v54 = vrot.slane %v8390_v10, 2  ;;  %v3888_v59 = vmin.f32 %v3886_v58, %v3887_v29  ;;  %v9622_v29 = vld [vmem:[#allocation57_spill] sm:$0xff] }
 0x8a9   : > { %v3995_v63 = vadd.f32 %v9614_v57, %v8275_v27  ;;  %v4007_v3 = vadd.f32 %v9615_v11, %v8265_v12  ;;  %v4591_v56 = vsel %vm9617_vm11, %v4590_v46, %v4589_v28  ;;  %v4002_v47 = vadd.f32 %v4001_v34, %v4000_v53  ;;  %v9626_v11 = vld [vmem:[#allocation17_spill] sm:$0xff] }
 0x8aa   : > { %v3903_v39 = vmul.f32 %v3881_v13, %v9616_v14  ;;  %v4213_v50 = vmax.f32 %v4197_v45, 0.0  ;;  %v4593_v48 = vsel %vm9618_vm12, %v4592_v49, %v4591_v56  ;;  %v4014_v9 = vadd.f32 %v4013_v54, %v8390_v10 }
 0x8ab   : > { %v4008_v6 = vrot.slane %v4007_v3, 1  ;;  %v3904_v27 = vmul.f32 %v3888_v59, %v9619_v35  ;;  %v4595_v18 = vsel %vm9620_vm13, %v4594_v26, %v4593_v48  ;;  %v4028_v12 = vmul.f32 %v8217_v15, %v9542_v33  ;;  %v9623_v15 = vld [vmem:[#allocation84_spill] sm:$0xff] }
 0x8ac   : > { %v4596_v55 = vrot.slane %v3903_v39, 2  ;;  %v4015_v21 = vrot.slane %v4014_v9, 1  ;;  %v4029_v24 = vmul.f32 %v3995_v63, %v9564_v20  ;;  %v4030_v53 = vmul.f32 %v4002_v47, %v9598_v42  ;;  %v9625_v63 = vld [vmem:[#allocation89_spill] sm:$0xff] }
 0x8ad   : > { %v4009_v58 = vadd.f32 %v4008_v6, %v4007_v3  ;;  %v4214_v45 = vmax.f32 %v4198_v2, 0.0  ;;  %v4598_v46 = vrot.slane %v3904_v27, 1  ;;  %v4170_v10 = vmul.f32 %v8212_v16, %v9532_v4  ;;  %v9624_v16 = vld [vmem:[#allocation75_spill] sm:$0xff] }
 0x8ae   : > { %v4597_v32 = vsel %vm9621_vm14, %v4596_v55, %v4595_v18  ;;  %v4200_v49 = vsub.f32 %v8430_v38, %v8447_v22  ;;  %v4016_v13 = vadd.f32 %v4015_v21, %v4014_v9  ;;  %v4171_v33 = vmul.f32 %v9623_v15, %v9289_v61  ;;  %v9627_v15 = vld [vmem:[#allocation58_spill] sm:$0xff] }
 0x8af   : > { %v4031_v26 = vmul.f32 %v4009_v58, %v9622_v29  ;;  %v4599_v20 = vsel %vm9587_vm0, %v4598_v46, %v4597_v32  ;;  %v4159_v42 = vmul.f32 %v8287_v43, %v9622_v29  ;;  %v4172_v2 = vmul.f32 %v4028_v12, %v9229_v62 }
 0x8b0   : > { %v4188_v34 = vmul.f32 %v4028_v12, %v4028_v12  ;;  %4602 = vrot.lane.b32.xlu0 %v4599_v20, %s5727_s5  ;;  %v4032_v28 = vmul.f32 %v4016_v13, %v9624_v16  ;;  %v4160_v38 = vmul.f32 %v8397_v17, %v9624_v16  ;;  %v4189_v22 = vmul.f32 %v4029_v24, %v4029_v24 }
 0x8b1   : > { %v4190_v57 = vmul.f32 %v4030_v53, %v4030_v53  ;;  %v4169_v3 = vmul.f32 %v9626_v11, %v9625_v63  ;;  %v4173_v54 = vmul.f32 %v4029_v24, %v9608_v31  ;;  %v4191_v59 = vmul.f32 %v4031_v26, %v4031_v26 }
 0x8b2   : > { %v4636_v39 = vrot.slane %v4170_v10, 7  ;;  %v4174_v43 = vmul.f32 %v4030_v53, %v9609_v52  ;;  %v4175_v56 = vmul.f32 %v4031_v26, %v9616_v14  ;;  %v4192_v47 = vmul.f32 %v4032_v28, %v4032_v28 }
 0x8b3   : > { %v4638_v48 = vrot.slane %v4171_v33, 6  ;;  %v4204_v6 = vsub.f32 %v8257_v51, %v4188_v34  ;;  %v4205_v9 = vsub.f32 %v8340_v0, %v4189_v22  ;;  %v4640_v27 = vrot.slane %v4172_v2, 5 }
 0x8b4   : > { %v4637_v17 = vsel %vm9597_vm3, %v4636_v39, %v4169_v3  ;;  %v4215_v18 = vmax.f32 %v4199_v25, 0.0  ;;  %v4176_v55 = vmul.f32 %v4032_v28, %v9619_v35  ;;  %v4206_v12 = vsub.f32 %v8423_v1, %v4190_v57  ;;  %v9631_v57 = vld [vmem:[#allocation74_spill] sm:$0xff] }
 0x8b5   : > { %v4639_v58 = vsel %vm9599_vm4, %v4638_v48, %v4637_v17  ;;  %v4207_v21 = vsub.f32 %v4159_v42, %v4191_v59  ;;  %v4208_v24 = vsub.f32 %v4160_v38, %v4192_v47  ;;  %v4642_v51 = vrot.slane %v4173_v54, 4  ;;  %v9632_v48 = vld [vmem:[#allocation60_spill] sm:$0xff] }
 0x8b6   : > { %v4641_v53 = vsel %vm9602_vm5, %v4640_v27, %v4639_v58  ;;  %v4216_v32 = vmax.f32 %v4200_v49, 0.0  ;;  %v8513_v0 = vadd.f32 1e-05, %v8459_v41  ;;  %v8515_v46 = vadd.f32 1e-05, %v4213_v50  ;;  %v9628_v41 = vld [vmem:[#allocation82_spill] sm:$0xff] }
 0x8b7   : > { %v4644_v10 = vrot.slane %v4174_v43, 3  ;;  %v4220_v30 = vmax.f32 %v4204_v6, 0.0  ;;  %v4221_v37 = vmax.f32 %v4205_v9, 0.0  ;;  %v4643_v25 = vsel %vm9604_vm2, %v4642_v51, %v4641_v53 }
 0x8b8   : > { %v4646_v13 = vrot.slane %v4175_v56, 2  ;;  %v4222_v1 = vmax.f32 %v4206_v12, 0.0  ;;  %v4648_v26 = vrot.slane %v4176_v55, 1  ;;  %5659 = vrsqrt.f32 %v9627_v15  ;;  %v9633_v55 = vld [vmem:[#allocation85_spill] sm:$0xff] }
 0x8b9   : > { %v4645_v29 = vsel %vm9605_vm1, %v4644_v10, %v4643_v25  ;;  %v4223_v33 = vmax.f32 %v4207_v21, 0.0  ;;  %v4224_v20 = vmax.f32 %v4208_v24, 0.0  ;;  %5661 = vrsqrt.f32 %v9628_v41  ;;  %v9634_v25 = vld [vmem:[#allocation63_spill] sm:$0xff] }
 0x8ba   : > { %v4647_v49 = vsel %vm9607_vm6, %v4646_v13, %v4645_v29  ;;  %v9629_v50 = vrot.slane %v8304_v40, 4  ;;  %v3745_v2 = vrot.slane %v8399_v19, 1  ;;  %v8528_v34 = vadd.f32 1e-05, %v4214_v45  ;;  %v9635_v13 = vld [vmem:[#allocation15_spill] sm:$0xff] }
 0x8bb   : > { %v4649_v16 = vsel %vm9630_vm7, %v4648_v26, %v4647_v49  ;;  %v8532_v28 = vadd.f32 1e-05, %v8426_v8  ;;  %v8534_v38 = vadd.f32 1e-05, %v4215_v18  ;;  %v8536_v22 = vadd.f32 1e-05, %v4216_v32 }
 0x8bc   : > { %v8525_v42 = vmax.f32 %v8304_v40, %v9629_v50  ;;  %4652 = vrot.lane.b32.xlu0 %v4649_v16, %s5730_s22  ;;  %5663 = vrsqrt.f32 %v9631_v57  ;;  %v8540_v63 = vadd.f32 1e-05, %v4220_v30  ;;  %v8542_v40 = vadd.f32 1e-05, %v4221_v37 }
 0x8bd   : > { %v8544_v3 = vadd.f32 1e-05, %v4222_v1  ;;  %5665 = vrsqrt.f32 %v8513_v0  ;;  %v8547_v45 = vadd.f32 1e-05, %v4223_v33  ;;  %v8549_v8 = vadd.f32 1e-05, %v4224_v20 }
 0x8be   : > { %vm4243_vm8 = vcmp.eq.f32.partialorder %v9627_v15, inf  ;;  %5667 = vrsqrt.f32 %v8515_v46  ;;  %vm4245_vm10 = vcmp.eq.f32.partialorder %v9627_v15, 0.0  ;;  %v4246_v54 = vand.u32 2147483648, %v9627_v15  ;;  %v9636_v1 = vld [vmem:[#allocation8_spill] sm:$0xff] }
 0x8bf   : > { %vm4250_vm11 = vcmp.eq.f32.partialorder %v9628_v41, inf  ;;  %5669 = vrsqrt.f32 %v8528_v34  ;;  %vm4252_vm12 = vcmp.eq.f32.partialorder %v9628_v41, 0.0  ;;  %v4253_v59 = vand.u32 2147483648, %v9628_v41 }
 0x8c0   : > { %vm4257_vm13 = vcmp.eq.f32.partialorder %v9631_v57, inf  ;;  %5671 = vrsqrt.f32 %v8534_v38  ;;  %vm4259_vm14 = vcmp.eq.f32.partialorder %v9631_v57, 0.0  ;;  %v4260_v39 = vand.u32 2147483648, %v9631_v57 }
 0x8c1   : > { %vm4264_vm0 = vcmp.eq.f32.partialorder %v8513_v0, inf  ;;  %5673 = vrsqrt.f32 %v8536_v22  ;;  %vm4266_vm3 = vcmp.eq.f32.partialorder %v8513_v0, 0.0  ;;  %v4267_v43 = vand.u32 2147483648, %v8513_v0 }
 0x8c2   : > { %vm4271_vm4 = vcmp.eq.f32.partialorder %v8515_v46, inf  ;;  %5675 = vrsqrt.f32 %v8532_v28  ;;  %v5660_v56 = vpop.eup %5659  ;;  %vm4273_vm5 = vcmp.eq.f32.partialorder %v8515_v46, 0.0  ;;  %v4274_v47 = vand.u32 2147483648, %v8515_v46 }
 0x8c3   : > { %vm4278_vm2 = vcmp.eq.f32.partialorder %v8528_v34, inf  ;;  %5677 = vrsqrt.f32 %v9632_v48  ;;  %v5662_v6 = vpop.eup %5661  ;;  %v4242_v9 = vmul.f32 %v5660_v56, %v9627_v15  ;;  %vm4280_vm1 = vcmp.eq.f32.partialorder %v8528_v34, 0.0 }
 0x8c4   : > { %v4281_v17 = vand.u32 2147483648, %v8528_v34  ;;  %vm4285_vm6 = vcmp.eq.f32.partialorder %v8534_v38, inf  ;;  %5679 = vrsqrt.f32 %v8281_v7  ;;  %v4249_v27 = vmul.f32 %v5662_v6, %v9628_v41 }
 0x8c5   : > { %vm4287_vm7 = vcmp.eq.f32.partialorder %v8534_v38, 0.0  ;;  %v4288_v18 = vand.u32 2147483648, %v8534_v38  ;;  %5681 = vrsqrt.f32 %v9633_v55  ;;  %v4244_v58 = vsel %vm4243_vm8, %v9627_v15, %v4242_v9 }
 0x8c6   : > { %v5664_v12 = vpop.eup %5663  ;;  %vm4292_vm15 = vcmp.eq.f32.partialorder %v8536_v22, inf  ;;  %vm4294_vm9 = vcmp.eq.f32.partialorder %v8536_v22, 0.0  ;;  %v4295_v21 = vand.u32 2147483648, %v8536_v22  ;;  %v4247_v53 = vsel %vm4245_vm10, %v4246_v54, %v4244_v58 }
 0x8c7   : > { %v5666_v24 = vpop.eup %5665  ;;  %v4251_v51 = vsel %vm4250_vm11, %v9628_v41, %v4249_v27  ;;  %v4256_v32 = vmul.f32 %v5664_v12, %v9631_v57  ;;  %5683 = vrsqrt.f32 %v8540_v63  ;;  %v9637_v29 = vmax.f32 %v9635_v13, %v9636_v1  ;;  %v9639_v13 = vld [vmem:[#allocation35_spill] sm:$0xff] }
 0x8c8   : > { %v5668_v10 = vpop.eup %5667  ;;  %v4254_v30 = vsel %vm4252_vm12, %v4253_v59, %v4251_v51  ;;  %v4263_v37 = vmul.f32 %v5666_v24, %v8513_v0  ;;  %v4507_v15 = vand.u32 2147483648, %v8532_v28  ;;  %v4302_v50 = vand.u32 2147483648, %v9632_v48 }
 0x8c9   : > { %v8602_v26 = vmul.f32 %v9637_v29, %v9634_v25  ;;  %v5670_v33 = vpop.eup %5669  ;;  %v4258_v20 = vsel %vm4257_vm13, %v9631_v57, %v4256_v32  ;;  %v4270_v49 = vmul.f32 %v5668_v10, %v8515_v46  ;;  %v4354_v41 = vmul.f32 %v4254_v30, %v9588_v36 }
 0x8ca   : > { %v5672_v16 = vpop.eup %5671  ;;  %v4261_v54 = vsel %vm4259_vm14, %v4260_v39, %v4258_v20  ;;  %v4265_v59 = vsel %vm4264_vm0, %v8513_v0, %v4263_v37  ;;  %v4277_v56 = vmul.f32 %v5670_v33, %v8528_v34  ;;  %v4353_v6 = vmul.f32 %v9594_v60, %v4247_v53 }
 0x8cb   : > { %vm4504_vm8 = vcmp.eq.f32.partialorder %v8532_v28, inf  ;;  %v5674_v9 = vpop.eup %5673  ;;  %v4268_v36 = vsel %vm4266_vm3, %v4267_v43, %v4265_v59  ;;  %v4272_v27 = vsel %vm4271_vm4, %v8515_v46, %v4270_v49  ;;  %v4284_v57 = vmul.f32 %v5672_v16, %v8534_v38  ;;  %v9638_v46 = vld [vmem:[#allocation31_spill] sm:$0xff] }
 0x8cc   : > { %v4355_v39 = vmul.f32 %v4261_v54, %v9590_v5  ;;  %vm4299_vm10 = vcmp.eq.f32.partialorder %v9632_v48, inf  ;;  %v5676_v12 = vpop.eup %5675  ;;  %v4275_v60 = vsel %vm4273_vm5, %v4274_v47, %v4272_v27  ;;  %v4279_v58 = vsel %vm4278_vm2, %v8528_v34, %v4277_v56 }
 0x8cd   : > { %v4291_v0 = vmul.f32 %v5674_v9, %v8536_v22  ;;  %v4356_v43 = vmul.f32 %v4268_v36, %v6091_v23  ;;  %vm4306_vm11 = vcmp.eq.f32.partialorder %v8281_v7, inf  ;;  %v5678_v24 = vpop.eup %5677  ;;  %v4282_v5 = vsel %vm4280_vm1, %v4281_v17, %v4279_v58 }
 0x8ce   : > { %v4286_v53 = vsel %vm4285_vm6, %v8534_v38, %v4284_v57  ;;  %v4357_v47 = vmul.f32 %v4275_v60, %v9638_v46  ;;  %v4672_v51 = vrot.slane %v4354_v41, 7  ;;  %vm4506_vm12 = vcmp.eq.f32.partialorder %v8532_v28, 0.0  ;;  %v5680_v32 = vpop.eup %5679  ;;  %v9641_v38 = vld [vmem:[#allocation36_spill] sm:$0xff] }
 0x8cf   : > { %v4289_v10 = vsel %vm4287_vm7, %v4288_v18, %v4286_v53  ;;  %v4293_v23 = vsel %vm4292_vm15, %v8536_v22, %v4291_v0  ;;  %v4358_v34 = vmul.f32 %v4282_v5, %v9568_v44  ;;  %v4674_v17 = vrot.slane %v4355_v39, 6  ;;  %v5682_v30 = vpop.eup %5681 }
 0x8d0   : > { %vm4301_vm13 = vcmp.eq.f32.partialorder %v9632_v48, 0.0  ;;  %v4296_v37 = vsel %vm4294_vm9, %v4295_v21, %v4293_v23  ;;  %v4359_v1 = vmul.f32 %v4289_v10, %v9639_v13  ;;  %vm9640_vm14 = vcmask 1041409  }
 0x8d1   : > { %v4673_v29 = vsel %vm9640_vm14, %v4672_v51, %v4353_v6  ;;  %v4676_v33 = vrot.slane %v4356_v43, 5  ;;  %vm4308_vm0 = vcmp.eq.f32.partialorder %v8281_v7, 0.0  ;;  %v4360_v18 = vmul.f32 %v4296_v37, %v9641_v38  ;;  %v5684_v16 = vpop.eup %5683 }
 0x8d2   : > { %vm9642_vm3 = vcmask 1042434   ;;  %v4678_v49 = vrot.slane %v4357_v47, 4  ;;  %v4680_v41 = vrot.slane %v4358_v34, 3  ;;  %vm9643_vm15 = vcmask 1043459  }
 0x8d3   : > { %v4675_v20 = vsel %vm9642_vm3, %v4674_v17, %v4673_v29  ;;  %v4503_v59 = vmul.f32 %v5676_v12, %v8532_v28  ;;  %v4298_v22 = vmul.f32 %v5678_v24, %v9632_v48  ;;  %v4309_v21 = vand.u32 2147483648, %v8281_v7  ;;  %v9650_v29 = vld [vmem:[#allocation72_spill] sm:$0xff] }
 0x8d4   : > { %v4677_v54 = vsel %vm9643_vm15, %v4676_v33, %v4675_v20  ;;  %vm9644_vm9 = vcmask 1044484   ;;  %v4682_v6 = vrot.slane %v4359_v1, 2  ;;  %v4305_v9 = vmul.f32 %v5680_v32, %v8281_v7  ;;  %v9652_v20 = vld [vmem:[#allocation86_spill] sm:$0xff] }
 0x8d5   : > { %v4679_v56 = vsel %vm9644_vm9, %v4678_v49, %v4677_v54  ;;  %v4312_v36 = vmul.f32 %v5682_v30, %v9633_v55  ;;  %vm9645_vm4 = vcmask 1045509   ;;  %v4684_v57 = vrot.slane %v4360_v18, 1  ;;  %v9648_v30 = vld [vmem:[#allocation44_spill] sm:$0xff]  ;;  %v9654_v54 = vld [vmem:[#allocation62_spill] sm:$0xff] }
 0x8d6   : > { %v4681_v27 = vsel %vm9645_vm4, %v4680_v41, %v4679_v56  ;;  %v4505_v39 = vsel %vm4504_vm8, %v8532_v28, %v4503_v59  ;;  %v4319_v12 = vmul.f32 %v5684_v16, %v8540_v63  ;;  %vm9646_vm5 = vcmask 1046534  }
 0x8d7   : > { %v4683_v60 = vsel %vm9646_vm5, %v4682_v6, %v4681_v27  ;;  %v4300_v58 = vsel %vm4299_vm10, %v9632_v48, %v4298_v22  ;;  %vm4313_vm2 = vcmp.eq.f32.partialorder %v9633_v55, inf  ;;  %v4316_v0 = vand.u32 2147483648, %v9633_v55  ;;  %v9656_v6 = vld [vmem:[#allocation83_spill] sm:$0xff] }
 0x8d8   : > { %vm9647_vm1 = vcmask 1047559   ;;  %v4307_v24 = vsel %vm4306_vm11, %v8281_v7, %v4305_v9  ;;  %v4314_v5 = vsel %vm4313_vm2, %v9633_v55, %v4312_v36  ;;  %vm4320_vm6 = vcmp.eq.f32.partialorder %v8540_v63, inf  ;;  %v9657_v9 = vld [vmem:[#allocation48_spill] sm:$0xff] }
 0x8d9   : > { %v4685_v43 = vsel %vm9647_vm1, %v4684_v57, %v4683_v60  ;;  %v4508_v53 = vsel %vm4506_vm12, %v4507_v15, %v4505_v39  ;;  %v4321_v47 = vsel %vm4320_vm6, %v8540_v63, %v4319_v12  ;;  %v4323_v51 = vand.u32 2147483648, %v8540_v63  ;;  %v9660_v57 = vld [vmem:[#allocation11_spill] sm:$0xff] }
 0x8da   : > { %4700 = vrot.lane.b32.xlu1 %v4685_v43, %s5731_s1  ;;  %5685 = vrsqrt.f32 %v8542_v40  ;;  %v4303_v32 = vsel %vm4301_vm13, %v4302_v50, %v4300_v58  ;;  %vm4315_vm7 = vcmp.eq.f32.partialorder %v9633_v55, 0.0  ;;  %vm4322_vm8 = vcmp.eq.f32.partialorder %v8540_v63, 0.0 }
 0x8db   : > { %5687 = vrsqrt.f32 %v8544_v3  ;;  %v4310_v28 = vsel %vm4308_vm0, %v4309_v21, %v4307_v24  ;;  %v4317_v15 = vsel %vm4315_vm7, %v4316_v0, %v4314_v5  ;;  %v4324_v10 = vsel %vm4322_vm8, %v4323_v51, %v4321_v47  ;;  %v9663_v24 = vld [vmem:[#allocation78_spill] sm:$0xff] }
 0x8dc   : > { %5689 = vrsqrt.f32 %v8547_v45  ;;  %v3757_v23 = vrot.slane %v8525_v42, 2  ;;  %v8702_v48 = vmax.f32 %v8399_v19, %v3745_v2  ;;  %v4509_v55 = vmul.f32 %v4508_v53, %v9634_v25 }
 0x8dd   : > { %5691 = vrsqrt.f32 %v8549_v8  ;;  %vm4327_vm10 = vcmp.eq.f32.partialorder %v8542_v40, inf  ;;  %v4330_v7 = vand.u32 2147483648, %v8542_v40  ;;  %v4337_v63 = vand.u32 2147483648, %v8544_v3 }
 0x8de   : > { %4713 = vrot.lane.b32.xlu1 %v8602_v26, %s5731_s1  ;;  %v4344_v50 = vand.u32 2147483648, %v8547_v45  ;;  %v4351_v34 = vand.u32 2147483648, %v8549_v8  ;;  %vm4329_vm11 = vcmp.eq.f32.partialorder %v8542_v40, 0.0  ;;  %vm4334_vm12 = vcmp.eq.f32.partialorder %v8544_v3, inf }
 0x8df   : > { %v4361_v19 = vmul.f32 %v9626_v11, %v4303_v32  ;;  %v4362_v2 = vmul.f32 %v4310_v28, %v9532_v4  ;;  %v4363_v26 = vmul.f32 %v4317_v15, %v9289_v61  ;;  %v4364_v17 = vmul.f32 %v4324_v10, %v9229_v62  ;;  %v9653_v4 = vld [vmem:[#allocation5_spill] sm:$0xff] }
 0x8e0   : > { %vm4336_vm13 = vcmp.eq.f32.partialorder %v8544_v3, 0.0  ;;  %vm4341_vm14 = vcmp.eq.f32.partialorder %v8547_v45, inf  ;;  %v9649_v37 = vrot.slane %v9648_v30, 1  ;;  %v9651_v33 = vrot.slane %v9650_v29, 2 }
 0x8e1   : > { %v3765_v49 = vmul.f32 %v9652_v20, %v9638_v46  ;;  %v3766_v61 = vmul.f32 %v9653_v4, %v9568_v44  ;;  %vm4343_vm0 = vcmp.eq.f32.partialorder %v8547_v45, 0.0  ;;  %vm4348_vm3 = vcmp.eq.f32.partialorder %v8549_v8, inf }
 0x8e2   : > { %v3697_v1 = vmax.f32 %v9648_v30, %v9649_v37  ;;  %v3702_v18 = vmax.f32 %v9650_v29, %v9651_v33  ;;  %v4686_v62 = vrot.slane %v4362_v2, 7  ;;  %v4688_v41 = vrot.slane %v4363_v26, 6  ;;  %4721 = vrot.lane.b32.xlu1 %v4509_v55, %s5730_s22 }
 0x8e3   : > { %v4690_v16 = vrot.slane %v4364_v17, 5  ;;  %v4530_v59 = vrot.slane %v9654_v54, 5  ;;  %vm4350_vm15 = vcmp.eq.f32.partialorder %v8549_v8, 0.0  ;;  %v4532_v46 = vrot.slane %v3765_v49, 4  ;;  %v9673_v54 = vld [vmem:[#allocation7_spill] sm:$0xff] }
 0x8e4   : > { %v3703_v22 = vrot.slane %v3702_v18, 1  ;;  %v3767_v21 = vmul.f32 %v3697_v1, %v9639_v13  ;;  %v4534_v56 = vrot.slane %v3766_v61, 3  ;;  %vm9655_vm9 = vcmask 1041409   ;;  %v5686_v58 = vpop.eup %5685 }
 0x8e5   : > { %v4687_v44 = vsel %vm9655_vm9, %v4686_v62, %v4361_v19  ;;  %v9658_v36 = vrot.slane %v9657_v9, 7  ;;  %vm9659_vm4 = vmmov %vm9655_vm9  ;;  %v9661_v39 = vrot.slane %v9660_v57, 1  ;;  %v3758_v60 = vmax.f32 %v8525_v42, %v3757_v23  ;;  %v5688_v47 = vpop.eup %5687  ;;  %v9669_v19 = vld [vmem:[#allocation19_spill] sm:$0xff] }
 0x8e6   : > { %vm9662_vm5 = vcmask 1042434   ;;  %v3704_v43 = vmax.f32 %v3702_v18, %v3703_v22  ;;  %v4536_v13 = vrot.slane %v3767_v21, 2  ;;  %v9664_v5 = vrot.slane %v9663_v24, 6  ;;  %v5690_v10 = vpop.eup %5689  ;;  %v9674_v22 = vld [vmem:[#allocation13_spill] sm:$0xff] }
 0x8e7   : > { %v4527_v27 = vsel %vm9659_vm4, %v9658_v36, %v9656_v6  ;;  %v3753_v12 = vmax.f32 %v9660_v57, %v9661_v39  ;;  %v4689_v0 = vsel %vm9662_vm5, %v4688_v41, %v4687_v44  ;;  %vm9665_vm2 = vmmov %vm9662_vm5  ;;  %v4326_v51 = vmul.f32 %v5686_v58, %v8542_v40  ;;  %v5692_v26 = vpop.eup %5691  ;;  %v9679_v57 = vld [vmem:[#allocation3_spill] sm:$0xff] }
 0x8e8   : > { %v4529_v53 = vsel %vm9665_vm2, %v9664_v5, %v4527_v27  ;;  %vm9666_vm1 = vcmask 1043459   ;;  %v3759_v15 = vrot.slane %v3758_v60, 1  ;;  %v4333_v42 = vmul.f32 %v5688_v47, %v8544_v3  ;;  %v9690_v47 = vld [vmem:[#allocation4_spill] sm:$0xff] }
 0x8e9   : > { %v4691_v32 = vsel %vm9666_vm1, %v4690_v16, %v4689_v0  ;;  %vm9667_vm6 = vmmov %vm9666_vm1  ;;  %v3768_v23 = vmul.f32 %v3704_v43, %v9641_v38  ;;  %vm9668_vm7 = vcmask 1044484   ;;  %v3773_v2 = vmul.f32 %v9669_v19, %v9608_v31  ;;  %v9686_v0 = vld [vmem:[#allocation49_spill] sm:$0xff] }
 0x8ea   : > { %v4531_v28 = vsel %vm9667_vm6, %v4530_v59, %v4529_v53  ;;  %v4328_v17 = vsel %vm4327_vm10, %v8542_v40, %v4326_v51  ;;  %v4340_v30 = vmul.f32 %v5690_v10, %v8547_v45  ;;  %vm9670_vm8 = vcmask 1045509   ;;  %vm9684_vm9 = vmmov %vm9666_vm1 }
 0x8eb   : > { %v4533_v55 = vsel %vm9668_vm7, %v4532_v46, %v4531_v28  ;;  %v3760_v1 = vmax.f32 %v3758_v60, %v3759_v15  ;;  %v4331_v29 = vsel %vm4329_vm11, %v4330_v7, %v4328_v17  ;;  %v4335_v38 = vsel %vm4334_vm12, %v8544_v3, %v4333_v42  ;;  %vm9675_vm12 = vmmov %vm9668_vm7 }
 0x8ec   : > { %v4535_v37 = vsel %vm9670_vm8, %v4534_v56, %v4533_v55  ;;  %v4347_v33 = vmul.f32 %v5692_v26, %v8549_v8  ;;  %v4538_v18 = vrot.slane %v3768_v23, 1  ;;  %v4338_v20 = vsel %vm4336_vm13, %v4337_v63, %v4335_v38  ;;  %vm9676_vm13 = vmmov %vm9670_vm8 }
 0x8ed   : > { %v4342_v49 = vsel %vm4341_vm14, %v8547_v45, %v4340_v30  ;;  %v4365_v4 = vmul.f32 %v4331_v29, %v9608_v31  ;;  %vm9671_vm10 = vcmask 1046534   ;;  %v4366_v62 = vmul.f32 %v4338_v20, %v9609_v52  ;;  %vm9687_vm5 = vmmov %vm9670_vm8  ;;  %v9696_v30 = vld [vmem:[#allocation28_spill] sm:$0xff]  ;;  %v9698_v29 = vld [vmem:[#allocation14_spill] sm:$0xff] }
 0x8ee   : > { %v4537_v61 = vsel %vm9671_vm10, %v4536_v13, %v4535_v37  ;;  %v4345_v40 = vsel %vm4343_vm0, %v4344_v50, %v4342_v49  ;;  %v4349_v7 = vsel %vm4348_vm3, %v8549_v8, %v4347_v33  ;;  %vm9672_vm11 = vcmask 1047559   ;;  %vm9677_vm14 = vmmov %vm9671_vm10  ;;  %v9701_v20 = vld [vmem:[#allocation66_spill] sm:$0xff] }
 0x8ef   : > { %v4539_v3 = vsel %vm9672_vm11, %v4538_v18, %v4537_v61  ;;  %v4352_v63 = vsel %vm4350_vm15, %v4351_v34, %v4349_v7  ;;  %v4367_v41 = vmul.f32 %v4345_v40, %v9616_v14  ;;  %v4692_v16 = vrot.slane %v4365_v4, 4  ;;  %vm9681_vm0 = vmmov %vm9659_vm4  ;;  %v9702_v4 = vld [vmem:[#allocation69_spill] sm:$0xff]  ;;  %v9703_v40 = vld [vmem:[#allocation80_spill] sm:$0xff] }
 0x8f0   : > { %v3774_v31 = vmul.f32 %v8702_v48, %v9609_v52  ;;  %v4542_v45 = vrot.slane %v9673_v54, 6  ;;  %v4368_v50 = vmul.f32 %v4352_v63, %v9619_v35  ;;  %v4694_v59 = vrot.slane %v4366_v62, 3  ;;  %v9678_v48 = vld [vmem:[#allocation6_spill] sm:$0xff]  ;;  %vm9682_vm3 = vmmov %vm9672_vm11 }
 0x8f1   : > { %v3769_v21 = vmul.f32 %v9626_v11, %v9674_v22  ;;  %v4693_v46 = vsel %vm9675_vm12, %v4692_v16, %v4691_v32  ;;  %v4696_v56 = vrot.slane %v4367_v41, 2  ;;  %v3775_v8 = vmul.f32 %v3753_v12, %v9616_v14  ;;  %vm9683_vm15 = vmmov %vm9665_vm2  ;;  %v9708_v22 = vld [vmem:[#allocation51_spill] sm:$0xff] }
 0x8f2   : > { %v4695_v34 = vsel %vm9676_vm13, %v4694_v59, %v4693_v46  ;;  %v4698_v44 = vrot.slane %v4368_v50, 1  ;;  %v3776_v6 = vmul.f32 %v3760_v1, %v9619_v35  ;;  %v4546_v9 = vrot.slane %v3773_v2, 4  ;;  %vm9685_vm4 = vmmov %vm9668_vm7  ;;  %v9697_v1 = vld [vmem:[#allocation9_spill] sm:$0xff]  ;;  %v9709_v46 = vld [vmem:[#allocation52_spill] sm:$0xff] }
 0x8f3   : > { %v4697_v52 = vsel %vm9677_vm14, %v4696_v56, %v4695_v34  ;;  %v4544_v36 = vrot.slane %v9678_v48, 5  ;;  %v4548_v27 = vrot.slane %v3774_v31, 3  ;;  %v9680_v39 = vrot.slane %v9679_v57, 7  ;;  %vm9688_vm2 = vmmov %vm9671_vm10  ;;  %v9715_v48 = vld [vmem:[#allocation40_spill] sm:$0xff] }
 0x8f4   : > { %v4699_v60 = vsel %vm9682_vm3, %v4698_v44, %v4697_v52  ;;  %v4550_v12 = vrot.slane %v3775_v8, 2  ;;  %v4497_v43 = vmul.f32 %v9686_v0, %v9634_v25  ;;  %v4552_v13 = vrot.slane %v3776_v6, 1  ;;  %vm9689_vm1 = vmmov %vm9682_vm3  ;;  %v9712_v6 = vld [vmem:[#allocation59_spill] sm:$0xff]  ;;  %v5716_v0 = vld [vmem:[%s8902_s12] ss:$0 sm:$0xff] }
 0x8f5   : > { %v4541_v11 = vsel %vm9681_vm0, %v9680_v39, %v3769_v21  ;;  %4702 = vrot.lane.b32.xlu0 %v4699_v60, %s5731_s1  ;;  %vm9691_vm6 = vcmask 261120   ;;  %vm9692_vm7 = vcmask 523264   ;;  %vm9693_vm8 = vcmask 785408  }
 0x8f6   : > { %v4543_v58 = vsel %vm9683_vm15, %v4542_v45, %v4541_v11  ;;  %vm9694_vm10 = vmmov %vm9691_vm6  ;;  %v9699_v38 = vmin.f32 %v9697_v1, %v9698_v29  ;;  %v9710_v34 = vmov 0.0|0.0   ;;  %v9713_v52 = vmov 0.0   ;;  %v5605_v1 = vld [vmem:[%s8905_s15 + $0x8] sm:$0xff]  }
 0x8f7   : > { %v4545_v14 = vsel %vm9684_vm9, %v4544_v36, %v4543_v58  ;;  %vm9695_vm11 = vmmov %vm9692_vm7  ;;  %vm9714_vm15 = vmmov 0   ;;  %v9716_v36 = vld [vmem:[#allocation77_spill] sm:$0xff] }
 0x8f8   : > { %v4547_v35 = vsel %vm9685_vm4, %v4546_v9, %v4545_v14  ;;  %v4432_v33 = vmul.f32 %v9699_v38, %v9634_v25  ;;  %vm9700_vm12 = vmmov %vm9693_vm8  ;;  %v9707_v25 = vld [vmem:[#allocation68_spill] sm:$0xff]  ;;  %v5606_v38 = vld [vmem:[%s8907_s17] sm:$0x3f]  }
 0x8f9   : > { %v4549_v24 = vsel %vm9687_vm5, %v4548_v27, %v4547_v35  ;;  %4717 = vrot.lane.b32.xlu0 %v4497_v43, %s5727_s5  ;;  %vm9704_vm13 = vmmov %vm9691_vm6 }
 0x8fa   : > { %v4551_v5 = vsel %vm9688_vm2, %v4550_v12, %v4549_v24  ;;  %vm9705_vm14 = vmmov %vm9692_vm7  ;;  %vm5025_vm2 = vcmask 1045504  }
 0x8fb   : > { %v4553_v53 = vsel %vm9689_vm1, %v4552_v13, %v4551_v5  ;;  %vm9706_vm0 = vmmov %vm9693_vm8 }
 0x8fc   : > { %vm9711_vm3 = vmmov %vm9691_vm6 }
 0x8fd   : > { %4734 = vrot.lane.b32.xlu0 %v9690_v47, %s5731_s1  ;;  %vm9717_vm9 = vmmov %vm9692_vm7 }
 0x8fe   : > { %vm9718_vm4 = vmmov %vm9692_vm7 }
 0x8ff   : > { %vm9719_vm5 = vmmov %vm9718_vm4 }
 0x900   : > { %vm9720_vm1 = vmmov %vm9711_vm3 }
 0x90a   : > { %v4601_v51 = vpop.permute.xlu1 %4600 }
 0x90b   : > { %v4706_v10 = vsel %vm9691_vm6, %v4539_v3, %v4601_v51  ;;  %vm5021_vm6 = vcmask 97280  }
 0x917   : > { %v4651_v32 = vpop.permute.xlu1 %4650 }
 0x918   : > { %v4708_v23 = vsel %vm9692_vm7, %v4706_v10, %v4651_v32  ;;  %vm5095_vm7 = vcmask 7168  }
 0x922   : > { %v4603_v28 = vpop.permute.xlu0 %4602 }
 0x923   : > { %v4707_v19 = vsel %vm9694_vm10, %v4553_v53, %v4603_v28 }
 0x92e   : > { %v4653_v42 = vpop.permute.xlu0 %4652 }
 0x92f   : > { %v4709_v26 = vsel %vm9695_vm11, %v4707_v19, %v4653_v42 }
 0x94c   : > { %v4701_v15 = vpop.permute.xlu1 %4700 }
 0x94d   : > { %v4710_v55 = vsel %vm9693_vm8, %v4708_v23, %v4701_v15 }
 0x94e   : > { %v4727_v37 = vmul.f32 %v4710_v55, %v9696_v30  ;;  %v4729_v49 = vmul.f32 %v4710_v55, %v9701_v20 }
 0x950   : > { %v4714_v2 = vpop.permute.xlu1 %4713 }
 0x951   : > { %v4724_v3 = vsel %vm9704_vm13, %v4714_v2, %v4432_v33 }
 0x954   : > { %v4722_v31 = vpop.permute.xlu1 %4721 }
 0x967   : > { %v4703_v17 = vpop.permute.xlu0 %4702 }
 0x968   : > { %v4711_v18 = vsel %vm9700_vm12, %v4709_v26, %v4703_v17 }
 0x969   : > { %v4728_v61 = vmul.f32 %v4711_v18, %v9702_v4  ;;  %v4730_v7 = vmul.f32 %v4711_v18, %v9703_v40  ;;  %v4737_v62 = vpack.c.bf16 %v4711_v18, %v4710_v55  ;;  %v5027_v18 = vsel %vm5025_vm2, %v5606_v38, 0 }
 0x96b   : > { %v4739_v63 = vpack.c.bf16 %v4730_v7, %v4729_v49  ;;  %v4718_v41 = vpop.permute.xlu0 %4717  ;;  %v4738_v16 = vpack.c.bf16 %v4728_v61, %v4727_v37  ;;  %v5604_v37 = vld [vmem:[%s8905_s15] sm:$0xff]   ;;  %v5717_v61 = vld [vmem:[%s8904_s14 + $0x10] sm:$0xff] }
 0x96c   : > { %v4725_v54 = vsel %vm9705_vm14, %v4724_v3, %v4718_v41 }
 0x96d   : > { %v4726_v45 = vsel %vm9706_vm0, %v4725_v54, %v4722_v31  ;;  %4781 = vmatprep.mubr.bf16.mxu1 %v4738_v16  ;;  %4830 = vmatmul.mubr.bf16.vlgmr.msra.gmra.mrb[36].mxu0 %v4739_v63  ;;  %v5259_v63 = vld [vmem:[%s8906_s16] ss:$0 sm:$0xff] }
 0x96e   : > { %4782 = vmatmul.mubr.bf16.vlgmr.msra.gmra.mrb[28].mxu1 %v4737_v62  ;;  %v4731_v50 = vmul.f32 %v4726_v45, %v9707_v25  ;;  %v4732_v21 = vmul.f32 %v4726_v45, %v9708_v22  ;;  %v4740_v9 = vpack.c.bf16 %v4726_v45, %v4726_v45  ;;  %5523 = vmatpush3.bf16.msra.mxu0 %v5027_v18 }
 0x96f   : > { %v4735_v59 = vpop.permute.xlu0 %4734  ;;  %5542 = vmatpush3.bf16.msra.mxu1 %v9709_v46 }
 0x970   : > { %v4743_v56 = vpack.c.bf16 %v4735_v59, %v4735_v59  ;;  %v4741_v8 = vpack.c.bf16 %v4731_v50, %v4731_v50  ;;  %5543 = vmatprep.subr.bf16.mxu1 %v9710_v34  ;;  %v4742_v44 = vpack.c.bf16 %v4732_v21, %v4732_v21  ;;  %v5263_v59 = vld [vmem:[%s8908_s18] ss:$0 sm:$0xff] }
 0x972   : > { %4789 = vmatprep.mubr.bf16.mxu1 %v4741_v8  ;;  %5255 = vmatprep.mubr.msk.bf16.mxu0 %vm9711_vm3, %v4743_v56  ;;  %v5266_v8 = vld [vmem:[%s8909_s19] ss:$0 sm:$0xff] }
 0x973   : > { %5545 = vmatpush3.bf16.msra.mxu1 %v9712_v6 }
 0x974   : > { %5546 = vmatprep.subr.bf16.mxu1 %v9710_v34 }
 0x975   : > { %4838 = vmatmul.mubr.bf16.gmra.mrb[40].mxu0 %v4742_v44 }
 0x976   : > { %4790 = vmatmul.mubr.bf16.gmra.mrb[32].mxu1 %v4740_v9  ;;  %5524 = vmatprep.mubr.msk.bf16.mxu0 %vm9714_vm15, %v9713_v52 }
 0x977   : > { %5548 = vmatpush3.bf16.msra.mxu1 %v9715_v48  ;;  %5505 = vmatprep.mubr.msk.f32.mxu1 %vm9714_vm15, %v9713_v52 }
 0x978   : > { %5549 = vmatprep.subr.bf16.mxu1 %v9710_v34 }
 0x97b   : > { %5551 = vmatpush3.bf16.msra.mxu1 %v9716_v36 }
 0x97c   : > { %5514 = vmatprep.subr.bf16.mxu1 %v9713_v52 }
 0xa40   : > { %v4831_v27 = vpop.f32.mrb[36].mxu0 }
 0xa41   : > { %v5364_v57 = vpop.f32.mrb[28].mxu1  ;;  %v4833_v39 = vpop.f32.mrb[37].mxu0 }
 0xa42   : > { %v5365_v11 = vpop.f32.mrb[29].mxu1  ;;  %v4834_v60 = vpop.f32.mrb[38].mxu0 }
 0xa43   : > { %v5366_v58 = vadd.f32 %v5365_v11, %v5364_v57  ;;  %v5367_v14 = vpop.f32.mrb[30].mxu1  ;;  %v4836_v12 = vpop.f32.mrb[39].mxu0 }
 0xa44   : > { %v5368_v35 = vpop.f32.mrb[31].mxu1 }
 0xa45   : > { %v4784_v43 = vadd.f32 %v5716_v0, %v5366_v58  ;;  %v5369_v13 = vadd.f32 %v5368_v35, %v5367_v14 }
 0xa47   : > { %v4832_v24 = vadd.f32 %v4831_v27, %v4784_v43  ;;  %v4787_v5 = vadd.f32 %v5716_v0, %v5369_v13 }
 0xa48   : > { %v4839_v53 = vpop.f32.mrb[40].mxu0 }
 0xa49   : > { %v4845_v47 = vmax.f32 %v4832_v24, 0.0  ;;  %v4835_v51 = vadd.f32 %v4834_v60, %v4787_v5  ;;  %v5370_v32 = vpop.f32.mrb[32].mxu1  ;;  %v4841_v28 = vpop.f32.mrb[41].mxu0 }
 0xa4a   : > { %v5371_v15 = vpop.f32.mrb[33].mxu1  ;;  %v4842_v10 = vpop.f32.mrb[42].mxu0 }
 0xa4b   : > { %v5372_v42 = vadd.f32 %v5371_v15, %v5370_v32  ;;  %v5373_v23 = vpop.f32.mrb[34].mxu1  ;;  %v4843_v55 = vpop.f32.mrb[43].mxu0  ;;  %5506 = vmatmul.mubr.msk.f32.vlgmr.msra.gmra.mrb[36].mxu1 %vm9717_vm9, %v4845_v47  ;;  %v4846_v2 = vmax.f32 %v4835_v51, 0.0 }
 0xa4c   : > { %v5374_v19 = vpop.f32.mrb[35].mxu1  ;;  %5508 = vmatprep.mubr.msk.f32.mxu1 %vm9714_vm15, %v9713_v52  ;;  %5515 = vmatpush3.bf16.msra.mxu1 %v5604_v37 }
 0xa4d   : > { %v4792_v26 = vadd.f32 %v5716_v0, %v5372_v42  ;;  %5516 = vmatprep.subr.bf16.mxu1 %v9713_v52 }
 0xa4f   : > { %v4840_v17 = vadd.f32 %v4839_v53, %v4792_v26  ;;  %5509 = vmatmul.mubr.msk.f32.gmra.mrb[38].mxu1 %vm9718_vm4, %v4846_v2 }
 0xa50   : > { %5511 = vmatprep.mubr.msk.f32.mxu1 %vm9714_vm15, %v9713_v52  ;;  %5517 = vmatpush3.bf16.msra.mxu1 %v5605_v1 }
 0xa51   : > { %v4847_v30 = vmax.f32 %v4840_v17, 0.0 }
 0xa53   : > { %5512 = vmatmul.mubr.msk.f32.gmra.mrb[40].mxu1 %vm9719_vm5, %v4847_v30 }
 0xa54   : > { %5518 = vmatprep.mubr.msk.bf16.mxu1 %vm9714_vm15, %v9713_v52  ;;  %v5267_v52 = vld [vmem:[#allocation2] ss:$0 sm:$0xff] }
 0xb1e   : > { %v4923_v29 = vpop.f32.mrb[36].mxu1 }
 0xb1f   : > { %v5507_v33 = vpop.f32.mrb[37].mxu1 }
 0xb22   : > { %v4927_v20 = vpop.f32.mrb[38].mxu1 }
 0xb23   : > { %v5510_v49 = vpop.f32.mrb[39].mxu1 }
 0xb26   : > { %v4931_v4 = vpop.f32.mrb[40].mxu1 }
 0xb27   : > { %v4932_v40 = vadd.f32 %v5717_v61, %v4931_v4  ;;  %v5513_v7 = vpop.f32.mrb[41].mxu1 }
 0xb29   : > { %v4935_v62 = vpack.c.bf16 %v4932_v40, %v4932_v40 }
 0xb2b   : > { %4948 = vrot.lane.b32.xlu1 %v4935_v62, %s5731_s1 }
 0xb9d   : > { %v4949_v3 = vpop.permute.xlu1 %4948 }
 0xb9e   : > { %5519 = vmatmul.mubr.msk.bf16.vlgmr.msra.gmra.mrb[44].mxu1 %vm9720_vm1, %v4949_v3 }
 0xc71   : > { %v4999_v41 = vpop.f32.mrb[44].mxu1 }
 0xc72   : > { %v5000_v16 = vadd.f32 %v5259_v63, %v4999_v41  ;;  %v5520_v31 = vpop.f32.mrb[45].mxu1 }
 0xc73   : > { %v5002_v54 = vpop.f32.mrb[46].mxu1 }
 0xc74   : > { %v5005_v45 = vmax.f32 %v5000_v16, 0.0  ;;  %v5521_v25 = vpop.f32.mrb[47].mxu1 }
 0xc76   : > { %v5006_v50 = vpack.c.bf16 %v5005_v45, %v5005_v45 }
 0xc78   : > { %5525 = vmatmul.mubr.msk.bf16.vlgmr.msra.gmra.mrb[44].mxu0 %vm5021_vm6, %v5006_v50 }
 0xd4b   : > { %v5063_v22 = vpop.f32.mrb[44].mxu0 }
 0xd4c   : > { %v5064_v21 = vadd.f32 %v5263_v59, %v5063_v22  ;;  %v5526_v46 = vpop.f32.mrb[45].mxu0 }
 0xd4d   : > { %v5066_v56 = vpop.f32.mrb[46].mxu0 }
 0xd4e   : > { %v5069_v34 = vmax.f32 %v5064_v21, 0.0  ;;  %v5527_v44 = vpop.f32.mrb[47].mxu0 }
 0xd50   : > { %v5077_v6 = vmul.f32 %v5266_v8, %v5069_v34 }
 0xd52   : > { %v5078_v9 = vsel %vm5021_vm6, %v5077_v6, 0.0 }
 0xd53   : > { %5079 = vadd.xlane.f32.xlu0 %v5078_v9 }
 0xde0   : > { %v5080_v48 = vpop.xlane.xlu0 %5079 }
 0xde1   : > { %v5088_v36 = vadd.f32 %v5267_v52, %v5080_v48 }
 0xde3   : > { %v5268_v27 = vmul.f32 -1.442695, %v5088_v36 }
 0xde5   : > { %5693 = vpow2.f32 %v5268_v27 }
 0xdef   : > { %v5694_v57 = vpop.eup %5693 }
 0xdf0   : > { %v5092_v39 = vadd.f32 1.0, %v5694_v57 }
 0xdf2   : > { %5695 = vrcp.f32 %v5092_v39 }
 0xdfc   : > { %v5696_v11 = vpop.eup %5695 }
 0xdfd   : > { %5096 = vst.msk [vmem:[%s693_s2] sm:$0xff] %vm5095_vm7, %v5696_v11 }
 0xdfe PF: > { %s33_s26 = sadd.s32 1, %s5724_s26  }
 0xdff   : > { %p30_p4 = scmp.ge.s32.totalorder %s33_s26, 6  }
 0xe01   :  { %32 = sbr.rel (!%p30_p4) target bundleno = 7 (0x7), region = 140 }

</bundles_post_ra>
